<compile_context>
chip_gen: v5e
topology: v5e:2x2
jax: 0.10.0
libtpu: 0.0.40
codegen_flags: <defaults>
</compile_context>

<pallas_src>
import numpy as np
import jax
import jax.numpy as jnp
from jax import lax
from jax.experimental import pallas as pl
from jax.experimental.pallas import tpu as pltpu

# ---- static configuration (CoTLayer(dim=32, kernel_size=3), small shapes) ----
DIM = 32                        # channels
K = 3                           # kernel_size
B = 2                           # batch
H = 8
W = 8
HW = H * W
BHW = B * HW                    # 128 rows: both batch elements stacked on sublanes
K2 = K * K
GROUPS = 4                      # key_embed grouped conv
SHARE = 8                       # share_planes
CW = DIM // SHARE               # local-conv weight channels (4)
M = K2 * DIM // SHARE           # embed output channels (36)
CMID = DIM // 2                 # embed hidden channels (16)
RADIX = 2
ATTN_CHS = max(DIM * RADIX // 4, 32)   # 32
EPS = 1e-5
PAD = 16                        # sublane padding rows for the in-kernel shift scratch


# ----------------------------- Pallas kernel ---------------------------------
def cot_kernel(x_ref, mask_ref, wk_ref, we1_ref, we2_ref, wv_ref, ssel_ref,
               wse1_ref, wse2_ref, proj_ref, cvec_ref,
               o_ref, xpad_ref, vpad_ref):
    f32 = jnp.float32
    bf16 = jnp.bfloat16

    # coalesced per-channel constants: one 128-lane row per vector
    def cv(r, n):
        return cvec_ref[r:r + 1, 0:n]

    bnk_s, bnk_b = cv(0, DIM), cv(1, DIM)
    bne1_s, bne1_b = cv(2, CMID), cv(3, CMID)
    be2, gn_g, gn_b = cv(4, M), cv(5, M), cv(6, M)
    bnv_s, bnv_b = cv(7, DIM), cv(8, DIM)
    bn2_s, bn2_b = cv(9, DIM), cv(10, DIM)
    bse1, bnse_s, bnse_b = cv(11, ATTN_CHS), cv(12, ATTN_CHS), cv(13, ATTN_CHS)
    bse2a, bse2b = cv(14, DIM), cv(15, DIM)

    x_f = x_ref[...]                       # (BHW, DIM) f32, channels last
    x_b = x_f.astype(bf16)
    mask = mask_ref[...]                   # (BHW, K2*DIM) 0/1 validity per (row, tap)

    # static tap row offsets in the flat (b*HW + h*W + w) layout
    offs = [(t // K - (K - 1) // 2) * W + (t % K - (K - 1) // 2) for t in range(K2)]
    zpad = jnp.zeros((PAD, DIM), f32)

    # zero-padded scratch copy of x: the 9 taps are static row-offset windows of it
    xpad_ref[0:PAD, :] = zpad
    xpad_ref[PAD + BHW:2 * PAD + BHW, :] = zpad
    xpad_ref[PAD:PAD + BHW, :] = x_f

    # ---- key_embed: grouped 3x3 conv as ONE im2col matmul + BN + ReLU ----
    xcat = jnp.concatenate(
        [xpad_ref[PAD + s:PAD + s + BHW, :] for s in offs], axis=1)   # (BHW, 288) f32
    x_im2col = (xcat * mask).astype(bf16)
    k_acc = jnp.dot(x_im2col, wk_ref[...], preferred_element_type=f32)
    k_out = jnp.maximum(k_acc * bnk_s + bnk_b, 0.0)
    k_b = k_out.astype(bf16)

    # ---- embed: fused 1x1 on [x | k] + BN + ReLU + 1x1(+bias) ----
    qk = jnp.concatenate([x_b, k_b], axis=1)                          # (BHW, 2*DIM)
    a = jnp.dot(qk, we1_ref[...], preferred_element_type=f32)
    a = jnp.maximum(a * bne1_s + bne1_b, 0.0)
    w_raw = jnp.dot(a.astype(bf16), we2_ref[...], preferred_element_type=f32) + be2

    # ---- GroupNorm over (spatial, tap) per (batch, group): fused [w ; w*w] @ proj ----
    stacked = jnp.concatenate([w_raw, w_raw * w_raw], axis=0)         # (2*BHW, M) f32
    gsum = jnp.dot(stacked, proj_ref[...], preferred_element_type=f32)
    inv_cnt = 1.0 / float(HW * K2)
    mean0 = jnp.sum(gsum[0:HW], axis=0, keepdims=True) * inv_cnt
    mean1 = jnp.sum(gsum[HW:BHW], axis=0, keepdims=True) * inv_cnt
    msq0 = jnp.sum(gsum[BHW:BHW + HW], axis=0, keepdims=True) * inv_cnt
    msq1 = jnp.sum(gsum[BHW + HW:2 * BHW], axis=0, keepdims=True) * inv_cnt
    inv_std0 = lax.rsqrt(jnp.maximum(msq0 - mean0 * mean0, 0.0) + EPS)
    inv_std1 = lax.rsqrt(jnp.maximum(msq1 - mean1 * mean1, 0.0) + EPS)
    w_gn = jnp.concatenate(
        [(w_raw[0:HW] - mean0) * inv_std0,
         (w_raw[HW:BHW] - mean1) * inv_std1], axis=0) * gn_g + gn_b
    w_gn_b = w_gn.astype(bf16)

    # ---- value path: 1x1 conv + BN once; fused share-plane selection; aggregation ----
    v = jnp.dot(x_b, wv_ref[...], preferred_element_type=f32) * bnv_s + bnv_b
    vpad_ref[0:PAD, :] = zpad
    vpad_ref[PAD + BHW:2 * PAD + BHW, :] = zpad
    vpad_ref[PAD:PAD + BHW, :] = v
    vcat = jnp.concatenate(
        [vpad_ref[PAD + s:PAD + s + BHW, :] for s in offs], axis=1)   # (BHW, 288) f32
    v_im2col = vcat * mask

    w_all = jnp.dot(w_gn_b, ssel_ref[...], preferred_element_type=f32)  # (BHW, 288)
    prod = w_all * v_im2col
    out_lc = prod[:, 0:DIM]
    for t in range(1, K2):
        out_lc = out_lc + prod[:, t * DIM:(t + 1) * DIM]

    # ---- BN + swish ----
    x_bn = out_lc * bn2_s + bn2_b
    x_act = x_bn * pl.reciprocal(1.0 + jnp.exp(-x_bn), approx=True)

    # ---- split attention (radix = 2) over {x_act, k_out}: both halves in one SE pass ----
    s01 = x_act + k_out
    gap = jnp.concatenate(
        [jnp.sum(s01[0:HW], axis=0, keepdims=True),
         jnp.sum(s01[HW:BHW], axis=0, keepdims=True)], axis=0) * (1.0 / HW)  # (2, DIM)
    h1 = jnp.dot(gap.astype(bf16), wse1_ref[...], preferred_element_type=f32) + bse1
    h1 = jnp.maximum(h1 * bnse_s + bnse_b, 0.0)
    aa = jnp.dot(h1.astype(bf16), wse2_ref[...], preferred_element_type=f32)  # (2, 2*DIM)
    a0 = aa[:, 0:DIM] + bse2a
    a1 = aa[:, DIM:2 * DIM] + bse2b
    mx = jnp.maximum(a0, a1)
    e0 = jnp.exp(a0 - mx)
    e1 = jnp.exp(a1 - mx)
    inv = pl.reciprocal(e0 + e1, approx=True)
    att_x = e0 * inv                                                   # (2, DIM)
    att_k = e1 * inv

    # per-batch-half blend, 8-aligned sublane slices
    o_ref[0:HW, :] = x_act[0:HW] * att_x[0:1] + k_out[0:HW] * att_k[0:1]
    o_ref[HW:BHW, :] = x_act[HW:BHW] * att_x[1:2] + k_out[HW:BHW] * att_k[1:2]


# ------------------------------- wrapper --------------------------------------
def cot_layer_pallas(x_nchw, kargs):
    x2d = jnp.transpose(x_nchw, (0, 2, 3, 1)).reshape(BHW, DIM)

    def full_spec(a):
        nd = a.ndim
        return pl.BlockSpec(a.shape, lambda i, _n=nd: (0,) * _n)

    in_specs = ([pl.BlockSpec((BHW, DIM), lambda i: (0, 0))]
                + [full_spec(a) for a in kargs])
    out = pl.pallas_call(
        cot_kernel,
        out_shape=jax.ShapeDtypeStruct((BHW, DIM), jnp.float32),
        grid_spec=pltpu.PrefetchScalarGridSpec(
            num_scalar_prefetch=0,
            grid=(1,),
            in_specs=in_specs,
            out_specs=pl.BlockSpec((BHW, DIM), lambda i: (0, 0)),
            scratch_shapes=[pltpu.VMEM((BHW + 2 * PAD, DIM), jnp.float32),
                            pltpu.VMEM((BHW + 2 * PAD, DIM), jnp.float32)]),
        compiler_params=pltpu.CompilerParams(
            dimension_semantics=("arbitrary",)),
    )(x2d, *kargs)
    return jnp.transpose(out.reshape(B, H, W, DIM), (0, 3, 1, 2))


# -------------------------- deterministic params ------------------------------
def make_params(key):
    ks = jax.random.split(key, 40)
    it = iter(ks)

    def nrm(shape, s=0.1):
        return np.asarray(s * jax.random.normal(next(it), shape, dtype=jnp.float32))

    def bn_affine(c):
        gamma = 1.0 + nrm((c,))
        beta = nrm((c,))
        rmean = nrm((c,))
        rvar = 1.0 + np.abs(nrm((c,)))
        scale = (gamma / np.sqrt(rvar + EPS)).astype(np.float32)
        shift = (beta - rmean * scale).astype(np.float32)
        return scale, shift

    # key_embed grouped conv -> per-tap block-diagonal (C, C) matrices -> stacked (K2*C, C)
    wk4 = nrm((DIM, DIM // GROUPS, K, K))
    wk_taps = np.zeros((K2, DIM, DIM), np.float32)
    cpg = DIM // GROUPS
    for co in range(DIM):
        g = co // cpg
        for kh in range(K):
            for kw in range(K):
                wk_taps[kh * K + kw, g * cpg:(g + 1) * cpg, co] = wk4[co, :, kh, kw]
    wk_stack = wk_taps.reshape(K2 * DIM, DIM)
    bnk_s, bnk_b = bn_affine(DIM)

    we1 = nrm((CMID, 2 * DIM)).T                    # (2C, CMID)
    bne1_s, bne1_b = bn_affine(CMID)

    we2 = nrm((M, CMID)).T                          # (CMID, M)
    be2 = nrm((M,))
    gn_g = (1.0 + nrm((M,))).astype(np.float32)
    gn_b = nrm((M,))

    wv = nrm((DIM, DIM)).T
    bnv_s, bnv_b = bn_affine(DIM)
    bn2_s, bn2_b = bn_affine(DIM)

    wse1 = nrm((ATTN_CHS, DIM)).T                   # (C, A)
    bse1 = nrm((ATTN_CHS,))
    bnse_s, bnse_b = bn_affine(ATTN_CHS)
    wse2 = nrm((RADIX * DIM, ATTN_CHS)).T           # (A, 2C)
    bse2 = nrm((RADIX * DIM,))
    wse2a, wse2b = wse2[:, 0::RADIX], wse2[:, 1::RADIX]
    bse2a, bse2b = bse2[0::RADIX], bse2[1::RADIX]
    wse2_cat = np.concatenate([wse2a, wse2b], axis=1)   # (A, 2C) [radix0 | radix1]

    # local-conv share-plane selection: w_t[:, c] = w_gn[:, (c % CW)*K2 + t], fused taps
    ssel = np.zeros((K2, M, DIM), np.float32)
    for t in range(K2):
        for c in range(DIM):
            ssel[t, (c % CW) * K2 + t, c] = 1.0
    ssel_all = np.transpose(ssel, (1, 0, 2)).reshape(M, K2 * DIM)   # (M, K2*DIM)

    # GroupNorm group-membership matrix (group = channel // K2)
    proj = (np.arange(M)[:, None] // K2 == np.arange(M)[None, :] // K2).astype(np.float32)

    # per-(row, tap) spatial validity mask, lane-dense (BHW, K2*DIM)
    rows = np.arange(BHW)
    hh = (rows % HW) // W
    ww = rows % W
    mask_cat = np.zeros((BHW, K2 * DIM), np.float32)
    for t in range(K2):
        dh = t // K - (K - 1) // 2
        dw = t % K - (K - 1) // 2
        valid = ((hh + dh >= 0) & (hh + dh < H)
                 & (ww + dw >= 0) & (ww + dw < W)).astype(np.float32)
        mask_cat[:, t * DIM:(t + 1) * DIM] = valid[:, None]

    # coalesced per-channel constants, one 128-lane-padded row each
    cvec = np.zeros((16, 128), np.float32)
    for r, vv in enumerate([bnk_s, bnk_b, bne1_s, bne1_b, be2, gn_g, gn_b,
                            bnv_s, bnv_b, bn2_s, bn2_b, bse1, bnse_s, bnse_b,
                            bse2a, bse2b]):
        cvec[r, :vv.shape[0]] = vv

    bf = jnp.bfloat16
    kernel_args = (
        jnp.asarray(mask_cat, jnp.float32),
        jnp.asarray(wk_stack, bf),
        jnp.asarray(we1, bf),
        jnp.asarray(we2, bf),
        jnp.asarray(wv, bf),
        jnp.asarray(ssel_all, bf),
        jnp.asarray(wse1, bf),
        jnp.asarray(wse2_cat, bf),
        jnp.asarray(proj, jnp.float32),
        jnp.asarray(cvec, jnp.float32),
    )

    f32 = jnp.float32
    ref = dict(
        wk=jnp.asarray(wk_taps, bf).astype(f32),
        bnk_s=jnp.asarray(bnk_s), bnk_b=jnp.asarray(bnk_b),
        we1=jnp.asarray(we1, bf).astype(f32),
        bne1_s=jnp.asarray(bne1_s), bne1_b=jnp.asarray(bne1_b),
        we2=jnp.asarray(we2, bf).astype(f32), be2=jnp.asarray(be2),
        gn_g=jnp.asarray(gn_g), gn_b=jnp.asarray(gn_b),
        wv=jnp.asarray(wv, bf).astype(f32),
        bnv_s=jnp.asarray(bnv_s), bnv_b=jnp.asarray(bnv_b),
        bn2_s=jnp.asarray(bn2_s), bn2_b=jnp.asarray(bn2_b),
        wse1=jnp.asarray(wse1, bf).astype(f32), bse1=jnp.asarray(bse1),
        bnse_s=jnp.asarray(bnse_s), bnse_b=jnp.asarray(bnse_b),
        wse2a=jnp.asarray(wse2a, bf).astype(f32), bse2a=jnp.asarray(bse2a),
        wse2b=jnp.asarray(wse2b, bf).astype(f32), bse2b=jnp.asarray(bse2b),
    )
    return dict(kernel=kernel_args, ref=ref)


# ------------------------ pure-JAX reference (check) --------------------------
def cot_layer_ref(x_nchw, rp):
    x = jnp.transpose(x_nchw, (0, 2, 3, 1)).reshape(B, HW, DIM).astype(jnp.float32)
    hh = np.arange(HW) // W
    ww = np.arange(HW) % W

    def shifted(arr, t):
        dh = t // K - (K - 1) // 2
        dw = t % K - (K - 1) // 2
        valid = ((hh + dh >= 0) & (hh + dh < H) & (ww + dw >= 0)
                 & (ww + dw < W)).astype(np.float32)[None, :, None]
        src = np.clip(hh + dh, 0, H - 1) * W + np.clip(ww + dw, 0, W - 1)
        return arr[:, src, :] * valid

    k = jnp.zeros((B, HW, DIM), jnp.float32)
    for t in range(K2):
        k = k + shifted(x, t) @ rp['wk'][t]
    k = jnp.maximum(k * rp['bnk_s'] + rp['bnk_b'], 0.0)

    a = jnp.concatenate([x, k], axis=-1) @ rp['we1']
    a = jnp.maximum(a * rp['bne1_s'] + rp['bne1_b'], 0.0)
    w_raw = a @ rp['we2'] + rp['be2']
    wg = w_raw.reshape(B, HW, CW, K2)
    mu = wg.mean(axis=(1, 3), keepdims=True)
    var = wg.var(axis=(1, 3), keepdims=True)
    w_gn = ((wg - mu) / jnp.sqrt(var + EPS)).reshape(B, HW, M) * rp['gn_g'] + rp['gn_b']

    v = x @ rp['wv'] * rp['bnv_s'] + rp['bnv_b']
    out_lc = jnp.zeros((B, HW, DIM), jnp.float32)
    for t in range(K2):
        w_t = w_gn[:, :, (np.arange(DIM) % CW) * K2 + t]
        out_lc = out_lc + w_t * shifted(v, t)

    x_bn = out_lc * rp['bn2_s'] + rp['bn2_b']
    x_act = x_bn * jax.nn.sigmoid(x_bn)

    gap = jnp.mean(x_act + k, axis=1, keepdims=True)
    h1 = jnp.maximum((gap @ rp['wse1'] + rp['bse1']) * rp['bnse_s'] + rp['bnse_b'], 0.0)
    a0 = h1 @ rp['wse2a'] + rp['bse2a']
    a1 = h1 @ rp['wse2b'] + rp['bse2b']
    mx = jnp.maximum(a0, a1)
    e0 = jnp.exp(a0 - mx)
    e1 = jnp.exp(a1 - mx)
    out = x_act * (e0 / (e0 + e1)) + k * (e1 / (e0 + e1))
    return jnp.transpose(out.reshape(B, H, W, DIM), (0, 3, 1, 2))


# ---------------------------------- main ---------------------------------------
if __name__ == "__main__":
    root = jax.random.PRNGKey(0)
    k_x, k_p = jax.random.split(root)
    x = jax.random.normal(k_x, (B, DIM, H, W), jnp.float32)      # NCHW like PyTorch
    params = make_params(k_p)

    out = jax.jit(cot_layer_pallas)(x, params['kernel'])
    out = jax.block_until_ready(out)

    ref = cot_layer_ref(x, params['ref'])
    # tolerance reflects bf16 MXU operands + approx EUP reciprocals vs the f32 reference
    np.testing.assert_allclose(np.asarray(out), np.asarray(ref),
                               rtol=5e-2, atol=2.5e-2)
    print("KERNEL_OK")
</pallas_src>

<mosaic_0001>
module attributes {stable_mosaic.version = 11 : i64} {
  func.func @cot_kernel(%arg0: i32, %arg1: memref<128x32xf32, #tpu.memory_space<vmem>>, %arg2: memref<128x288xf32, #tpu.memory_space<vmem>>, %arg3: memref<288x32xbf16, #tpu.memory_space<vmem>>, %arg4: memref<64x16xbf16, #tpu.memory_space<vmem>>, %arg5: memref<16x36xbf16, #tpu.memory_space<vmem>>, %arg6: memref<32x32xbf16, #tpu.memory_space<vmem>>, %arg7: memref<36x288xbf16, #tpu.memory_space<vmem>>, %arg8: memref<32x32xbf16, #tpu.memory_space<vmem>>, %arg9: memref<32x64xbf16, #tpu.memory_space<vmem>>, %arg10: memref<36x36xf32, #tpu.memory_space<vmem>>, %arg11: memref<16x128xf32, #tpu.memory_space<vmem>>, %arg12: memref<128x32xf32, #tpu.memory_space<vmem>>, %arg13: memref<160x32xf32, #tpu.memory_space<vmem>>, %arg14: memref<160x32xf32, #tpu.memory_space<vmem>>) attributes {dimension_semantics = [#tpu.dimension_semantics<arbitrary>], iteration_bounds = array<i64: 1>, scalar_prefetch = 0 : i64, scratch_operands = 2 : i64, tpu.core_type = #tpu.core_type<tc>, window_params = [{pipeline_mode = #tpu.pipeline_mode<synchronous>, transform_indices = @transform_0, window_bounds = array<i64: 128, 32>}, {pipeline_mode = #tpu.pipeline_mode<synchronous>, transform_indices = @transform_1, window_bounds = array<i64: 128, 288>}, {pipeline_mode = #tpu.pipeline_mode<synchronous>, transform_indices = @transform_2, window_bounds = array<i64: 288, 32>}, {pipeline_mode = #tpu.pipeline_mode<synchronous>, transform_indices = @transform_3, window_bounds = array<i64: 64, 16>}, {pipeline_mode = #tpu.pipeline_mode<synchronous>, transform_indices = @transform_4, window_bounds = array<i64: 16, 36>}, {pipeline_mode = #tpu.pipeline_mode<synchronous>, transform_indices = @transform_5, window_bounds = array<i64: 32, 32>}, {pipeline_mode = #tpu.pipeline_mode<synchronous>, transform_indices = @transform_6, window_bounds = array<i64: 36, 288>}, {pipeline_mode = #tpu.pipeline_mode<synchronous>, transform_indices = @transform_7, window_bounds = array<i64: 32, 32>}, {pipeline_mode = #tpu.pipeline_mode<synchronous>, transform_indices = @transform_8, window_bounds = array<i64: 32, 64>}, {pipeline_mode = #tpu.pipeline_mode<synchronous>, transform_indices = @transform_9, window_bounds = array<i64: 36, 36>}, {pipeline_mode = #tpu.pipeline_mode<synchronous>, transform_indices = @transform_10, window_bounds = array<i64: 16, 128>}, {pipeline_mode = #tpu.pipeline_mode<synchronous>, transform_indices = @transform_11, window_bounds = array<i64: 128, 32>}]} {
    %c0 = arith.constant 0 : index
    %c0_0 = arith.constant 0 : index
    %0 = vector.load %arg11[%c0, %c0_0] : memref<16x128xf32, #tpu.memory_space<vmem>>, vector<1x32xf32>
    %c1 = arith.constant 1 : index
    %c0_1 = arith.constant 0 : index
    %1 = vector.load %arg11[%c1, %c0_1] : memref<16x128xf32, #tpu.memory_space<vmem>>, vector<1x32xf32>
    %c2 = arith.constant 2 : index
    %c0_2 = arith.constant 0 : index
    %2 = vector.load %arg11[%c2, %c0_2] : memref<16x128xf32, #tpu.memory_space<vmem>>, vector<1x16xf32>
    %c3 = arith.constant 3 : index
    %c0_3 = arith.constant 0 : index
    %3 = vector.load %arg11[%c3, %c0_3] : memref<16x128xf32, #tpu.memory_space<vmem>>, vector<1x16xf32>
    %c4 = arith.constant 4 : index
    %c0_4 = arith.constant 0 : index
    %4 = vector.load %arg11[%c4, %c0_4] : memref<16x128xf32, #tpu.memory_space<vmem>>, vector<1x36xf32>
    %c5 = arith.constant 5 : index
    %c0_5 = arith.constant 0 : index
    %5 = vector.load %arg11[%c5, %c0_5] : memref<16x128xf32, #tpu.memory_space<vmem>>, vector<1x36xf32>
    %c6 = arith.constant 6 : index
    %c0_6 = arith.constant 0 : index
    %6 = vector.load %arg11[%c6, %c0_6] : memref<16x128xf32, #tpu.memory_space<vmem>>, vector<1x36xf32>
    %c7 = arith.constant 7 : index
    %c0_7 = arith.constant 0 : index
    %7 = vector.load %arg11[%c7, %c0_7] : memref<16x128xf32, #tpu.memory_space<vmem>>, vector<1x32xf32>
    %c8 = arith.constant 8 : index
    %c0_8 = arith.constant 0 : index
    %8 = vector.load %arg11[%c8, %c0_8] : memref<16x128xf32, #tpu.memory_space<vmem>>, vector<1x32xf32>
    %c9 = arith.constant 9 : index
    %c0_9 = arith.constant 0 : index
    %9 = vector.load %arg11[%c9, %c0_9] : memref<16x128xf32, #tpu.memory_space<vmem>>, vector<1x32xf32>
    %c10 = arith.constant 10 : index
    %c0_10 = arith.constant 0 : index
    %10 = vector.load %arg11[%c10, %c0_10] : memref<16x128xf32, #tpu.memory_space<vmem>>, vector<1x32xf32>
    %c11 = arith.constant 11 : index
    %c0_11 = arith.constant 0 : index
    %11 = vector.load %arg11[%c11, %c0_11] : memref<16x128xf32, #tpu.memory_space<vmem>>, vector<1x32xf32>
    %c12 = arith.constant 12 : index
    %c0_12 = arith.constant 0 : index
    %12 = vector.load %arg11[%c12, %c0_12] : memref<16x128xf32, #tpu.memory_space<vmem>>, vector<1x32xf32>
    %c13 = arith.constant 13 : index
    %c0_13 = arith.constant 0 : index
    %13 = vector.load %arg11[%c13, %c0_13] : memref<16x128xf32, #tpu.memory_space<vmem>>, vector<1x32xf32>
    %c14 = arith.constant 14 : index
    %c0_14 = arith.constant 0 : index
    %14 = vector.load %arg11[%c14, %c0_14] : memref<16x128xf32, #tpu.memory_space<vmem>>, vector<1x32xf32>
    %c15 = arith.constant 15 : index
    %c0_15 = arith.constant 0 : index
    %15 = vector.load %arg11[%c15, %c0_15] : memref<16x128xf32, #tpu.memory_space<vmem>>, vector<1x32xf32>
    %c0_16 = arith.constant 0 : index
    %c0_17 = arith.constant 0 : index
    %16 = vector.load %arg1[%c0_16, %c0_17] : memref<128x32xf32, #tpu.memory_space<vmem>>, vector<128x32xf32>
    %17 = arith.truncf %16 : vector<128x32xf32> to vector<128x32xbf16>
    %c0_18 = arith.constant 0 : index
    %c0_19 = arith.constant 0 : index
    %18 = vector.load %arg2[%c0_18, %c0_19] : memref<128x288xf32, #tpu.memory_space<vmem>>, vector<128x288xf32>
    %cst = arith.constant 0.000000e+00 : f32
    %19 = vector.broadcast %cst : f32 to vector<16x32xf32>
    %c0_20 = arith.constant 0 : index
    %c0_21 = arith.constant 0 : index
    %20 = vector.load %arg13[%c0_20, %c0_21] : memref<160x32xf32, #tpu.memory_space<vmem>>, vector<16x32xf32>
    tpu.vector_store %arg13[%c0_20, %c0_21], %19 {strides = array<i32>} : memref<160x32xf32, #tpu.memory_space<vmem>>, vector<16x32xf32>,
    %c144 = arith.constant 144 : index
    %c0_22 = arith.constant 0 : index
    %21 = vector.load %arg13[%c144, %c0_22] : memref<160x32xf32, #tpu.memory_space<vmem>>, vector<16x32xf32>
    tpu.vector_store %arg13[%c144, %c0_22], %19 {strides = array<i32>} : memref<160x32xf32, #tpu.memory_space<vmem>>, vector<16x32xf32>,
    %c16 = arith.constant 16 : index
    %c0_23 = arith.constant 0 : index
    %22 = vector.load %arg13[%c16, %c0_23] : memref<160x32xf32, #tpu.memory_space<vmem>>, vector<128x32xf32>
    tpu.vector_store %arg13[%c16, %c0_23], %16 {strides = array<i32>} : memref<160x32xf32, #tpu.memory_space<vmem>>, vector<128x32xf32>,
    %c7_24 = arith.constant 7 : index
    %c0_25 = arith.constant 0 : index
    %23 = vector.load %arg13[%c7_24, %c0_25] : memref<160x32xf32, #tpu.memory_space<vmem>>, vector<128x32xf32>
    %c8_26 = arith.constant 8 : index
    %c0_27 = arith.constant 0 : index
    %24 = vector.load %arg13[%c8_26, %c0_27] : memref<160x32xf32, #tpu.memory_space<vmem>>, vector<128x32xf32>
    %c9_28 = arith.constant 9 : index
    %c0_29 = arith.constant 0 : index
    %25 = vector.load %arg13[%c9_28, %c0_29] : memref<160x32xf32, #tpu.memory_space<vmem>>, vector<128x32xf32>
    %c15_30 = arith.constant 15 : index
    %c0_31 = arith.constant 0 : index
    %26 = vector.load %arg13[%c15_30, %c0_31] : memref<160x32xf32, #tpu.memory_space<vmem>>, vector<128x32xf32>
    %c16_32 = arith.constant 16 : index
    %c0_33 = arith.constant 0 : index
    %27 = vector.load %arg13[%c16_32, %c0_33] : memref<160x32xf32, #tpu.memory_space<vmem>>, vector<128x32xf32>
    %c17 = arith.constant 17 : index
    %c0_34 = arith.constant 0 : index
    %28 = vector.load %arg13[%c17, %c0_34] : memref<160x32xf32, #tpu.memory_space<vmem>>, vector<128x32xf32>
    %c23 = arith.constant 23 : index
    %c0_35 = arith.constant 0 : index
    %29 = vector.load %arg13[%c23, %c0_35] : memref<160x32xf32, #tpu.memory_space<vmem>>, vector<128x32xf32>
    %c24 = arith.constant 24 : index
    %c0_36 = arith.constant 0 : index
    %30 = vector.load %arg13[%c24, %c0_36] : memref<160x32xf32, #tpu.memory_space<vmem>>, vector<128x32xf32>
    %c25 = arith.constant 25 : index
    %c0_37 = arith.constant 0 : index
    %31 = vector.load %arg13[%c25, %c0_37] : memref<160x32xf32, #tpu.memory_space<vmem>>, vector<128x32xf32>
    %32 = tpu.concatenate %23, %24, %25, %26, %27, %28, %29, %30, %31 in 1 : vector<128x32xf32>, vector<128x32xf32>, vector<128x32xf32>, vector<128x32xf32>, vector<128x32xf32>, vector<128x32xf32>, vector<128x32xf32>, vector<128x32xf32>, vector<128x32xf32> -> vector<128x288xf32>
    %33 = arith.mulf %32, %18 : vector<128x288xf32>
    %34 = arith.truncf %33 : vector<128x288xf32> to vector<128x288xbf16>
    %c0_38 = arith.constant 0 : index
    %c0_39 = arith.constant 0 : index
    %35 = vector.load %arg3[%c0_38, %c0_39] : memref<288x32xbf16, #tpu.memory_space<vmem>>, vector<288x32xbf16>
    %cst_40 = arith.constant dense<0.000000e+00> : vector<128x32xf32>
    %36 = tpu.matmul %34, %35, %cst_40 {dimension_numbers = #tpu.dot_dimension_numbers<[1], [0], [0], [1], [0, 0, 1, 1], [], []>} : vector<128x288xbf16>, vector<288x32xbf16>, vector<128x32xf32> -> vector<128x32xf32>
    %37 = vector.broadcast %0 : vector<1x32xf32> to vector<128x32xf32>
    %38 = arith.mulf %36, %37 : vector<128x32xf32>
    %39 = vector.broadcast %1 : vector<1x32xf32> to vector<128x32xf32>
    %40 = arith.addf %38, %39 : vector<128x32xf32>
    %cst_41 = arith.constant 0.000000e+00 : f32
    %41 = vector.broadcast %cst_41 : f32 to vector<128x32xf32>
    %42 = arith.maximumf %40, %41 : vector<128x32xf32>
    %43 = arith.truncf %42 : vector<128x32xf32> to vector<128x32xbf16>
    %44 = tpu.concatenate %17, %43 in 1 : vector<128x32xbf16>, vector<128x32xbf16> -> vector<128x64xbf16>
    %c0_42 = arith.constant 0 : index
    %c0_43 = arith.constant 0 : index
    %45 = vector.load %arg4[%c0_42, %c0_43] : memref<64x16xbf16, #tpu.memory_space<vmem>>, vector<64x16xbf16>
    %cst_44 = arith.constant dense<0.000000e+00> : vector<128x16xf32>
    %46 = tpu.matmul %44, %45, %cst_44 {dimension_numbers = #tpu.dot_dimension_numbers<[1], [0], [0], [1], [0, 0, 1, 1], [], []>} : vector<128x64xbf16>, vector<64x16xbf16>, vector<128x16xf32> -> vector<128x16xf32>
    %47 = vector.broadcast %2 : vector<1x16xf32> to vector<128x16xf32>
    %48 = arith.mulf %46, %47 : vector<128x16xf32>
    %49 = vector.broadcast %3 : vector<1x16xf32> to vector<128x16xf32>
    %50 = arith.addf %48, %49 : vector<128x16xf32>
    %cst_45 = arith.constant 0.000000e+00 : f32
    %51 = vector.broadcast %cst_45 : f32 to vector<128x16xf32>
    %52 = arith.maximumf %50, %51 : vector<128x16xf32>
    %53 = arith.truncf %52 : vector<128x16xf32> to vector<128x16xbf16>
    %c0_46 = arith.constant 0 : index
    %c0_47 = arith.constant 0 : index
    %54 = vector.load %arg5[%c0_46, %c0_47] : memref<16x36xbf16, #tpu.memory_space<vmem>>, vector<16x36xbf16>
    %cst_48 = arith.constant dense<0.000000e+00> : vector<128x36xf32>
    %55 = tpu.matmul %53, %54, %cst_48 {dimension_numbers = #tpu.dot_dimension_numbers<[1], [0], [0], [1], [0, 0, 1, 1], [], []>} : vector<128x16xbf16>, vector<16x36xbf16>, vector<128x36xf32> -> vector<128x36xf32>
    %56 = vector.broadcast %4 : vector<1x36xf32> to vector<128x36xf32>
    %57 = arith.addf %55, %56 : vector<128x36xf32>
    %58 = arith.mulf %57, %57 : vector<128x36xf32>
    %59 = tpu.concatenate %57, %58 in 0 : vector<128x36xf32>, vector<128x36xf32> -> vector<256x36xf32>
    %c0_49 = arith.constant 0 : index
    %c0_50 = arith.constant 0 : index
    %60 = vector.load %arg10[%c0_49, %c0_50] : memref<36x36xf32, #tpu.memory_space<vmem>>, vector<36x36xf32>
    %cst_51 = arith.constant dense<0.000000e+00> : vector<256x36xf32>
    %61 = tpu.matmul %59, %60, %cst_51 {dimension_numbers = #tpu.dot_dimension_numbers<[1], [0], [0], [1], [0, 0, 1, 1], [], []>} : vector<256x36xf32>, vector<36x36xf32>, vector<256x36xf32> -> vector<256x36xf32>
    %62 = vector.extract_strided_slice %61 {offsets = [0, 0], sizes = [64, 36], strides = [1, 1]} : vector<256x36xf32> to vector<64x36xf32>
    %cst_52 = arith.constant dense<0.000000e+00> : vector<36xf32>
    %63 = vector.multi_reduction <add>, %62, %cst_52 [0] : vector<64x36xf32> to vector<36xf32>
    %64 = vector.shape_cast %63 : vector<36xf32> to vector<1x36xf32>
    %cst_53 = arith.constant 0.00173611112 : f32
    %65 = vector.broadcast %cst_53 : f32 to vector<1x36xf32>
    %66 = arith.mulf %64, %65 : vector<1x36xf32>
    %67 = vector.extract_strided_slice %61 {offsets = [64, 0], sizes = [64, 36], strides = [1, 1]} : vector<256x36xf32> to vector<64x36xf32>
    %cst_54 = arith.constant dense<0.000000e+00> : vector<36xf32>
    %68 = vector.multi_reduction <add>, %67, %cst_54 [0] : vector<64x36xf32> to vector<36xf32>
    %69 = vector.shape_cast %68 : vector<36xf32> to vector<1x36xf32>
    %cst_55 = arith.constant 0.00173611112 : f32
    %70 = vector.broadcast %cst_55 : f32 to vector<1x36xf32>
    %71 = arith.mulf %69, %70 : vector<1x36xf32>
    %72 = vector.extract_strided_slice %61 {offsets = [128, 0], sizes = [64, 36], strides = [1, 1]} : vector<256x36xf32> to vector<64x36xf32>
    %cst_56 = arith.constant dense<0.000000e+00> : vector<36xf32>
    %73 = vector.multi_reduction <add>, %72, %cst_56 [0] : vector<64x36xf32> to vector<36xf32>
    %74 = vector.shape_cast %73 : vector<36xf32> to vector<1x36xf32>
    %cst_57 = arith.constant 0.00173611112 : f32
    %75 = vector.broadcast %cst_57 : f32 to vector<1x36xf32>
    %76 = arith.mulf %74, %75 : vector<1x36xf32>
    %77 = vector.extract_strided_slice %61 {offsets = [192, 0], sizes = [64, 36], strides = [1, 1]} : vector<256x36xf32> to vector<64x36xf32>
    %cst_58 = arith.constant dense<0.000000e+00> : vector<36xf32>
    %78 = vector.multi_reduction <add>, %77, %cst_58 [0] : vector<64x36xf32> to vector<36xf32>
    %79 = vector.shape_cast %78 : vector<36xf32> to vector<1x36xf32>
    %cst_59 = arith.constant 0.00173611112 : f32
    %80 = vector.broadcast %cst_59 : f32 to vector<1x36xf32>
    %81 = arith.mulf %79, %80 : vector<1x36xf32>
    %82 = arith.mulf %66, %66 : vector<1x36xf32>
    %83 = arith.subf %76, %82 : vector<1x36xf32>
    %cst_60 = arith.constant 0.000000e+00 : f32
    %84 = vector.broadcast %cst_60 : f32 to vector<1x36xf32>
    %85 = arith.maximumf %83, %84 : vector<1x36xf32>
    %cst_61 = arith.constant 9.99999974E-6 : f32
    %86 = vector.broadcast %cst_61 : f32 to vector<1x36xf32>
    %87 = arith.addf %85, %86 : vector<1x36xf32>
    %88 = math.rsqrt %87 : vector<1x36xf32>
    %89 = arith.mulf %71, %71 : vector<1x36xf32>
    %90 = arith.subf %81, %89 : vector<1x36xf32>
    %cst_62 = arith.constant 0.000000e+00 : f32
    %91 = vector.broadcast %cst_62 : f32 to vector<1x36xf32>
    %92 = arith.maximumf %90, %91 : vector<1x36xf32>
    %cst_63 = arith.constant 9.99999974E-6 : f32
    %93 = vector.broadcast %cst_63 : f32 to vector<1x36xf32>
    %94 = arith.addf %92, %93 : vector<1x36xf32>
    %95 = math.rsqrt %94 : vector<1x36xf32>
    %96 = vector.extract_strided_slice %57 {offsets = [0, 0], sizes = [64, 36], strides = [1, 1]} : vector<128x36xf32> to vector<64x36xf32>
    %97 = vector.broadcast %66 : vector<1x36xf32> to vector<64x36xf32>
    %98 = arith.subf %96, %97 : vector<64x36xf32>
    %99 = vector.broadcast %88 : vector<1x36xf32> to vector<64x36xf32>
    %100 = arith.mulf %98, %99 : vector<64x36xf32>
    %101 = vector.extract_strided_slice %57 {offsets = [64, 0], sizes = [64, 36], strides = [1, 1]} : vector<128x36xf32> to vector<64x36xf32>
    %102 = vector.broadcast %71 : vector<1x36xf32> to vector<64x36xf32>
    %103 = arith.subf %101, %102 : vector<64x36xf32>
    %104 = vector.broadcast %95 : vector<1x36xf32> to vector<64x36xf32>
    %105 = arith.mulf %103, %104 : vector<64x36xf32>
    %106 = tpu.concatenate %100, %105 in 0 : vector<64x36xf32>, vector<64x36xf32> -> vector<128x36xf32>
    %107 = vector.broadcast %5 : vector<1x36xf32> to vector<128x36xf32>
    %108 = arith.mulf %106, %107 : vector<128x36xf32>
    %109 = vector.broadcast %6 : vector<1x36xf32> to vector<128x36xf32>
    %110 = arith.addf %108, %109 : vector<128x36xf32>
    %111 = arith.truncf %110 : vector<128x36xf32> to vector<128x36xbf16>
    %c0_64 = arith.constant 0 : index
    %c0_65 = arith.constant 0 : index
    %112 = vector.load %arg6[%c0_64, %c0_65] : memref<32x32xbf16, #tpu.memory_space<vmem>>, vector<32x32xbf16>
    %cst_66 = arith.constant dense<0.000000e+00> : vector<128x32xf32>
    %113 = tpu.matmul %17, %112, %cst_66 {dimension_numbers = #tpu.dot_dimension_numbers<[1], [0], [0], [1], [0, 0, 1, 1], [], []>} : vector<128x32xbf16>, vector<32x32xbf16>, vector<128x32xf32> -> vector<128x32xf32>
    %114 = vector.broadcast %7 : vector<1x32xf32> to vector<128x32xf32>
    %115 = arith.mulf %113, %114 : vector<128x32xf32>
    %116 = vector.broadcast %8 : vector<1x32xf32> to vector<128x32xf32>
    %117 = arith.addf %115, %116 : vector<128x32xf32>
    %c0_67 = arith.constant 0 : index
    %c0_68 = arith.constant 0 : index
    %118 = vector.load %arg14[%c0_67, %c0_68] : memref<160x32xf32, #tpu.memory_space<vmem>>, vector<16x32xf32>
    tpu.vector_store %arg14[%c0_67, %c0_68], %19 {strides = array<i32>} : memref<160x32xf32, #tpu.memory_space<vmem>>, vector<16x32xf32>,
    %c144_69 = arith.constant 144 : index
    %c0_70 = arith.constant 0 : index
    %119 = vector.load %arg14[%c144_69, %c0_70] : memref<160x32xf32, #tpu.memory_space<vmem>>, vector<16x32xf32>
    tpu.vector_store %arg14[%c144_69, %c0_70], %19 {strides = array<i32>} : memref<160x32xf32, #tpu.memory_space<vmem>>, vector<16x32xf32>,
    %c16_71 = arith.constant 16 : index
    %c0_72 = arith.constant 0 : index
    %120 = vector.load %arg14[%c16_71, %c0_72] : memref<160x32xf32, #tpu.memory_space<vmem>>, vector<128x32xf32>
    tpu.vector_store %arg14[%c16_71, %c0_72], %117 {strides = array<i32>} : memref<160x32xf32, #tpu.memory_space<vmem>>, vector<128x32xf32>,
    %c7_73 = arith.constant 7 : index
    %c0_74 = arith.constant 0 : index
    %121 = vector.load %arg14[%c7_73, %c0_74] : memref<160x32xf32, #tpu.memory_space<vmem>>, vector<128x32xf32>
    %c8_75 = arith.constant 8 : index
    %c0_76 = arith.constant 0 : index
    %122 = vector.load %arg14[%c8_75, %c0_76] : memref<160x32xf32, #tpu.memory_space<vmem>>, vector<128x32xf32>
    %c9_77 = arith.constant 9 : index
    %c0_78 = arith.constant 0 : index
    %123 = vector.load %arg14[%c9_77, %c0_78] : memref<160x32xf32, #tpu.memory_space<vmem>>, vector<128x32xf32>
    %c15_79 = arith.constant 15 : index
    %c0_80 = arith.constant 0 : index
    %124 = vector.load %arg14[%c15_79, %c0_80] : memref<160x32xf32, #tpu.memory_space<vmem>>, vector<128x32xf32>
    %c16_81 = arith.constant 16 : index
    %c0_82 = arith.constant 0 : index
    %125 = vector.load %arg14[%c16_81, %c0_82] : memref<160x32xf32, #tpu.memory_space<vmem>>, vector<128x32xf32>
    %c17_83 = arith.constant 17 : index
    %c0_84 = arith.constant 0 : index
    %126 = vector.load %arg14[%c17_83, %c0_84] : memref<160x32xf32, #tpu.memory_space<vmem>>, vector<128x32xf32>
    %c23_85 = arith.constant 23 : index
    %c0_86 = arith.constant 0 : index
    %127 = vector.load %arg14[%c23_85, %c0_86] : memref<160x32xf32, #tpu.memory_space<vmem>>, vector<128x32xf32>
    %c24_87 = arith.constant 24 : index
    %c0_88 = arith.constant 0 : index
    %128 = vector.load %arg14[%c24_87, %c0_88] : memref<160x32xf32, #tpu.memory_space<vmem>>, vector<128x32xf32>
    %c25_89 = arith.constant 25 : index
    %c0_90 = arith.constant 0 : index
    %129 = vector.load %arg14[%c25_89, %c0_90] : memref<160x32xf32, #tpu.memory_space<vmem>>, vector<128x32xf32>
    %130 = tpu.concatenate %121, %122, %123, %124, %125, %126, %127, %128, %129 in 1 : vector<128x32xf32>, vector<128x32xf32>, vector<128x32xf32>, vector<128x32xf32>, vector<128x32xf32>, vector<128x32xf32>, vector<128x32xf32>, vector<128x32xf32>, vector<128x32xf32> -> vector<128x288xf32>
    %131 = arith.mulf %130, %18 : vector<128x288xf32>
    %c0_91 = arith.constant 0 : index
    %c0_92 = arith.constant 0 : index
    %132 = vector.load %arg7[%c0_91, %c0_92] : memref<36x288xbf16, #tpu.memory_space<vmem>>, vector<36x288xbf16>
    %cst_93 = arith.constant dense<0.000000e+00> : vector<128x288xf32>
    %133 = tpu.matmul %111, %132, %cst_93 {dimension_numbers = #tpu.dot_dimension_numbers<[1], [0], [0], [1], [0, 0, 1, 1], [], []>} : vector<128x36xbf16>, vector<36x288xbf16>, vector<128x288xf32> -> vector<128x288xf32>
    %134 = arith.mulf %133, %131 : vector<128x288xf32>
    %135 = vector.extract_strided_slice %134 {offsets = [0, 0], sizes = [128, 32], strides = [1, 1]} : vector<128x288xf32> to vector<128x32xf32>
    %136 = vector.extract_strided_slice %134 {offsets = [0, 32], sizes = [128, 32], strides = [1, 1]} : vector<128x288xf32> to vector<128x32xf32>
    %137 = arith.addf %135, %136 : vector<128x32xf32>
    %138 = vector.extract_strided_slice %134 {offsets = [0, 64], sizes = [128, 32], strides = [1, 1]} : vector<128x288xf32> to vector<128x32xf32>
    %139 = arith.addf %137, %138 : vector<128x32xf32>
    %140 = vector.extract_strided_slice %134 {offsets = [0, 96], sizes = [128, 32], strides = [1, 1]} : vector<128x288xf32> to vector<128x32xf32>
    %141 = arith.addf %139, %140 : vector<128x32xf32>
    %142 = vector.extract_strided_slice %134 {offsets = [0, 128], sizes = [128, 32], strides = [1, 1]} : vector<128x288xf32> to vector<128x32xf32>
    %143 = arith.addf %141, %142 : vector<128x32xf32>
    %144 = vector.extract_strided_slice %134 {offsets = [0, 160], sizes = [128, 32], strides = [1, 1]} : vector<128x288xf32> to vector<128x32xf32>
    %145 = arith.addf %143, %144 : vector<128x32xf32>
    %146 = vector.extract_strided_slice %134 {offsets = [0, 192], sizes = [128, 32], strides = [1, 1]} : vector<128x288xf32> to vector<128x32xf32>
    %147 = arith.addf %145, %146 : vector<128x32xf32>
    %148 = vector.extract_strided_slice %134 {offsets = [0, 224], sizes = [128, 32], strides = [1, 1]} : vector<128x288xf32> to vector<128x32xf32>
    %149 = arith.addf %147, %148 : vector<128x32xf32>
    %150 = vector.extract_strided_slice %134 {offsets = [0, 256], sizes = [128, 32], strides = [1, 1]} : vector<128x288xf32> to vector<128x32xf32>
    %151 = arith.addf %149, %150 : vector<128x32xf32>
    %152 = vector.broadcast %9 : vector<1x32xf32> to vector<128x32xf32>
    %153 = arith.mulf %151, %152 : vector<128x32xf32>
    %154 = vector.broadcast %10 : vector<1x32xf32> to vector<128x32xf32>
    %155 = arith.addf %153, %154 : vector<128x32xf32>
    %cst_94 = arith.constant 0.000000e+00 : f32
    %156 = vector.broadcast %cst_94 : f32 to vector<128x32xf32>
    %157 = arith.subf %156, %155 : vector<128x32xf32>
    %158 = math.exp %157 : vector<128x32xf32>
    %cst_95 = arith.constant 1.000000e+00 : f32
    %159 = vector.broadcast %cst_95 : f32 to vector<128x32xf32>
    %160 = arith.addf %159, %158 : vector<128x32xf32>
    %161 = tpu.reciprocal %160 {approx = true} : vector<128x32xf32> -> vector<128x32xf32>
    %162 = arith.mulf %155, %161 : vector<128x32xf32>
    %163 = arith.addf %162, %42 : vector<128x32xf32>
    %164 = vector.extract_strided_slice %163 {offsets = [0, 0], sizes = [64, 32], strides = [1, 1]} : vector<128x32xf32> to vector<64x32xf32>
    %cst_96 = arith.constant dense<0.000000e+00> : vector<32xf32>
    %165 = vector.multi_reduction <add>, %164, %cst_96 [0] : vector<64x32xf32> to vector<32xf32>
    %166 = vector.shape_cast %165 : vector<32xf32> to vector<1x32xf32>
    %167 = vector.extract_strided_slice %163 {offsets = [64, 0], sizes = [64, 32], strides = [1, 1]} : vector<128x32xf32> to vector<64x32xf32>
    %cst_97 = arith.constant dense<0.000000e+00> : vector<32xf32>
    %168 = vector.multi_reduction <add>, %167, %cst_97 [0] : vector<64x32xf32> to vector<32xf32>
    %169 = vector.shape_cast %168 : vector<32xf32> to vector<1x32xf32>
    %170 = tpu.concatenate %166, %169 in 0 : vector<1x32xf32>, vector<1x32xf32> -> vector<2x32xf32>
    %cst_98 = arith.constant 1.562500e-02 : f32
    %171 = vector.broadcast %cst_98 : f32 to vector<2x32xf32>
    %172 = arith.mulf %170, %171 : vector<2x32xf32>
    %173 = arith.truncf %172 : vector<2x32xf32> to vector<2x32xbf16>
    %c0_99 = arith.constant 0 : index
    %c0_100 = arith.constant 0 : index
    %174 = vector.load %arg8[%c0_99, %c0_100] : memref<32x32xbf16, #tpu.memory_space<vmem>>, vector<32x32xbf16>
    %cst_101 = arith.constant dense<0.000000e+00> : vector<2x32xf32>
    %175 = tpu.matmul %173, %174, %cst_101 {dimension_numbers = #tpu.dot_dimension_numbers<[1], [0], [0], [1], [0, 0, 1, 1], [], []>} : vector<2x32xbf16>, vector<32x32xbf16>, vector<2x32xf32> -> vector<2x32xf32>
    %176 = vector.broadcast %11 : vector<1x32xf32> to vector<2x32xf32>
    %177 = arith.addf %175, %176 : vector<2x32xf32>
    %178 = vector.broadcast %12 : vector<1x32xf32> to vector<2x32xf32>
    %179 = arith.mulf %177, %178 : vector<2x32xf32>
    %180 = vector.broadcast %13 : vector<1x32xf32> to vector<2x32xf32>
    %181 = arith.addf %179, %180 : vector<2x32xf32>
    %cst_102 = arith.constant 0.000000e+00 : f32
    %182 = vector.broadcast %cst_102 : f32 to vector<2x32xf32>
    %183 = arith.maximumf %181, %182 : vector<2x32xf32>
    %184 = arith.truncf %183 : vector<2x32xf32> to vector<2x32xbf16>
    %c0_103 = arith.constant 0 : index
    %c0_104 = arith.constant 0 : index
    %185 = vector.load %arg9[%c0_103, %c0_104] : memref<32x64xbf16, #tpu.memory_space<vmem>>, vector<32x64xbf16>
    %cst_105 = arith.constant dense<0.000000e+00> : vector<2x64xf32>
    %186 = tpu.matmul %184, %185, %cst_105 {dimension_numbers = #tpu.dot_dimension_numbers<[1], [0], [0], [1], [0, 0, 1, 1], [], []>} : vector<2x32xbf16>, vector<32x64xbf16>, vector<2x64xf32> -> vector<2x64xf32>
    %187 = vector.extract_strided_slice %186 {offsets = [0, 0], sizes = [2, 32], strides = [1, 1]} : vector<2x64xf32> to vector<2x32xf32>
    %188 = vector.broadcast %14 : vector<1x32xf32> to vector<2x32xf32>
    %189 = arith.addf %187, %188 : vector<2x32xf32>
    %190 = vector.extract_strided_slice %186 {offsets = [0, 32], sizes = [2, 32], strides = [1, 1]} : vector<2x64xf32> to vector<2x32xf32>
    %191 = vector.broadcast %15 : vector<1x32xf32> to vector<2x32xf32>
    %192 = arith.addf %190, %191 : vector<2x32xf32>
    %193 = arith.maximumf %189, %192 : vector<2x32xf32>
    %194 = arith.subf %189, %193 : vector<2x32xf32>
    %195 = math.exp %194 : vector<2x32xf32>
    %196 = arith.subf %192, %193 : vector<2x32xf32>
    %197 = math.exp %196 : vector<2x32xf32>
    %198 = arith.addf %195, %197 : vector<2x32xf32>
    %199 = tpu.reciprocal %198 {approx = true} : vector<2x32xf32> -> vector<2x32xf32>
    %200 = arith.mulf %195, %199 : vector<2x32xf32>
    %201 = arith.mulf %197, %199 : vector<2x32xf32>
    %202 = vector.extract_strided_slice %162 {offsets = [0, 0], sizes = [64, 32], strides = [1, 1]} : vector<128x32xf32> to vector<64x32xf32>
    %203 = vector.extract_strided_slice %200 {offsets = [0, 0], sizes = [1, 32], strides = [1, 1]} : vector<2x32xf32> to vector<1x32xf32>
    %204 = vector.broadcast %203 : vector<1x32xf32> to vector<64x32xf32>
    %205 = arith.mulf %202, %204 : vector<64x32xf32>
    %206 = vector.extract_strided_slice %42 {offsets = [0, 0], sizes = [64, 32], strides = [1, 1]} : vector<128x32xf32> to vector<64x32xf32>
    %207 = vector.extract_strided_slice %201 {offsets = [0, 0], sizes = [1, 32], strides = [1, 1]} : vector<2x32xf32> to vector<1x32xf32>
    %208 = vector.broadcast %207 : vector<1x32xf32> to vector<64x32xf32>
    %209 = arith.mulf %206, %208 : vector<64x32xf32>
    %210 = arith.addf %205, %209 : vector<64x32xf32>
    %c0_106 = arith.constant 0 : index
    %c0_107 = arith.constant 0 : index
    %211 = vector.load %arg12[%c0_106, %c0_107] : memref<128x32xf32, #tpu.memory_space<vmem>>, vector<64x32xf32>
    tpu.vector_store %arg12[%c0_106, %c0_107], %210 {strides = array<i32>} : memref<128x32xf32, #tpu.memory_space<vmem>>, vector<64x32xf32>,
    %212 = vector.extract_strided_slice %162 {offsets = [64, 0], sizes = [64, 32], strides = [1, 1]} : vector<128x32xf32> to vector<64x32xf32>
    %213 = vector.extract_strided_slice %200 {offsets = [1, 0], sizes = [1, 32], strides = [1, 1]} : vector<2x32xf32> to vector<1x32xf32>
    %214 = vector.broadcast %213 : vector<1x32xf32> to vector<64x32xf32>
    %215 = arith.mulf %212, %214 : vector<64x32xf32>
    %216 = vector.extract_strided_slice %42 {offsets = [64, 0], sizes = [64, 32], strides = [1, 1]} : vector<128x32xf32> to vector<64x32xf32>
    %217 = vector.extract_strided_slice %201 {offsets = [1, 0], sizes = [1, 32], strides = [1, 1]} : vector<2x32xf32> to vector<1x32xf32>
    %218 = vector.broadcast %217 : vector<1x32xf32> to vector<64x32xf32>
    %219 = arith.mulf %216, %218 : vector<64x32xf32>
    %220 = arith.addf %215, %219 : vector<64x32xf32>
    %c64 = arith.constant 64 : index
    %c0_108 = arith.constant 0 : index
    %221 = vector.load %arg12[%c64, %c0_108] : memref<128x32xf32, #tpu.memory_space<vmem>>, vector<64x32xf32>
    tpu.vector_store %arg12[%c64, %c0_108], %220 {strides = array<i32>} : memref<128x32xf32, #tpu.memory_space<vmem>>, vector<64x32xf32>,
    return
  }
  func.func @transform_0(%arg0: i32) -> (i32, i32) {
    %c0_i32 = arith.constant 0 : i32
    %c0_i32_0 = arith.constant 0 : i32
    %c0_i32_1 = arith.constant 0 : i32
    return %c0_i32, %c0_i32_0 : i32, i32
  }
  func.func @transform_1(%arg0: i32) -> (i32, i32) {
    %c0_i32 = arith.constant 0 : i32
    %c0_i32_0 = arith.constant 0 : i32
    %c0_i32_1 = arith.constant 0 : i32
    return %c0_i32, %c0_i32_0 : i32, i32
  }
  func.func @transform_2(%arg0: i32) -> (i32, i32) {
    %c0_i32 = arith.constant 0 : i32
    %c0_i32_0 = arith.constant 0 : i32
    %c0_i32_1 = arith.constant 0 : i32
    return %c0_i32, %c0_i32_0 : i32, i32
  }
  func.func @transform_3(%arg0: i32) -> (i32, i32) {
    %c0_i32 = arith.constant 0 : i32
    %c0_i32_0 = arith.constant 0 : i32
    %c0_i32_1 = arith.constant 0 : i32
    return %c0_i32, %c0_i32_0 : i32, i32
  }
  func.func @transform_4(%arg0: i32) -> (i32, i32) {
    %c0_i32 = arith.constant 0 : i32
    %c0_i32_0 = arith.constant 0 : i32
    %c0_i32_1 = arith.constant 0 : i32
    return %c0_i32, %c0_i32_0 : i32, i32
  }
  func.func @transform_5(%arg0: i32) -> (i32, i32) {
    %c0_i32 = arith.constant 0 : i32
    %c0_i32_0 = arith.constant 0 : i32
    %c0_i32_1 = arith.constant 0 : i32
    return %c0_i32, %c0_i32_0 : i32, i32
  }
  func.func @transform_6(%arg0: i32) -> (i32, i32) {
    %c0_i32 = arith.constant 0 : i32
    %c0_i32_0 = arith.constant 0 : i32
    %c0_i32_1 = arith.constant 0 : i32
    return %c0_i32, %c0_i32_0 : i32, i32
  }
  func.func @transform_7(%arg0: i32) -> (i32, i32) {
    %c0_i32 = arith.constant 0 : i32
    %c0_i32_0 = arith.constant 0 : i32
    %c0_i32_1 = arith.constant 0 : i32
    return %c0_i32, %c0_i32_0 : i32, i32
  }
  func.func @transform_8(%arg0: i32) -> (i32, i32) {
    %c0_i32 = arith.constant 0 : i32
    %c0_i32_0 = arith.constant 0 : i32
    %c0_i32_1 = arith.constant 0 : i32
    return %c0_i32, %c0_i32_0 : i32, i32
  }
  func.func @transform_9(%arg0: i32) -> (i32, i32) {
    %c0_i32 = arith.constant 0 : i32
    %c0_i32_0 = arith.constant 0 : i32
    %c0_i32_1 = arith.constant 0 : i32
    return %c0_i32, %c0_i32_0 : i32, i32
  }
  func.func @transform_10(%arg0: i32) -> (i32, i32) {
    %c0_i32 = arith.constant 0 : i32
    %c0_i32_0 = arith.constant 0 : i32
    %c0_i32_1 = arith.constant 0 : i32
    return %c0_i32, %c0_i32_0 : i32, i32
  }
  func.func @transform_11(%arg0: i32) -> (i32, i32) {
    %c0_i32 = arith.constant 0 : i32
    %c0_i32_0 = arith.constant 0 : i32
    %c0_i32_1 = arith.constant 0 : i32
    return %c0_i32, %c0_i32_0 : i32, i32
  }
}

</mosaic_0001>

<bundles_post_ra>
// kernel: cot_layer_pallas.1
= control target key start
LH: loop header
LB: loop body
LE: loop exit
PB: predicated region body
PF: predicated region fallthrough
CT: control target
= control target key end

     0   :  { %vm136_vm0 = vcmask 261120   ;;  %v4167_v5 = vmov 0.0   ;;  %s4168_s27 = smov 32   ;;  %s4169_s28 = smov 64   ;;  %s7028_s0 = inlined_call_operand.vmem [shape: f32[128,32], index: 0, kind: input, shape index: {}]   ;;  %s7029_s1 = inlined_call_operand.vmem [shape: f32[128,288], index: 1, kind: input, shape index: {}]   ;;  %s7030_s2 = inlined_call_operand.vmem [shape: bf16[288,32], index: 2, kind: input, shape index: {}]   ;;  %s7031_s3 = inlined_call_operand.vmem [shape: bf16[64,16], index: 3, kind: input, shape index: {}]   ;;  %s7032_s4 = inlined_call_operand.vmem [shape: bf16[16,36], index: 4, kind: input, shape index: {}]   ;;  %s7033_s5 = inlined_call_operand.vmem [shape: bf16[32,32], index: 5, kind: input, shape index: {}]   ;;  %s7034_s6 = inlined_call_operand.vmem [shape: bf16[36,288], index: 6, kind: input, shape index: {}]   ;;  %s7035_s7 = inlined_call_operand.vmem [shape: bf16[32,32], index: 7, kind: input, shape index: {}]   ;;  %s7036_s8 = inlined_call_operand.vmem [shape: bf16[32,64], index: 8, kind: input, shape index: {}]   ;;  %s7037_s9 = inlined_call_operand.vmem [shape: f32[36,36], index: 9, kind: input, shape index: {}]   ;;  %s7038_s10 = inlined_call_operand.vmem [shape: f32[16,128], index: 10, kind: input, shape index: {}]   ;;  %s7039_s11 = inlined_call_operand.hbm [shape: f32[128,32], index: 11, kind: output, shape index: {}]  }
   0x1   :  { %v4237_v0 = vld [vmem:[%s7028_s0 + $0x58] sm:$0xff]  ;;  %v4242_v1 = vld [vmem:[%s7028_s0 + $0x60] sm:$0xff]  ;;  %v4249_v2 = vld [vmem:[%s7028_s0 + $0x68] sm:$0xff]  ;;  %138 = vst.msk [vmem:[#allocation2 + $0x8] sm:$0xff] %vm136_vm0, %v4167_v5  ;;  %s4170_s29 = smov 96  }
   0x2   :  { %7085 = vst [vmem:[#allocation7_spill] sm:$0xff] %v4237_v0  ;;  %v4254_v3 = vld [vmem:[%s7028_s0 + $0x70] sm:$0xff]  ;;  %v4261_v4 = vld [vmem:[%s7028_s0 + $0x78] sm:$0xff]  ;;  %v4290_v9 = vld [vmem:[%s7028_s0] sm:$0xff] }
   0x3   :  { %7086 = vst [vmem:[#allocation8_spill] sm:$0xff] %v4242_v1  ;;  %v4296_v10 = vld [vmem:[%s7028_s0 + $0x8] sm:$0xff]  ;;  %v4304_v12 = vld [vmem:[%s7028_s0 + $0x10] sm:$0xff] }
   0x4   :  { %152 = vst.msk [vmem:[#allocation2 + $0x68] sm:$0xff] %vm136_vm0, %v4237_v0 }
   0x5   :  { %7087 = vst [vmem:[#allocation9_spill] sm:$0xff] %v4249_v2 }
   0x6   :  { %7088 = vst [vmem:[#allocation10_spill] sm:$0xff] %v4254_v3 }
   0x7   :  { %153 = vst.msk [vmem:[#allocation2 + $0x70] sm:$0xff] %vm136_vm0, %v4242_v1 }
   0x8   :  { %7089 = vst [vmem:[#allocation11_spill] sm:$0xff] %v4261_v4 }
   0x9   :  { %154 = vst.msk [vmem:[#allocation2 + $0x78] sm:$0xff] %vm136_vm0, %v4249_v2 }
   0xa   :  { %155 = vst.msk [vmem:[#allocation2 + $0x80] sm:$0xff] %vm136_vm0, %v4254_v3 }
   0xb   :  { %156 = vst.msk [vmem:[#allocation2 + $0x88] sm:$0xff] %vm136_vm0, %v4261_v4  ;;  %v4271_v6 = vld [vmem:[#allocation2 + $0x68] sm:$0xff] }
   0xc   :  { %137 = vst.msk [vmem:[#allocation2] sm:$0xff] %vm136_vm0, %v4167_v5  ;;  %251 = vrot.lane.b32.xlu0 %v4271_v6, %s4168_s27 }
   0xd   :  { %139 = vst.msk [vmem:[#allocation2 + $0x90] sm:$0xff] %vm136_vm0, %v4167_v5 }
   0xe   :  { %v4274_v7 = vld [vmem:[#allocation2 + $0x69] sm:$0xff]  ;;  %140 = vst.msk [vmem:[#allocation2 + $0x98] sm:$0xff] %vm136_vm0, %v4167_v5 }
   0xf   :  { %v4278_v8 = vld [vmem:[#allocation2 + $0x6f] sm:$0xff]  ;;  %315 = vrot.lane.b32.xlu1 %v4274_v7, %s4169_s28  ;;  %2000 = vst.msk [vmem:[#allocation3] sm:$0xff] %vm136_vm0, %v4167_v5 }
  0x10   :  { %379 = vrot.lane.b32.xlu2 %v4278_v8, %s4170_s29  ;;  %2001 = vst.msk [vmem:[#allocation3 + $0x8] sm:$0xff] %vm136_vm0, %v4167_v5  ;;  %v4298_v11 = vld [vmem:[#allocation2 + $0x70] sm:$0xff] }
  0x11   :  { %2002 = vst.msk [vmem:[#allocation3 + $0x90] sm:$0xff] %vm136_vm0, %v4167_v5  ;;  %v4306_v13 = vld [vmem:[#allocation2 + $0x71] sm:$0xff] }
  0x12   :  { %2003 = vst.msk [vmem:[#allocation3 + $0x98] sm:$0xff] %vm136_vm0, %v4167_v5  ;;  %v4310_v14 = vld [vmem:[#allocation2 + $0x77] sm:$0xff] }
  0x13   :  { %141 = vst.msk [vmem:[#allocation2 + $0x10] sm:$0xff] %vm136_vm0, %v4290_v9 }
  0x14   :  { %142 = vst.msk [vmem:[#allocation2 + $0x18] sm:$0xff] %vm136_vm0, %v4296_v10 }
  0x15   :  { %143 = vst.msk [vmem:[#allocation2 + $0x20] sm:$0xff] %vm136_vm0, %v4304_v12 }
  0x16   :  { %16 = vsyncpa [#allocation5], 0  ;;  %253 = vrot.lane.b32.xlu0 %v4298_v11, %s4168_s27  ;;  %v4322_v15 = vld [vmem:[#allocation2 + $0x78] sm:$0xff]  ;;  %v4324_v16 = vld [vmem:[#allocation2 + $0x80] sm:$0xff]  ;;  %vm567_vm1 = vcmask 523264   ;;  %vm584_vm2 = vcmask 785408  }
  0x17   :  { %317 = vrot.lane.b32.xlu1 %v4306_v13, %s4169_s28  ;;  %v4326_v17 = vld [vmem:[#allocation2 + $0x79] sm:$0xff]  ;;  %v4334_v18 = vld [vmem:[#allocation2 + $0x81] sm:$0xff]  ;;  %v4406_v35 = vld [vmem:[%s7028_s0 + $0x30] sm:$0xff]  ;;  %vm1386_vm3 = vcmask 130048   ;;  %vm1578_vm4 = vcmask 1043456   ;;  %vm1481_vm5 = vcmask 293888  }
  0x18   :  { %381 = vrot.lane.b32.xlu2 %v4310_v14, %s4170_s29  ;;  %v4336_v19 = vld [vmem:[#allocation2 + $0x7f] sm:$0xff]  ;;  %v4338_v20 = vld [vmem:[#allocation2 + $0x87] sm:$0xff]  ;;  %7093 = vst [vmem:[#allocation15_spill] sm:$0xff] %v4406_v35  ;;  %v3914_v37 = vld [vmem:[%s7030_s2 + $0x30] sm:$0xff]  ;;  %vm2632_vm6 = vcmask 1041408   ;;  %vm3473_vm13 = vcmask 1040384  }
  0x19   :  { %v173_v21 = vld [vmem:[#allocation2 + $0x8] sm:$0xff]  ;;  %v4352_v24 = vld [vmem:[%s7028_s0 + $0x18] sm:$0xff]  ;;  %v4357_v25 = vld [vmem:[%s7028_s0 + $0x20] sm:$0xff]  ;;  %147 = vst.msk [vmem:[#allocation2 + $0x40] sm:$0xff] %vm136_vm0, %v4406_v35  ;;  %s3665_s13 = sshll.u32 %s7039_s11, 4  ;;  %s4172_s14 = smov 128   ;;  %s3666_s13 = int_to_ptr.hbm [resolvable:$true] %s3665_s13 }
  0x1a   :  { %v4346_v22 = vld [vmem:[#allocation2 + $0x10] sm:$0xff]  ;;  %7090 = vst [vmem:[#allocation12_spill] sm:$0xff] %v4352_v24  ;;  %v4401_v34 = vld [vmem:[%s7028_s0 + $0x28] sm:$0xff]  ;;  %v3915_v36 = vld [vmem:[%s7030_s2 + $0x38] sm:$0xff]  ;;  %s4173_s15 = smov 8  }
  0x1b   :  { %v190_v23 = vld [vmem:[#allocation2 + $0x11] sm:$0xff]  ;;  %7091 = vst [vmem:[#allocation13_spill] sm:$0xff] %v4357_v25  ;;  %v189_v27 = vld [vmem:[#allocation2 + $0x9] sm:$0xff]  ;;  %3943 = vmatpush.bf16.msra.mxu1 %v3915_v36  ;;  %889 = vmatpush.bf16.msra.mxu0 %v3915_v36  ;;  %v3912_v40 = vld [vmem:[%s7030_s2 + $0x20] sm:$0xff] }
  0x1c   :  { %144 = vst.msk [vmem:[#allocation2 + $0x28] sm:$0xff] %vm136_vm0, %v4352_v24  ;;  %v4366_v26 = vld [vmem:[#allocation2 + $0x19] sm:$0xff]  ;;  %v4376_v30 = vld [vmem:[#allocation2 + $0xf] sm:$0xff] }
  0x1d   :  { %145 = vst.msk [vmem:[#allocation2 + $0x30] sm:$0xff] %vm136_vm0, %v4357_v25  ;;  %v4372_v28 = vld [vmem:[#allocation2 + $0x17] sm:$0xff]  ;;  %v4374_v29 = vld [vmem:[#allocation2 + $0x1f] sm:$0xff]  ;;  %v3913_v39 = vld [vmem:[%s7030_s2 + $0x28] sm:$0xff] }
  0x1e   :  { %255 = vrot.lane.b32.xlu0 %v4322_v15, %s4168_s27  ;;  %v4384_v31 = vld [vmem:[#allocation2 + $0x18] sm:$0xff]  ;;  %v4388_v32 = vld [vmem:[#allocation2 + $0x20] sm:$0xff]  ;;  %7092 = vst [vmem:[#allocation14_spill] sm:$0xff] %v4401_v34  ;;  %v4439_v41 = vld [vmem:[%s7028_s0 + $0x50] sm:$0xff] }
  0x1f   :  { %257 = vrot.lane.b32.xlu1 %v4324_v16, %s4168_s27  ;;  %146 = vst.msk [vmem:[#allocation2 + $0x38] sm:$0xff] %vm136_vm0, %v4401_v34  ;;  %3944 = vmatpush.bf16.msra.mxu1 %v3914_v37  ;;  %v3911_v44 = vld [vmem:[%s7030_s2 + $0x18] sm:$0xff]  ;;  %v3910_v45 = vld [vmem:[%s7030_s2 + $0x10] sm:$0xff]  ;;  %v3909_v48 = vld [vmem:[%s7030_s2 + $0x8] sm:$0xff] }
  0x20   :  { %319 = vrot.lane.b32.xlu2 %v4326_v17, %s4169_s28  ;;  %890 = vmatpush.bf16.msra.mxu0 %v3914_v37  ;;  %7094 = vst [vmem:[#allocation16_spill] sm:$0xff] %v4439_v41  ;;  %v3908_v50 = vld [vmem:[%s7030_s2] sm:$0xff]  ;;  %v4482_v52 = vld [vmem:[%s7028_s0 + $0x38] sm:$0xff]  ;;  %v3922_v5 = vld [vmem:[%s7030_s2 + $0x70] sm:$0xff] }
  0x21   :  { %151 = vst.msk [vmem:[#allocation2 + $0x60] sm:$0xff] %vm136_vm0, %v4439_v41  ;;  %v4487_v53 = vld [vmem:[%s7028_s0 + $0x40] sm:$0xff]  ;;  %v3923_v59 = vld [vmem:[%s7030_s2 + $0x78] sm:$0xff]  ;;  %v3921_v37 = vld [vmem:[%s7030_s2 + $0x68] sm:$0xff] }
  0x22   :  { %7095 = vst [vmem:[#allocation17_spill] sm:$0xff] %v4482_v52  ;;  %v4534_v36 = vld [vmem:[#allocation2 + $0x40] sm:$0xff] }
  0x23   :  { %v4394_v33 = vld [vmem:[#allocation2 + $0x21] sm:$0xff]  ;;  %3945 = vmatpush.bf16.msra.mxu1 %v3913_v39  ;;  %7096 = vst [vmem:[#allocation18_spill] sm:$0xff] %v4487_v53 }
  0x24   :  { %v4422_v38 = vld [vmem:[#allocation2 + $0x29] sm:$0xff]  ;;  %891 = vmatpush.bf16.msra.mxu0 %v3913_v39  ;;  %148 = vst.msk [vmem:[#allocation2 + $0x48] sm:$0xff] %vm136_vm0, %v4482_v52  ;;  %v3916_v0 = vld [vmem:[%s7030_s2 + $0x40] sm:$0xff] }
  0x25   :  { %v4443_v42 = vld [vmem:[#allocation2 + $0x27] sm:$0xff]  ;;  %v4445_v43 = vld [vmem:[#allocation2 + $0x2f] sm:$0xff]  ;;  %149 = vst.msk [vmem:[#allocation2 + $0x50] sm:$0xff] %vm136_vm0, %v4487_v53 }
  0x26   :  { %321 = vrot.lane.b32.xlu0 %v4334_v18, %s4169_s28  ;;  %v4459_v46 = vld [vmem:[#allocation2 + $0x28] sm:$0xff]  ;;  %v4463_v47 = vld [vmem:[#allocation2 + $0x30] sm:$0xff]  ;;  %v4497_v55 = vld [vmem:[#allocation2 + $0x39] sm:$0xff] }
  0x27   :  { %383 = vrot.lane.b32.xlu1 %v4336_v19, %s4170_s29  ;;  %3946 = vmatpush.bf16.msra.mxu1 %v3912_v40  ;;  %v4475_v51 = vld [vmem:[#allocation2 + $0x31] sm:$0xff]  ;;  %v4509_v58 = vld [vmem:[#allocation2 + $0x3f] sm:$0xff] }
  0x28   :  { %385 = vrot.lane.b32.xlu2 %v4338_v20, %s4170_s29  ;;  %892 = vmatpush.bf16.msra.mxu0 %v3912_v40  ;;  %v4507_v57 = vld [vmem:[#allocation2 + $0x37] sm:$0xff]  ;;  %v4520_v61 = vld [vmem:[#allocation2 + $0x67] sm:$0xff] }
  0x2b   :  { %3947 = vmatpush.bf16.msra.mxu1 %v3911_v44 }
  0x2c   :  { %893 = vmatpush.bf16.msra.mxu0 %v3911_v44 }
  0x2e   :  { %227 = vrot.lane.b32.xlu0 %v173_v21, %s4168_s27 }
  0x2f   :  { %229 = vrot.lane.b32.xlu1 %v4346_v22, %s4168_s27  ;;  %3948 = vmatpush.bf16.msra.mxu1 %v3910_v45 }
  0x30   :  { %404 = vrot.lane.b32.xlu2 %v190_v23, %s4168_s27  ;;  %894 = vmatpush.bf16.msra.mxu0 %v3910_v45  ;;  %v124_v45 = vld [vmem:[%s7029_s1 + $0x120] sm:$0xff] }
  0x33   :  { %3949 = vmatpush.bf16.msra.mxu1 %v3909_v48 }
  0x34   :  { %895 = vmatpush.bf16.msra.mxu0 %v3909_v48  ;;  %v127_v48 = vld [vmem:[%s7029_s1 + $0x138] sm:$0xff] }
  0x36   :  { %406 = vrot.lane.b32.xlu0 %v4366_v26, %s4168_s27 }
  0x37   :  { %291 = vrot.lane.b32.xlu1 %v189_v27, %s4169_s28  ;;  %3950 = vmatpush.bf16.msra.mxu1 %v3908_v50 }
  0x38   :  { %293 = vrot.lane.b32.xlu2 %v190_v23, %s4169_s28  ;;  %896 = vmatpush.bf16.msra.mxu0 %v3908_v50  ;;  %v4529_v23 = vld [vmem:[#allocation2 + $0x38] sm:$0xff] }
  0x3b   :  { %938 = vmatpush.bf16.msrb.mxu1 %v3923_v59 }
  0x3e   :  { %453 = vrot.lane.b32.xlu0 %v4372_v28, %s4169_s28 }
  0x3f   :  { %455 = vrot.lane.b32.xlu1 %v4374_v29, %s4169_s28  ;;  %939 = vmatpush.bf16.msrb.mxu1 %v3922_v5 }
  0x40   :  { %355 = vrot.lane.b32.xlu2 %v4376_v30, %s4170_s29 }
  0x43   :  { %940 = vmatpush.bf16.msrb.mxu1 %v3921_v37 }
  0x46   :  { %357 = vrot.lane.b32.xlu0 %v4372_v28, %s4170_s29 }
  0x47   :  { %503 = vrot.lane.b32.xlu1 %v4384_v31, %s4170_s29 }
  0x48   :  { %505 = vrot.lane.b32.xlu2 %v4388_v32, %s4170_s29 }
  0x4e   :  { %231 = vrot.lane.b32.xlu0 %v4384_v31, %s4168_s27 }
  0x4f   :  { %233 = vrot.lane.b32.xlu1 %v4388_v32, %s4168_s27 }
  0x50   :  { %408 = vrot.lane.b32.xlu2 %v4394_v33, %s4168_s27 }
  0x56   :  { %410 = vrot.lane.b32.xlu0 %v4422_v38, %s4168_s27 }
  0x57   :  { %295 = vrot.lane.b32.xlu1 %v4366_v26, %s4169_s28 }
  0x58   :  { %297 = vrot.lane.b32.xlu2 %v4394_v33, %s4169_s28 }
  0x5e   :  { %457 = vrot.lane.b32.xlu0 %v4443_v42, %s4169_s28 }
  0x5f   :  { %459 = vrot.lane.b32.xlu1 %v4445_v43, %s4169_s28 }
  0x60   :  { %359 = vrot.lane.b32.xlu2 %v4374_v29, %s4170_s29 }
  0x66   :  { %361 = vrot.lane.b32.xlu0 %v4443_v42, %s4170_s29 }
  0x67   :  { %507 = vrot.lane.b32.xlu1 %v4459_v46, %s4170_s29 }
  0x68   :  { %509 = vrot.lane.b32.xlu2 %v4463_v47, %s4170_s29 }
  0x6a   :  { %v380_v49 = vpop.permute.xlu2 %379 }
  0x6e   :  { %235 = vrot.lane.b32.xlu0 %v4459_v46, %s4168_s27 }
  0x6f   :  { %237 = vrot.lane.b32.xlu1 %v4463_v47, %s4168_s27 }
  0x70   :  { %412 = vrot.lane.b32.xlu2 %v4475_v51, %s4168_s27 }
  0x72   :  { %v382_v54 = vpop.permute.xlu2 %381 }
  0x76   :  { %414 = vrot.lane.b32.xlu0 %v4497_v55, %s4168_s27 }
  0x77   :  { %299 = vrot.lane.b32.xlu1 %v4422_v38, %s4169_s28 }
  0x78   :  { %301 = vrot.lane.b32.xlu2 %v4475_v51, %s4169_s28 }
  0x7a   :  { %v4505_v56 = vpop.permute.xlu2 %319 }
  0x7e   :  { %461 = vrot.lane.b32.xlu0 %v4507_v57, %s4169_s28  ;;  %v252_v60 = vpop.permute.xlu0 %251 }
  0x7f   :  { %463 = vrot.lane.b32.xlu1 %v4509_v58, %s4169_s28  ;;  %v563_v21 = vsel %vm136_vm0, %v4520_v61, %v252_v60 }
  0x80   :  { %363 = vrot.lane.b32.xlu2 %v4445_v43, %s4170_s29 }
  0x81   :  { %v316_v62 = vpop.permute.xlu1 %315 }
  0x82   :  { %v4522_v63 = vpop.permute.xlu2 %385  ;;  %v580_v27 = vsel %vm567_vm1, %v563_v21, %v316_v62  ;;  %v3920_v62 = vld [vmem:[%s7030_s2 + $0x60] sm:$0xff] }
  0x83   :  { %v597_v50 = vsel %vm584_vm2, %v580_v27, %v380_v49  ;;  %941 = vmatpush.bf16.msrb.mxu1 %v3920_v62  ;;  %v3919_v49 = vld [vmem:[%s7030_s2 + $0x58] sm:$0xff]  ;;  %v4569_v27 = vld [vmem:[%s7028_s0 + $0x48] sm:$0xff] }
  0x84   :  { %v685_v21 = vmul.f32 %v597_v50, %v124_v45  ;;  %7097 = vst [vmem:[#allocation19_spill] sm:$0xff] %v4569_v27  ;;  %v3918_v50 = vld [vmem:[%s7030_s2 + $0x50] sm:$0xff] }
  0x85   :  { %150 = vst.msk [vmem:[#allocation2 + $0x58] sm:$0xff] %vm136_vm0, %v4569_v27 }
  0x86   :  { %365 = vrot.lane.b32.xlu0 %v4507_v57, %s4170_s29 }
  0x87   :  { %511 = vrot.lane.b32.xlu1 %v4529_v23, %s4170_s29  ;;  %942 = vmatpush.bf16.msrb.mxu1 %v3919_v49  ;;  %v3924_v49 = vld [vmem:[%s7030_s2 + $0x80] sm:$0xff] }
  0x88   :  { %513 = vrot.lane.b32.xlu2 %v4534_v36, %s4170_s29  ;;  %v254_v39 = vpop.permute.xlu0 %253 }
  0x89   :  { %v318_v40 = vpop.permute.xlu1 %317  ;;  %v564_v44 = vsel %vm136_vm0, %v4278_v8, %v254_v39  ;;  %v4559_v39 = vld [vmem:[#allocation2 + $0x41] sm:$0xff] }
  0x8a   :  { %v4552_v59 = vpop.permute.xlu2 %404  ;;  %v581_v60 = vsel %vm567_vm1, %v564_v44, %v318_v40  ;;  %v90_v40 = vld [vmem:[%s7029_s1 + $0x10] sm:$0xff] }
  0x8b   :  { %v598_v5 = vsel %vm584_vm2, %v581_v60, %v382_v54  ;;  %v4591_v60 = vld [vmem:[#allocation2 + $0x49] sm:$0xff]  ;;  %v651_v62 = vmul.f32 %v4366_v26, %v90_v40  ;;  %943 = vmatpush.bf16.msrb.mxu1 %v3918_v50 }
  0x8c   :  { %v688_v37 = vmul.f32 %v598_v5, %v127_v48  ;;  %v93_v48 = vld [vmem:[%s7029_s1 + $0x28] sm:$0xff] }
  0x8d   :  { %v654_v5 = vmul.f32 %v4394_v33, %v93_v48  ;;  %v130_v33 = vld [vmem:[%s7029_s1 + $0x150] sm:$0xff]  ;;  %v133_v40 = vld [vmem:[%s7029_s1 + $0x168] sm:$0xff] }
  0x8e   :  { %239 = vrot.lane.b32.xlu0 %v4529_v23, %s4168_s27  ;;  %v715_v4 = vpack.c.bf16 %v688_v37, %v685_v21  ;;  %v3917_v37 = vld [vmem:[%s7030_s2 + $0x48] sm:$0xff] }
  0x8f   :  { %241 = vrot.lane.b32.xlu1 %v4534_v36, %s4168_s27  ;;  %944 = vmatpush.bf16.msrb.mxu1 %v3917_v37  ;;  %v699_v2 = vpack.c.bf16 %v654_v5, %v651_v62  ;;  %v4649_v37 = vld [vmem:[#allocation2 + $0x51] sm:$0xff] }
  0x90   :  { %416 = vrot.lane.b32.xlu2 %v4559_v39, %s4168_s27  ;;  %v256_v54 = vpop.permute.xlu0 %255  ;;  %927 = vmatmul.bf16.vlgmr.msra.gmra.mxu1 %v715_v4  ;;  %v3925_v4 = vld [vmem:[%s7030_s2 + $0x88] sm:$0xff] }
  0x91   :  { %v258_v44 = vpop.permute.xlu1 %257  ;;  %993 = vmatpush.bf16.msra.mxu2 %v3925_v4  ;;  %v565_v21 = vsel %vm136_vm0, %v4310_v14, %v256_v54 }
  0x92   :  { %v4580_v45 = vpop.permute.xlu2 %293  ;;  %v566_v26 = vsel %vm136_vm0, %v4336_v19, %v258_v44  ;;  %v582_v50 = vsel %vm567_vm1, %v565_v21, %v4505_v56  ;;  %v4629_v56 = vld [vmem:[#allocation2 + $0x4f] sm:$0xff] }
  0x93   :  { %945 = vmatpush.bf16.msrb.mxu1 %v3916_v0 }
  0x95   :  { %994 = vmatpush.bf16.msra.mxu2 %v3924_v49  ;;  %v4626_v49 = vld [vmem:[#allocation2 + $0x47] sm:$0xff] }
  0x96   :  { %418 = vrot.lane.b32.xlu0 %v4591_v60, %s4168_s27 }
  0x97   :  { %303 = vrot.lane.b32.xlu1 %v4497_v55, %s4169_s28 }
  0x98   :  { %305 = vrot.lane.b32.xlu2 %v4559_v39, %s4169_s28  ;;  %v322_v54 = vpop.permute.xlu0 %321  ;;  %3749 = vmatmul.msk.bf16.vlgmr.msra.gmra.mxu2 %vm136_vm0, %v699_v2  ;;  %v4641_v2 = vld [vmem:[#allocation2 + $0x50] sm:$0xff] }
  0x99   :  { %v384_v48 = vpop.permute.xlu1 %383  ;;  %v583_v4 = vsel %vm567_vm1, %v566_v26, %v322_v54  ;;  %v157_v26 = vld [vmem:[#allocation2 + $0x7] sm:$0xff] }
  0x9a   :  { %v356_v3 = vpop.permute.xlu2 %355  ;;  %v599_v44 = vsel %vm584_vm2, %v582_v50, %v384_v48  ;;  %v600_v1 = vsel %vm584_vm2, %v583_v4, %v4522_v63  ;;  %v96_v48 = vld [vmem:[%s7029_s1 + $0x40] sm:$0xff]  ;;  %v99_v50 = vld [vmem:[%s7029_s1 + $0x58] sm:$0xff] }
  0x9b   :  { %v691_v41 = vmul.f32 %v599_v44, %v130_v33  ;;  %v694_v27 = vmul.f32 %v600_v1, %v133_v40  ;;  %v4637_v1 = vld [vmem:[#allocation2 + $0x48] sm:$0xff]  ;;  %v4666_v44 = vld [vmem:[#allocation2 + $0x59] sm:$0xff]  ;;  %v657_v52 = vmul.f32 %v4422_v38, %v96_v48  ;;  %v660_v35 = vmul.f32 %v4475_v51, %v99_v50 }
  0x9c   :  { %v91_v38 = vld [vmem:[%s7029_s1 + $0x18] sm:$0xff] }
  0x9d   :  { %v718_v21 = vpack.c.bf16 %v694_v27, %v691_v41 }
  0x9e   :  { %465 = vrot.lane.b32.xlu0 %v4626_v49, %s4169_s28 }
  0x9f   :  { %467 = vrot.lane.b32.xlu1 %v4629_v56, %s4169_s28 }
  0xa0   :  { %367 = vrot.lane.b32.xlu2 %v4509_v58, %s4170_s29  ;;  %v228_v63 = vpop.permute.xlu0 %227  ;;  %932 = vmatmul.bf16.gmra.mxu1 %v718_v21 }
  0xa1   :  { %v230_v62 = vpop.permute.xlu1 %229  ;;  %v551_v4 = vsel %vm136_vm0, %v157_v26, %v228_v63  ;;  %v88_v63 = vld [vmem:[%s7029_s1] sm:$0xff] }
  0xa2   :  { %v506_v5 = vpop.permute.xlu2 %505  ;;  %v552_v34 = vsel %vm136_vm0, %v4376_v30, %v230_v62  ;;  %v601_v30 = vsel %vm136_vm0, %v4346_v22, %v4552_v59  ;;  %v89_v62 = vld [vmem:[%s7029_s1 + $0x8] sm:$0xff]  ;;  %v702_v59 = vpack.c.bf16 %v660_v35, %v657_v52 }
  0xa3   :  { %v569_v51 = vsel %vm567_vm1, %v552_v34, %v4580_v45 }
  0xa6   :  { %369 = vrot.lane.b32.xlu0 %v4626_v49, %s4170_s29 }
  0xa7   :  { %515 = vrot.lane.b32.xlu1 %v4637_v1, %s4170_s29 }
  0xa8   :  { %517 = vrot.lane.b32.xlu2 %v4641_v2, %s4170_s29  ;;  %v407_v0 = vpop.permute.xlu0 %406  ;;  %3750 = vmatmul.msk.bf16.gmra.mxu2 %vm136_vm0, %v702_v59 }
  0xa9   :  { %v292_v41 = vpop.permute.xlu1 %291  ;;  %v602_v21 = vsel %vm136_vm0, %v4384_v31, %v407_v0 }
  0xaa   :  { %v4647_v27 = vpop.permute.xlu2 %408  ;;  %v568_v53 = vsel %vm567_vm1, %v551_v4, %v292_v41 }
  0xab   :  { %v585_v31 = vsel %vm584_vm2, %v568_v53, %v356_v3  ;;  %v92_v3 = vld [vmem:[%s7029_s1 + $0x20] sm:$0xff] }
  0xac   :  { %v649_v48 = vmul.f32 %v585_v31, %v88_v63  ;;  %v4715_v63 = vld [vmem:[#allocation2 + $0x58] sm:$0xff]  ;;  %v4721_v31 = vld [vmem:[#allocation2 + $0x60] sm:$0xff] }
  0xae   :  { %243 = vrot.lane.b32.xlu0 %v4637_v1, %s4168_s27 }
  0xaf   :  { %245 = vrot.lane.b32.xlu1 %v4641_v2, %s4168_s27 }
  0xb0   :  { %420 = vrot.lane.b32.xlu2 %v4649_v37, %s4168_s27  ;;  %v454_v33 = vpop.permute.xlu0 %453 }
  0xb1   :  { %v456_v54 = vpop.permute.xlu1 %455  ;;  %v617_v41 = vsel %vm567_vm1, %v601_v30, %v454_v33 }
  0xb2   :  { %v4657_v40 = vpop.permute.xlu2 %297  ;;  %v618_v25 = vsel %vm567_vm1, %v602_v21, %v456_v54  ;;  %v4704_v21 = vld [vmem:[#allocation2 + $0x57] sm:$0xff] }
  0xb3   :  { %v634_v53 = vsel %vm584_vm2, %v618_v25, %v506_v5  ;;  %v4707_v25 = vld [vmem:[#allocation2 + $0x5f] sm:$0xff] }
  0xb4   :  { %v653_v50 = vmul.f32 %v634_v53, %v92_v3 }
  0xb6   :  { %422 = vrot.lane.b32.xlu0 %v4666_v44, %s4168_s27 }
  0xb7   :  { %307 = vrot.lane.b32.xlu1 %v4591_v60, %s4169_s28 }
  0xb8   :  { %309 = vrot.lane.b32.xlu2 %v4649_v37, %s4169_s28  ;;  %v358_v0 = vpop.permute.xlu0 %357 }
  0xb9   :  { %v504_v26 = vpop.permute.xlu1 %503  ;;  %v586_v54 = vsel %vm584_vm2, %v569_v51, %v358_v0  ;;  %v4727_v51 = vld [vmem:[#allocation2 + $0x61] sm:$0xff]  ;;  %v102_v0 = vld [vmem:[%s7029_s1 + $0x70] sm:$0xff] }
  0xba   :  { %v360_v22 = vpop.permute.xlu2 %359  ;;  %v633_v34 = vsel %vm584_vm2, %v617_v41, %v504_v26  ;;  %v652_v45 = vmul.f32 %v586_v54, %v91_v38  ;;  %v105_v41 = vld [vmem:[%s7029_s1 + $0x88] sm:$0xff] }
  0xbb   :  { %v650_v4 = vmul.f32 %v633_v34, %v89_v62  ;;  %v666_v34 = vmul.f32 %v4559_v39, %v105_v41  ;;  %v98_v39 = vld [vmem:[%s7029_s1 + $0x50] sm:$0xff] }
  0xbc   :  { %v697_v5 = vpack.c.bf16 %v652_v45, %v649_v48  ;;  %v663_v48 = vmul.f32 %v4497_v55, %v102_v0 }
  0xbd   :  { %v698_v24 = vpack.c.bf16 %v653_v50, %v650_v4 }
  0xbe   :  { %469 = vrot.lane.b32.xlu0 %v4704_v21, %s4169_s28  ;;  %897 = vmatmul.bf16.vlgmr.msra.gmra.mxu0 %v697_v5  ;;  %v95_v5 = vld [vmem:[%s7029_s1 + $0x38] sm:$0xff] }
  0xbf   :  { %471 = vrot.lane.b32.xlu1 %v4707_v25, %s4169_s28  ;;  %946 = vmatmul.bf16.vlgmr.msrb.gmra.mxu1 %v698_v24 }
  0xc0   :  { %v232_v35 = vpop.permute.xlu0 %231  ;;  %371 = vrot.lane.b32.xlu2 %v4629_v56, %s4170_s29 }
  0xc1   :  { %v234_v52 = vpop.permute.xlu1 %233  ;;  %v553_v26 = vsel %vm136_vm0, %v4372_v28, %v232_v35  ;;  %v94_v28 = vld [vmem:[%s7029_s1 + $0x30] sm:$0xff] }
  0xc2   :  { %v510_v33 = vpop.permute.xlu2 %509  ;;  %v554_v45 = vsel %vm136_vm0, %v4374_v29, %v234_v52  ;;  %v603_v29 = vsel %vm136_vm0, %v4388_v32, %v4647_v27 }
  0xc3   :  { %v571_v55 = vsel %vm567_vm1, %v554_v45, %v4657_v40 }
  0xc6   :  { %373 = vrot.lane.b32.xlu0 %v4704_v21, %s4170_s29 }
  0xc7   :  { %519 = vrot.lane.b32.xlu1 %v4715_v63, %s4170_s29 }
  0xc8   :  { %v411_v38 = vpop.permute.xlu0 %410  ;;  %521 = vrot.lane.b32.xlu2 %v4721_v31, %s4170_s29 }
  0xc9   :  { %v296_v24 = vpop.permute.xlu1 %295  ;;  %v604_v59 = vsel %vm136_vm0, %v4459_v46, %v411_v38  ;;  %v97_v46 = vld [vmem:[%s7029_s1 + $0x48] sm:$0xff]  ;;  %v705_v38 = vpack.c.bf16 %v666_v34, %v663_v48 }
  0xca   :  { %v4725_v30 = vpop.permute.xlu2 %412  ;;  %v570_v54 = vsel %vm567_vm1, %v553_v26, %v296_v24 }
  0xcb   :  { %v587_v4 = vsel %vm584_vm2, %v570_v54, %v360_v22  ;;  %3751 = vmatmul.msk.bf16.gmra.mxu2 %vm136_vm0, %v705_v38 }
  0xcc   :  { %v655_v24 = vmul.f32 %v587_v4, %v94_v28 }
  0xce   :  { %247 = vrot.lane.b32.xlu0 %v4715_v63, %s4168_s27 }
  0xcf   :  { %249 = vrot.lane.b32.xlu1 %v4721_v31, %s4168_s27 }
  0xd0   :  { %v458_v3 = vpop.permute.xlu0 %457  ;;  %424 = vrot.lane.b32.xlu2 %v4727_v51, %s4168_s27 }
  0xd1   :  { %v460_v53 = vpop.permute.xlu1 %459  ;;  %v619_v52 = vsel %vm567_vm1, %v603_v29, %v458_v3 }
  0xd2   :  { %v4735_v62 = vpop.permute.xlu2 %301  ;;  %v620_v50 = vsel %vm567_vm1, %v604_v59, %v460_v53 }
  0xd3   :  { %v636_v22 = vsel %vm584_vm2, %v620_v50, %v510_v33 }
  0xd4   :  { %v659_v33 = vmul.f32 %v636_v22, %v98_v39 }
  0xd6   :  { %426 = vrot.lane.b32.xlu0 %v4274_v7, %s4168_s27 }
  0xd7   :  { %311 = vrot.lane.b32.xlu1 %v4666_v44, %s4169_s28 }
  0xd8   :  { %v362_v35 = vpop.permute.xlu0 %361  ;;  %313 = vrot.lane.b32.xlu2 %v4727_v51, %s4169_s28 }
  0xd9   :  { %v508_v32 = vpop.permute.xlu1 %507  ;;  %v588_v27 = vsel %vm584_vm2, %v571_v55, %v362_v35 }
  0xda   :  { %v364_v40 = vpop.permute.xlu2 %363  ;;  %v635_v53 = vsel %vm584_vm2, %v619_v52, %v508_v32  ;;  %v658_v0 = vmul.f32 %v588_v27, %v97_v46 }
  0xdb   :  { %v656_v41 = vmul.f32 %v635_v53, %v95_v5 }
  0xdc   :  { %v700_v26 = vpack.c.bf16 %v658_v0, %v655_v24  ;;  %v4849_v0 = vld [vmem:[#allocation2 + $0x89] sm:$0xff] }
  0xdd   :  { %v701_v54 = vpack.c.bf16 %v659_v33, %v656_v41 }
  0xde   :  { %473 = vrot.lane.b32.xlu0 %v4520_v61, %s4169_s28  ;;  %902 = vmatmul.bf16.gmra.mxu0 %v700_v26 }
  0xdf   :  { %475 = vrot.lane.b32.xlu1 %v4278_v8, %s4169_s28  ;;  %951 = vmatmul.bf16.gmra.mxu1 %v701_v54 }
  0xe0   :  { %v236_v3 = vpop.permute.xlu0 %235  ;;  %375 = vrot.lane.b32.xlu2 %v4707_v25, %s4170_s29 }
  0xe1   :  { %v238_v59 = vpop.permute.xlu1 %237  ;;  %v555_v4 = vsel %vm136_vm0, %v4443_v42, %v236_v3  ;;  %v100_v42 = vld [vmem:[%s7029_s1 + $0x60] sm:$0xff]  ;;  %v208_v3 = vld [vmem:[#allocation2 + $0x8f] sm:$0xff] }
  0xe2   :  { %v514_v48 = vpop.permute.xlu2 %513  ;;  %v556_v39 = vsel %vm136_vm0, %v4445_v43, %v238_v59  ;;  %v605_v43 = vsel %vm136_vm0, %v4463_v47, %v4725_v30  ;;  %v4857_v59 = vld [vmem:[#allocation2 + $0x88] sm:$0xff] }
  0xe6   :  { %377 = vrot.lane.b32.xlu0 %v4520_v61, %s4170_s29 }
  0xe7   :  { %523 = vrot.lane.b32.xlu1 %v4271_v6, %s4170_s29  ;;  %v108_v6 = vld [vmem:[%s7029_s1 + $0xa0] sm:$0xff] }
  0xe8   :  { %v415_v34 = vpop.permute.xlu0 %414  ;;  %525 = vrot.lane.b32.xlu2 %v4298_v11, %s4170_s29  ;;  %v111_v11 = vld [vmem:[%s7029_s1 + $0xb8] sm:$0xff] }
  0xe9   :  { %v300_v45 = vpop.permute.xlu1 %299  ;;  %v606_v29 = vsel %vm136_vm0, %v4529_v23, %v415_v34  ;;  %v672_v55 = vmul.f32 %v4649_v37, %v111_v11  ;;  %v103_v23 = vld [vmem:[%s7029_s1 + $0x78] sm:$0xff]  ;;  %v117_v11 = vld [vmem:[%s7029_s1 + $0xe8] sm:$0xff] }
  0xea   :  { %v4794_v50 = vpop.permute.xlu2 %416  ;;  %v572_v46 = vsel %vm567_vm1, %v555_v4, %v300_v45 }
  0xeb   :  { %v589_v5 = vsel %vm584_vm2, %v572_v46, %v364_v40 }
  0xec   :  { %v661_v27 = vmul.f32 %v589_v5, %v100_v42 }
  0xee   :  { %428 = vrot.lane.b32.xlu0 %v4306_v13, %s4168_s27 }
  0xef   :  { %430 = vrot.lane.b32.xlu1 %v4326_v17, %s4168_s27 }
  0xf0   :  { %v462_v8 = vpop.permute.xlu0 %461  ;;  %477 = vrot.lane.b32.xlu2 %v4310_v14, %s4169_s28  ;;  %v669_v14 = vmul.f32 %v4591_v60, %v108_v6  ;;  %v104_v60 = vld [vmem:[%s7029_s1 + $0x80] sm:$0xff] }
  0xf1   :  { %v464_v61 = vpop.permute.xlu1 %463  ;;  %v621_v52 = vsel %vm567_vm1, %v605_v43, %v462_v8 }
  0xf2   :  { %v4802_v28 = vpop.permute.xlu2 %305  ;;  %v622_v22 = vsel %vm567_vm1, %v606_v29, %v464_v61  ;;  %v708_v32 = vpack.c.bf16 %v672_v55, %v669_v14  ;;  %v678_v55 = vmul.f32 %v4727_v51, %v117_v11  ;;  %v110_v51 = vld [vmem:[%s7029_s1 + $0xb0] sm:$0xff] }
  0xf3   :  { %v638_v37 = vsel %vm584_vm2, %v622_v22, %v514_v48  ;;  %v209_v48 = vld [vmem:[#allocation2 + $0x90] sm:$0xff] }
  0xf4   :  { %v665_v24 = vmul.f32 %v638_v37, %v104_v60  ;;  %3752 = vmatmul.msk.bf16.gmra.mxu2 %vm136_vm0, %v708_v32 }
  0xf6   :  { %479 = vrot.lane.b32.xlu0 %v4336_v19, %s4169_s28  ;;  %v573_v19 = vsel %vm567_vm1, %v556_v39, %v4735_v62 }
  0xf7   :  { %527 = vrot.lane.b32.xlu1 %v4322_v15, %s4170_s29  ;;  %v101_v15 = vld [vmem:[%s7029_s1 + $0x68] sm:$0xff] }
  0xf8   :  { %v366_v35 = vpop.permute.xlu0 %365  ;;  %529 = vrot.lane.b32.xlu2 %v4324_v16, %s4170_s29 }
  0xf9   :  { %v512_v47 = vpop.permute.xlu1 %511  ;;  %v590_v30 = vsel %vm584_vm2, %v573_v19, %v366_v35  ;;  %v107_v19 = vld [vmem:[%s7029_s1 + $0x98] sm:$0xff] }
  0xfa   :  { %v368_v62 = vpop.permute.xlu2 %367  ;;  %v637_v40 = vsel %vm584_vm2, %v621_v52, %v512_v47  ;;  %v664_v38 = vmul.f32 %v590_v30, %v103_v23 }
  0xfb   :  { %v662_v53 = vmul.f32 %v637_v40, %v101_v15 }
  0xfc   :  { %v703_v33 = vpack.c.bf16 %v664_v38, %v661_v27 }
  0xfd   :  { %v704_v41 = vpack.c.bf16 %v665_v24, %v662_v53 }
  0xfe   :  { %432 = vrot.lane.b32.xlu0 %v4334_v18, %s4168_s27  ;;  %907 = vmatmul.bf16.gmra.mxu0 %v703_v33 }
  0xff   :  { %434 = vrot.lane.b32.xlu1 %v4849_v0, %s4168_s27  ;;  %956 = vmatmul.bf16.gmra.mxu1 %v704_v41 }
 0x100   :  { %v240_v16 = vpop.permute.xlu0 %239  ;;  %481 = vrot.lane.b32.xlu2 %v4338_v20, %s4169_s28  ;;  %v114_v20 = vld [vmem:[%s7029_s1 + $0xd0] sm:$0xff] }
 0x101   :  { %v242_v26 = vpop.permute.xlu1 %241  ;;  %v557_v4 = vsel %vm136_vm0, %v4507_v57, %v240_v16  ;;  %v675_v14 = vmul.f32 %v4666_v44, %v114_v20  ;;  %v106_v57 = vld [vmem:[%s7029_s1 + $0x90] sm:$0xff]  ;;  %v607_v44 = vsel %vm136_vm0, %v4534_v36, %v4794_v50 }
 0x102   :  { %v518_v54 = vpop.permute.xlu2 %517  ;;  %v558_v39 = vsel %vm136_vm0, %v4509_v58, %v242_v26  ;;  %v120_v26 = vld [vmem:[%s7029_s1 + $0x100] sm:$0xff] }
 0x103   :  { %v575_v58 = vsel %vm567_vm1, %v558_v39, %v4802_v28  ;;  %v711_v36 = vpack.c.bf16 %v678_v55, %v675_v14  ;;  %v115_v14 = vld [vmem:[%s7029_s1 + $0xd8] sm:$0xff] }
 0x105   :  { %3753 = vmatmul.msk.bf16.gmra.mxu2 %vm136_vm0, %v711_v36 }
 0x106   :  { %483 = vrot.lane.b32.xlu0 %v208_v3, %s4169_s28  ;;  %v681_v3 = vmul.f32 %v4274_v7, %v120_v26 }
 0x107   :  { %531 = vrot.lane.b32.xlu1 %v4857_v59, %s4170_s29 }
 0x108   :  { %v419_v34 = vpop.permute.xlu0 %418  ;;  %533 = vrot.lane.b32.xlu2 %v209_v48, %s4170_s29 }
 0x109   :  { %v304_v45 = vpop.permute.xlu1 %303  ;;  %v608_v29 = vsel %vm136_vm0, %v4637_v1, %v419_v34  ;;  %v109_v1 = vld [vmem:[%s7029_s1 + $0xa8] sm:$0xff] }
 0x10a   :  { %v4863_v8 = vpop.permute.xlu2 %420  ;;  %v574_v46 = vsel %vm567_vm1, %v557_v4, %v304_v45 }
 0x10b   :  { %v591_v23 = vsel %vm584_vm2, %v574_v46, %v368_v62 }
 0x10c   :  { %v667_v50 = vmul.f32 %v591_v23, %v106_v57 }
 0x10d   :  { %v4881_v5 = vpop.f32.mrf.mxu1 }
 0x110   :  { %v466_v61 = vpop.permute.xlu0 %465 }
 0x111   :  { %v468_v6 = vpop.permute.xlu1 %467  ;;  %v623_v37 = vsel %vm567_vm1, %v607_v44, %v466_v61 }
 0x112   :  { %v624_v22 = vsel %vm567_vm1, %v608_v29, %v468_v6  ;;  %v310_v42 = vpop.permute.xlu2 %309 }
 0x113   :  { %v640_v43 = vsel %vm584_vm2, %v624_v22, %v518_v54  ;;  %v123_v54 = vld [vmem:[%s7029_s1 + $0x118] sm:$0xff]  ;;  %v113_v22 = vld [vmem:[%s7029_s1 + $0xc8] sm:$0xff] }
 0x114   :  { %v671_v47 = vmul.f32 %v640_v43, %v110_v51  ;;  %v684_v48 = vmul.f32 %v4306_v13, %v123_v54  ;;  %v129_v51 = vld [vmem:[%s7029_s1 + $0x148] sm:$0xff]  ;;  %v126_v43 = vld [vmem:[%s7029_s1 + $0x130] sm:$0xff] }
 0x115   :  { %v4906_v40 = vpop.f32.mrf.mxu1 }
 0x116   :  { %v714_v61 = vpack.c.bf16 %v684_v48, %v681_v3 }
 0x118   :  { %v370_v60 = vpop.permute.xlu0 %369  ;;  %3754 = vmatmul.msk.bf16.gmra.mxu2 %vm136_vm0, %v714_v61 }
 0x119   :  { %v516_v15 = vpop.permute.xlu1 %515  ;;  %v592_v35 = vsel %vm584_vm2, %v575_v58, %v370_v60 }
 0x11a   :  { %v639_v28 = vsel %vm584_vm2, %v623_v37, %v516_v15  ;;  %v670_v52 = vmul.f32 %v592_v35, %v109_v1  ;;  %v372_v27 = vpop.permute.xlu2 %371 }
 0x11b   :  { %v668_v30 = vmul.f32 %v639_v28, %v107_v19 }
 0x11c   :  { %v706_v62 = vpack.c.bf16 %v670_v52, %v667_v50  ;;  %v4961_v50 = vld [vmem:[%s7038_s10] ss:$0 sm:$0xff] }
 0x11d   :  { %v707_v32 = vpack.c.bf16 %v671_v47, %v668_v30  ;;  %v4908_v16 = vpop.f32.mrf.mxu1  ;;  %v690_v47 = vmul.f32 %v4334_v18, %v129_v51  ;;  %v687_v30 = vmul.f32 %v4326_v17, %v126_v43  ;;  %v118_v51 = vld [vmem:[%s7029_s1 + $0xf0] sm:$0xff]  ;;  %v121_v43 = vld [vmem:[%s7029_s1 + $0x108] sm:$0xff] }
 0x11e   :  { %912 = vmatmul.bf16.gmra.mxu0 %v706_v62 }
 0x11f   :  { %961 = vmatmul.bf16.gmra.mxu1 %v707_v32 }
 0x120   :  { %v244_v38 = vpop.permute.xlu0 %243 }
 0x121   :  { %v246_v24 = vpop.permute.xlu1 %245  ;;  %v559_v6 = vsel %vm136_vm0, %v4626_v49, %v244_v38  ;;  %v112_v49 = vld [vmem:[%s7029_s1 + $0xc0] sm:$0xff] }
 0x122   :  { %v522_v41 = vpop.permute.xlu2 %521  ;;  %v560_v7 = vsel %vm136_vm0, %v4629_v56, %v246_v24  ;;  %v116_v56 = vld [vmem:[%s7029_s1 + $0xe0] sm:$0xff] }
 0x123   :  { %v577_v55 = vsel %vm567_vm1, %v560_v7, %v310_v42  ;;  %v996_v42 = vpop.f32.mrf.mxu2  ;;  %v4969_v38 = vld [vmem:[%s7038_s10 + $0x1] ss:$0 sm:$0xff] }
 0x125   :  { %v4922_v11 = vpop.f32.mrf.mxu1 }
 0x128   :  { %v423_v53 = vpop.permute.xlu0 %422 }
 0x129   :  { %v308_v33 = vpop.permute.xlu1 %307  ;;  %v610_v46 = vsel %vm136_vm0, %v4715_v63, %v423_v53  ;;  %v609_v63 = vsel %vm136_vm0, %v4641_v2, %v4863_v8  ;;  %v717_v53 = vpack.c.bf16 %v690_v47, %v687_v30 }
 0x12a   :  { %v4920_v20 = vpop.permute.xlu2 %424  ;;  %v576_v4 = vsel %vm567_vm1, %v559_v6, %v308_v33  ;;  %v132_v6 = vld [vmem:[%s7029_s1 + $0x160] sm:$0xff] }
 0x12b   :  { %v593_v29 = vsel %vm584_vm2, %v576_v4, %v372_v27  ;;  %v998_v26 = vpop.f32.mrf.mxu2  ;;  %3755 = vmatmul.msk.bf16.gmra.mxu2 %vm136_vm0, %v717_v53 }
 0x12c   :  { %v673_v58 = vmul.f32 %v593_v29, %v112_v49  ;;  %v135_v29 = vld [vmem:[%s7029_s1 + $0x178] sm:$0xff] }
 0x130   :  { %v470_v34 = vpop.permute.xlu0 %469 }
 0x131   :  { %v472_v45 = vpop.permute.xlu1 %471  ;;  %v625_v23 = vsel %vm567_vm1, %v609_v63, %v470_v34 }
 0x132   :  { %v626_v13 = vsel %vm567_vm1, %v610_v46, %v472_v45  ;;  %v314_v52 = vpop.permute.xlu2 %313 }
 0x133   :  { %v642_v39 = vsel %vm584_vm2, %v626_v13, %v522_v41  ;;  %v693_v13 = vmul.f32 %v4849_v0, %v132_v6 }
 0x134   :  { %v677_v19 = vmul.f32 %v642_v39, %v116_v56 }
 0x138   :  { %v374_v57 = vpop.permute.xlu0 %373 }
 0x139   :  { %v520_v1 = vpop.permute.xlu1 %519  ;;  %v594_v44 = vsel %vm584_vm2, %v577_v55, %v374_v57 }
 0x13a   :  { %v641_v2 = vsel %vm584_vm2, %v625_v23, %v520_v1  ;;  %v676_v8 = vmul.f32 %v594_v44, %v115_v14  ;;  %v376_v3 = vpop.permute.xlu2 %375  ;;  %v210_v14 = vld [vmem:[#allocation2 + $0x91] sm:$0xff] }
 0x13b   :  { %v674_v60 = vmul.f32 %v641_v2, %v113_v22  ;;  %v898_v37 = vpop.f32.mrf.mxu0  ;;  %v696_v55 = vmul.f32 %v210_v14, %v135_v29  ;;  %v4054_v14 = vld [vmem:[#allocation2 + $0x78] sm:$0xff] }
 0x13c   :  { %v947_v15 = vpop.f32.mrf.mxu1  ;;  %v709_v35 = vpack.c.bf16 %v676_v8, %v673_v58  ;;  %v4052_v58 = vld [vmem:[#allocation2 + $0x68] sm:$0xff] }
 0x13d   :  { %v948_v36 = vadd.f32 %v947_v15, %v898_v37  ;;  %v710_v28 = vpack.c.bf16 %v677_v19, %v674_v60  ;;  %v720_v23 = vpack.c.bf16 %v696_v55, %v693_v13  ;;  %v611_v19 = vsel %vm136_vm0, %v4721_v31, %v4920_v20  ;;  %v122_v60 = vld [vmem:[%s7029_s1 + $0x110] sm:$0xff]  ;;  %v119_v15 = vld [vmem:[%s7029_s1 + $0xf8] sm:$0xff]  ;;  %v125_v55 = vld [vmem:[%s7029_s1 + $0x128] sm:$0xff] }
 0x13e   :  { %917 = vmatmul.bf16.gmra.mxu0 %v709_v35  ;;  %v4053_v13 = vld [vmem:[#allocation2 + $0x70] sm:$0xff] }
 0x13f   :  { %v997_v62 = vadd.f32 %v996_v42, %v948_v36  ;;  %966 = vmatmul.bf16.gmra.mxu1 %v710_v28  ;;  %3756 = vmatmul.msk.bf16.gmra.mxu2 %vm136_vm0, %v720_v23 }
 0x140   :  { %v248_v32 = vpop.permute.xlu0 %247 }
 0x141   :  { %v1037_v27 = vmul.f32 %v4961_v50, %v997_v62  ;;  %v250_v24 = vpop.permute.xlu1 %249  ;;  %v561_v1 = vsel %vm136_vm0, %v4704_v21, %v248_v32  ;;  %v1001_v62 = vpop.f32.mrf.mxu2 }
 0x142   :  { %v526_v39 = vpop.permute.xlu2 %525  ;;  %v562_v8 = vsel %vm136_vm0, %v4707_v25, %v250_v24 }
 0x143   :  { %v900_v33 = vpop.f32.mrf.mxu0  ;;  %v1054_v17 = vadd.f32 %v4969_v38, %v1037_v27  ;;  %v579_v25 = vsel %vm567_vm1, %v562_v8, %v314_v52 }
 0x144   :  { %v949_v41 = vpop.f32.mrf.mxu1 }
 0x145   :  { %v950_v18 = vadd.f32 %v949_v41, %v900_v33  ;;  %v4973_v34 = vmax.f32 %v1054_v17, 0.0 }
 0x147   :  { %v999_v54 = vadd.f32 %v998_v26, %v950_v18  ;;  %7098 = vst [vmem:[#allocation20_spill] sm:$0xff] %v4973_v34  ;;  %v1086_v7 = vpack.c.bf16 %v4973_v34, %v4973_v34 }
 0x148   :  { %v427_v48 = vpop.permute.xlu0 %426 }
 0x149   :  { %v1038_v45 = vmul.f32 %v4961_v50, %v999_v54  ;;  %v312_v61 = vpop.permute.xlu1 %311  ;;  %v1158_v22 = vunpack.c.l.b16 %v1086_v7  ;;  %v612_v2 = vsel %vm136_vm0, %v4052_v58, %v427_v48  ;;  %v1003_v6 = vpop.f32.mrf.mxu2 }
 0x14a   :  { %v578_v0 = vsel %vm567_vm1, %v561_v1, %v312_v61  ;;  %v478_v30 = vpop.permute.xlu2 %477 }
 0x14b   :  { %v1055_v4 = vadd.f32 %v4969_v38, %v1038_v45  ;;  %v595_v21 = vsel %vm584_vm2, %v578_v0, %v376_v3 }
 0x14c   :  { %v679_v31 = vmul.f32 %v595_v21, %v118_v51 }
 0x14d   :  { %v4980_v46 = vmax.f32 %v1055_v4, 0.0 }
 0x14f   :  { %7099 = vst [vmem:[#allocation21_spill] sm:$0xff] %v4980_v46  ;;  %v1087_v49 = vpack.c.bf16 %v4980_v46, %v4980_v46 }
 0x150   :  { %v474_v63 = vpop.permute.xlu0 %473 }
 0x151   :  { %v476_v56 = vpop.permute.xlu1 %475  ;;  %v1159_v57 = vunpack.c.l.b16 %v1087_v49  ;;  %v627_v36 = vsel %vm567_vm1, %v611_v19, %v474_v63 }
 0x152   :  { %v628_v42 = vsel %vm567_vm1, %v612_v2, %v476_v56  ;;  %v530_v45 = vpop.permute.xlu2 %529 }
 0x153   :  { %v1174_v44 = vpack.c.b16 %v1159_v57, %v1158_v22  ;;  %v644_v37 = vsel %vm584_vm2, %v628_v42, %v526_v39  ;;  %v128_v39 = vld [vmem:[%s7029_s1 + $0x140] sm:$0xff] }
 0x154   :  { %v683_v32 = vmul.f32 %v644_v37, %v122_v60 }
 0x155   :  { %1182 = vrot.lane.b32.xlu0 %v1174_v44, %s4168_s27 }
 0x158   :  { %v378_v35 = vpop.permute.xlu0 %377 }
 0x159   :  { %v524_v28 = vpop.permute.xlu1 %523  ;;  %v596_v47 = vsel %vm584_vm2, %v579_v25, %v378_v35 }
 0x15a   :  { %v643_v20 = vsel %vm584_vm2, %v627_v36, %v524_v28  ;;  %v682_v52 = vmul.f32 %v596_v47, %v121_v43  ;;  %v482_v43 = vpop.permute.xlu2 %481  ;;  %v4055_v28 = vld [vmem:[#allocation2 + $0x80] sm:$0xff] }
 0x15b   :  { %v680_v27 = vmul.f32 %v643_v20, %v119_v15  ;;  %v903_v24 = vpop.f32.mrf.mxu0  ;;  %v131_v20 = vld [vmem:[%s7029_s1 + $0x158] sm:$0xff] }
 0x15c   :  { %v952_v53 = vpop.f32.mrf.mxu1  ;;  %v712_v33 = vpack.c.bf16 %v682_v52, %v679_v31 }
 0x15d   :  { %v953_v41 = vadd.f32 %v952_v53, %v903_v24  ;;  %v713_v26 = vpack.c.bf16 %v683_v32, %v680_v27 }
 0x15e   :  { %922 = vmatmul.bf16.gmra.mxu0 %v712_v33 }
 0x15f   :  { %v1002_v17 = vadd.f32 %v1001_v62, %v953_v41  ;;  %971 = vmatmul.bf16.gmra.mxu1 %v713_v26  ;;  %v134_v62 = vld [vmem:[%s7029_s1 + $0x170] sm:$0xff]  ;;  %v1006_v41 = vpop.f32.mrf.mxu2 }
 0x160   :  { %v429_v18 = vpop.permute.xlu0 %428 }
 0x161   :  { %v1039_v54 = vmul.f32 %v4961_v50, %v1002_v17  ;;  %v431_v3 = vpop.permute.xlu1 %430  ;;  %v613_v49 = vsel %vm136_vm0, %v4053_v13, %v429_v18 }
 0x162   :  { %v614_v63 = vsel %vm136_vm0, %v4054_v14, %v431_v3  ;;  %v629_v57 = vsel %vm567_vm1, %v613_v49, %v478_v30  ;;  %v534_v30 = vpop.permute.xlu2 %533  ;;  %v3929_v49 = vld [vmem:[%s7031_s3 + $0x18] sm:$0xff] }
 0x163   :  { %v905_v48 = vpop.f32.mrf.mxu0  ;;  %v1056_v4 = vadd.f32 %v4969_v38, %v1039_v54  ;;  %1274 = vmatpush.bf16.msra.mxu1 %v3929_v49  ;;  %3951 = vmatpush.bf16.msra.mxu3 %v3929_v49 }
 0x164   :  { %v954_v61 = vpop.f32.mrf.mxu1 }
 0x165   :  { %v955_v7 = vadd.f32 %v954_v61, %v905_v48  ;;  %v5030_v22 = vmax.f32 %v1056_v4, 0.0 }
 0x167   :  { %v1004_v29 = vadd.f32 %v1003_v6, %v955_v7  ;;  %7100 = vst [vmem:[#allocation22_spill] sm:$0xff] %v5030_v22  ;;  %v1088_v19 = vpack.c.bf16 %v5030_v22, %v5030_v22  ;;  %v1008_v4 = vpop.f32.mrf.mxu2 }
 0x168   :  { %v480_v56 = vpop.permute.xlu0 %479 }
 0x169   :  { %v1040_v23 = vmul.f32 %v4961_v50, %v1004_v29  ;;  %v528_v1 = vpop.permute.xlu1 %527  ;;  %v630_v44 = vsel %vm567_vm1, %v614_v63, %v480_v56  ;;  %v1160_v15 = vunpack.c.l.b16 %v1088_v19 }
 0x16a   :  { %v645_v0 = vsel %vm584_vm2, %v629_v57, %v528_v1  ;;  %v646_v58 = vsel %vm584_vm2, %v630_v44, %v530_v45 }
 0x16b   :  { %v1057_v2 = vadd.f32 %v4969_v38, %v1040_v23  ;;  %v686_v8 = vmul.f32 %v645_v0, %v125_v55  ;;  %v689_v42 = vmul.f32 %v646_v58, %v128_v39 }
 0x16d   :  { %v5038_v51 = vmax.f32 %v1057_v2, 0.0  ;;  %v716_v21 = vpack.c.bf16 %v689_v42, %v686_v8  ;;  %v3928_v8 = vld [vmem:[%s7031_s3 + $0x10] sm:$0xff] }
 0x16e   :  { %1275 = vmatpush.bf16.msra.mxu1 %v3928_v8  ;;  %3952 = vmatpush.bf16.msra.mxu3 %v3928_v8 }
 0x16f   :  { %7101 = vst [vmem:[#allocation23_spill] sm:$0xff] %v5038_v51  ;;  %976 = vmatmul.bf16.gmra.mxu1 %v716_v21  ;;  %v1089_v25 = vpack.c.bf16 %v5038_v51, %v5038_v51 }
 0x170   :  { %v433_v60 = vpop.permute.xlu0 %432 }
 0x171   :  { %v435_v37 = vpop.permute.xlu1 %434  ;;  %v1161_v35 = vunpack.c.l.b16 %v1089_v25  ;;  %v615_v47 = vsel %vm136_vm0, %v4055_v28, %v433_v60 }
 0x172   :  { %v616_v31 = vsel %vm136_vm0, %v4857_v59, %v435_v37  ;;  %v631_v32 = vsel %vm567_vm1, %v615_v47, %v482_v43  ;;  %v3927_v43 = vld [vmem:[%s7031_s3 + $0x8] sm:$0xff] }
 0x173   :  { %v1175_v36 = vpack.c.b16 %v1161_v35, %v1160_v15  ;;  %1276 = vmatpush.bf16.msra.mxu1 %v3927_v43  ;;  %3953 = vmatpush.bf16.msra.mxu3 %v3927_v43  ;;  %v3926_v15 = vld [vmem:[%s7031_s3] sm:$0xff] }
 0x175   :  { %1184 = vrot.lane.b32.xlu1 %v1175_v36, %s4168_s27 }
 0x177   :  { %v1011_v0 = vpop.f32.mrf.mxu2  ;;  %1277 = vmatpush.bf16.msra.mxu1 %v3926_v15  ;;  %3954 = vmatpush.bf16.msra.mxu3 %v3926_v15 }
 0x178   :  { %v484_v52 = vpop.permute.xlu0 %483 }
 0x179   :  { %v532_v27 = vpop.permute.xlu1 %531  ;;  %v632_v24 = vsel %vm567_vm1, %v616_v31, %v484_v52 }
 0x17a   :  { %v647_v53 = vsel %vm584_vm2, %v631_v32, %v532_v27  ;;  %v648_v33 = vsel %vm584_vm2, %v632_v24, %v534_v30 }
 0x17b   :  { %v692_v59 = vmul.f32 %v647_v53, %v131_v20  ;;  %v695_v26 = vmul.f32 %v648_v33, %v134_v62  ;;  %v908_v17 = vpop.f32.mrf.mxu0 }
 0x17c   :  { %v957_v18 = vpop.f32.mrf.mxu1 }
 0x17d   :  { %v958_v54 = vadd.f32 %v957_v18, %v908_v17  ;;  %v719_v3 = vpack.c.bf16 %v695_v26, %v692_v59  ;;  %v72_v59 = vpack.c.bf16 %v4290_v9, %v4290_v9  ;;  %v73_v26 = vpack.c.bf16 %v4296_v10, %v4296_v10 }
 0x17f   :  { %v1007_v48 = vadd.f32 %v1006_v41, %v958_v54  ;;  %981 = vmatmul.bf16.gmra.mxu1 %v719_v3  ;;  %v1013_v37 = vpop.f32.mrf.mxu2  ;;  %v1118_v54 = vunpack.c.l.b16 %v72_v59  ;;  %v1119_v3 = vunpack.c.l.b16 %v73_v26  ;;  %v7110_v59 = vld [vmem:[#allocation13_spill] sm:$0xff] }
 0x180   :  { %v76_v26 = vpack.c.bf16 %v7110_v59, %v7110_v59 }
 0x181   :  { %v1041_v45 = vmul.f32 %v4961_v50, %v1007_v48 }
 0x183   :  { %v910_v61 = vpop.f32.mrf.mxu0  ;;  %v1058_v7 = vadd.f32 %v4969_v38, %v1041_v45 }
 0x184   :  { %v959_v6 = vpop.f32.mrf.mxu1 }
 0x185   :  { %v960_v13 = vadd.f32 %v959_v6, %v910_v61  ;;  %v5063_v14 = vmax.f32 %v1058_v7, 0.0 }
 0x187   :  { %v1009_v29 = vadd.f32 %v1008_v4, %v960_v13  ;;  %7102 = vst [vmem:[#allocation24_spill] sm:$0xff] %v5063_v14  ;;  %v1090_v39 = vpack.c.bf16 %v5063_v14, %v5063_v14  ;;  %v1134_v4 = vpack.c.b16 %v1119_v3, %v1118_v54 }
 0x188   :  { %v1016_v53 = vpop.f32.mrf.mxu2 }
 0x189   :  { %v1042_v63 = vmul.f32 %v4961_v50, %v1009_v29  ;;  %v1162_v23 = vunpack.c.l.b16 %v1090_v39  ;;  %v3932_v39 = vld [vmem:[%s7033_s5 + $0x8] sm:$0xff] }
 0x18a   :  { %1923 = vmatpush.bf16.msrb.mxu0 %v3932_v39 }
 0x18b   :  { %v1059_v55 = vadd.f32 %v4969_v38, %v1042_v63 }
 0x18d   :  { %v5067_v56 = vmax.f32 %v1059_v55, 0.0 }
 0x18f   :  { %7103 = vst [vmem:[#allocation25_spill] sm:$0xff] %v5067_v56  ;;  %v1091_v57 = vpack.c.bf16 %v5067_v56, %v5067_v56 }
 0x190   :  { %v1018_v6 = vpop.f32.mrf.mxu2 }
 0x191   :  { %v1163_v1 = vunpack.c.l.b16 %v1091_v57 }
 0x193   :  { %v1176_v44 = vpack.c.b16 %v1163_v1, %v1162_v23 }
 0x195   :  { %1186 = vrot.lane.b32.xlu2 %v1176_v44, %s4168_s27  ;;  %v3931_v44 = vld [vmem:[%s7033_s5] sm:$0xff] }
 0x196   :  { %1924 = vmatpush.bf16.msrb.mxu0 %v3931_v44 }
 0x199   :  { %3834 = vmatmul.msk.bf16.vlgmr.msrb.gmra.mxu0 %vm136_vm0, %v1134_v4 }
 0x19b   :  { %v913_v58 = vpop.f32.mrf.mxu0  ;;  %v1021_v8 = vpop.f32.mrf.mxu2 }
 0x19c   :  { %v962_v2 = vpop.f32.mrf.mxu1 }
 0x19d   :  { %v963_v42 = vadd.f32 %v962_v2, %v913_v58 }
 0x19f   :  { %v1012_v21 = vadd.f32 %v1011_v0, %v963_v42  ;;  %v74_v42 = vpack.c.bf16 %v4304_v12, %v4304_v12 }
 0x1a1   :  { %v1043_v19 = vmul.f32 %v4961_v50, %v1012_v21  ;;  %v7108_v21 = vld [vmem:[#allocation12_spill] sm:$0xff]  ;;  %v1120_v15 = vunpack.c.l.b16 %v74_v42  ;;  %v7114_v42 = vld [vmem:[#allocation17_spill] sm:$0xff] }
 0x1a2   :  { %v75_v43 = vpack.c.bf16 %v7108_v21, %v7108_v21  ;;  %v79_v21 = vpack.c.bf16 %v7114_v42, %v7114_v42 }
 0x1a3   :  { %v915_v25 = vpop.f32.mrf.mxu0  ;;  %v1060_v35 = vadd.f32 %v4969_v38, %v1043_v19 }
 0x1a4   :  { %v964_v60 = vpop.f32.mrf.mxu1 }
 0x1a5   :  { %v965_v36 = vadd.f32 %v964_v60, %v915_v25  ;;  %v5085_v47 = vmax.f32 %v1060_v35, 0.0  ;;  %v1121_v35 = vunpack.c.l.b16 %v75_v43 }
 0x1a7   :  { %v1014_v28 = vadd.f32 %v1013_v37, %v965_v36  ;;  %7104 = vst [vmem:[#allocation26_spill] sm:$0xff] %v5085_v47  ;;  %v1092_v52 = vpack.c.bf16 %v5085_v47, %v5085_v47  ;;  %v1023_v37 = vpop.f32.mrf.mxu2 }
 0x1a9   :  { %v1044_v30 = vmul.f32 %v4961_v50, %v1014_v28  ;;  %v1164_v32 = vunpack.c.l.b16 %v1092_v52 }
 0x1ab   :  { %v1061_v31 = vadd.f32 %v4969_v38, %v1044_v30  ;;  %v1135_v30 = vpack.c.b16 %v1121_v35, %v1120_v15  ;;  %v1125_v15 = vunpack.c.l.b16 %v79_v21 }
 0x1ad   :  { %v5089_v20 = vmax.f32 %v1061_v31, 0.0  ;;  %3835 = vmatmul.msk.bf16.gmra.mxu0 %vm136_vm0, %v1135_v30 }
 0x1af   :  { %7105 = vst [vmem:[#allocation27_spill] sm:$0xff] %v5089_v20  ;;  %v1093_v62 = vpack.c.bf16 %v5089_v20, %v5089_v20 }
 0x1b1   :  { %v1165_v27 = vunpack.c.l.b16 %v1093_v62 }
 0x1b3   :  { %v1177_v24 = vpack.c.b16 %v1165_v27, %v1164_v32 }
 0x1b5   :  { %1188 = vrot.lane.b32.xlu0 %v1177_v24, %s4168_s27  ;;  %v1026_v24 = vpop.f32.mrf.mxu2 }
 0x1bb   :  { %v918_v33 = vpop.f32.mrf.mxu0 }
 0x1bc   :  { %v967_v41 = vpop.f32.mrf.mxu1 }
 0x1bd   :  { %v968_v17 = vadd.f32 %v967_v41, %v918_v33 }
 0x1bf   :  { %v1017_v18 = vadd.f32 %v1016_v53, %v968_v17  ;;  %v7111_v17 = vld [vmem:[#allocation14_spill] sm:$0xff] }
 0x1c1   :  { %v1045_v48 = vmul.f32 %v4961_v50, %v1017_v18  ;;  %v77_v18 = vpack.c.bf16 %v7111_v17, %v7111_v17 }
 0x1c3   :  { %v920_v45 = vpop.f32.mrf.mxu0  ;;  %v1062_v7 = vadd.f32 %v4969_v38, %v1045_v48 }
 0x1c4   :  { %v969_v61 = vpop.f32.mrf.mxu1 }
 0x1c5   :  { %v970_v13 = vadd.f32 %v969_v61, %v920_v45  ;;  %v5103_v63 = vmax.f32 %v1062_v7, 0.0 }
 0x1c7   :  { %v1019_v49 = vadd.f32 %v1018_v6, %v970_v13  ;;  %v1183_v29 = vpop.permute.xlu0 %1182  ;;  %7106 = vst [vmem:[#allocation28_spill] sm:$0xff] %v5103_v63  ;;  %v1094_v23 = vpack.c.bf16 %v5103_v63, %v5103_v63  ;;  %v1122_v6 = vunpack.c.l.b16 %v76_v26 }
 0x1c8   :  { %v1200_v9 = vsel %vm136_vm0, %v1134_v4, %v1183_v29  ;;  %v1123_v4 = vunpack.c.l.b16 %v77_v18  ;;  %v3930_v18 = vld [vmem:[%s7032_s4] sm:$0xff] }
 0x1c9   :  { %v1046_v10 = vmul.f32 %v4961_v50, %v1019_v49  ;;  %3773 = vmatmul.msk.bf16.vlgmr.msra.gmra.mxu1 %vm567_vm1, %v1200_v9  ;;  %v1166_v0 = vunpack.c.l.b16 %v1094_v23  ;;  %1418 = vmatpush.bf16.msrb.mxu2 %v3930_v18 }
 0x1cb   :  { %v1063_v55 = vadd.f32 %v4969_v38, %v1046_v10  ;;  %v1028_v10 = vpop.f32.mrf.mxu2 }
 0x1cd   :  { %v5111_v57 = vmax.f32 %v1063_v55, 0.0  ;;  %v1136_v55 = vpack.c.b16 %v1123_v4, %v1122_v6 }
 0x1cf   :  { %7107 = vst [vmem:[#allocation29_spill] sm:$0xff] %v5111_v57  ;;  %v1095_v1 = vpack.c.bf16 %v5111_v57, %v5111_v57  ;;  %3836 = vmatmul.msk.bf16.gmra.mxu0 %vm136_vm0, %v1136_v55 }
 0x1d1   :  { %v1167_v58 = vunpack.c.l.b16 %v1095_v1 }
 0x1d3   :  { %v1178_v2 = vpack.c.b16 %v1167_v58, %v1166_v0 }
 0x1d5   :  { %1190 = vrot.lane.b32.xlu1 %v1178_v2, %s4168_s27  ;;  %v7113_v2 = vld [vmem:[#allocation15_spill] sm:$0xff] }
 0x1db   :  { %v923_v19 = vpop.f32.mrf.mxu0 }
 0x1dc   :  { %v972_v25 = vpop.f32.mrf.mxu1 }
 0x1dd   :  { %v973_v60 = vadd.f32 %v972_v25, %v923_v19 }
 0x1df   :  { %v1022_v36 = vadd.f32 %v1021_v8, %v973_v60  ;;  %v78_v8 = vpack.c.bf16 %v7113_v2, %v7113_v2 }
 0x1e1   :  { %v1047_v28 = vmul.f32 %v4961_v50, %v1022_v36 }
 0x1e3   :  { %v925_v31 = vpop.f32.mrf.mxu0  ;;  %v1064_v62 = vadd.f32 %v4969_v38, %v1047_v28 }
 0x1e4   :  { %v974_v52 = vpop.f32.mrf.mxu1 }
 0x1e5   :  { %v975_v12 = vadd.f32 %v974_v52, %v925_v31  ;;  %v5130_v33 = vmax.f32 %v1064_v62, 0.0 }
 0x1e7   :  { %v1024_v32 = vadd.f32 %v1023_v37, %v975_v12  ;;  %v1185_v27 = vpop.permute.xlu1 %1184  ;;  %7109 = vst [vmem:[#allocation12_spill] sm:$0xff] %v5130_v33  ;;  %v1096_v61 = vpack.c.bf16 %v5130_v33, %v5130_v33  ;;  %v1124_v37 = vunpack.c.l.b16 %v78_v8  ;;  %v5202_v8 = vld [vmem:[%s7038_s10 + $0x2] ss:$0 sm:$0xff] }
 0x1e8   :  { %v1203_v53 = vsel %vm136_vm0, %v1135_v30, %v1185_v27 }
 0x1e9   :  { %v1048_v41 = vmul.f32 %v4961_v50, %v1024_v32  ;;  %3774 = vmatmul.msk.bf16.vlgmr.msra.gmra.mxu3 %vm567_vm1, %v1203_v53  ;;  %v1168_v29 = vunpack.c.l.b16 %v1096_v61  ;;  %v1137_v52 = vpack.c.b16 %v1125_v15, %v1124_v37 }
 0x1eb   :  { %v1065_v54 = vadd.f32 %v4969_v38, %v1048_v41  ;;  %3837 = vmatmul.msk.bf16.gmra.mxu0 %vm136_vm0, %v1137_v52 }
 0x1ec   :  { %v977_v3 = vpop.f32.mrf.mxu1 }
 0x1ed   :  { %v5139_v48 = vmax.f32 %v1065_v54, 0.0  ;;  %v978_v45 = vadd.f32 %v977_v3, %v4881_v5 }
 0x1ef   :  { %7112 = vst [vmem:[#allocation13_spill] sm:$0xff] %v5139_v48  ;;  %v1027_v7 = vadd.f32 %v1026_v24, %v978_v45  ;;  %v1097_v13 = vpack.c.bf16 %v5139_v48, %v5139_v48  ;;  %v1187_v1 = vpop.permute.xlu2 %1186 }
 0x1f0   :  { %v1206_v58 = vsel %vm136_vm0, %v1136_v55, %v1187_v1 }
 0x1f1   :  { %v1049_v49 = vmul.f32 %v4961_v50, %v1027_v7  ;;  %v1169_v9 = vunpack.c.l.b16 %v1097_v13  ;;  %v7120_v13 = vld [vmem:[#allocation19_spill] sm:$0xff] }
 0x1f3   :  { %v1179_v39 = vpack.c.b16 %v1169_v9, %v1168_v29  ;;  %v1066_v5 = vadd.f32 %v4969_v38, %v1049_v49 }
 0x1f4   :  { %v979_v23 = vpop.f32.mrf.mxu1 }
 0x1f5   :  { %v980_v44 = vadd.f32 %v979_v23, %v4906_v40  ;;  %1192 = vrot.lane.b32.xlu2 %v1179_v39, %s4168_s27  ;;  %v5156_v43 = vmax.f32 %v1066_v5, 0.0  ;;  %v1031_v40 = vpop.f32.mrf.mxu2  ;;  %v7121_v39 = vld [vmem:[#allocation16_spill] sm:$0xff]  ;;  %v7122_v5 = vld [vmem:[#allocation7_spill] sm:$0xff] }
 0x1f6   :  { %v82_v23 = vpack.c.bf16 %v7121_v39, %v7121_v39  ;;  %v83_v1 = vpack.c.bf16 %v7122_v5, %v7122_v5 }
 0x1f7   :  { %v1029_v0 = vadd.f32 %v1028_v10, %v980_v44  ;;  %7115 = vst [vmem:[#allocation14_spill] sm:$0xff] %v5156_v43  ;;  %v1098_v28 = vpack.c.bf16 %v5156_v43, %v5156_v43 }
 0x1f8   :  { %v1128_v44 = vunpack.c.l.b16 %v82_v23 }
 0x1f9   :  { %v1050_v19 = vmul.f32 %v4961_v50, %v1029_v0  ;;  %3775 = vmatmul.msk.bf16.gmra.mxu3 %vm567_vm1, %v1206_v58  ;;  %v1170_v12 = vunpack.c.l.b16 %v1098_v28  ;;  %v1129_v0 = vunpack.c.l.b16 %v83_v1  ;;  %v5218_v28 = vld [vmem:[%s7038_s10 + $0x7] ss:$0 sm:$0xff] }
 0x1fb   :  { %v1067_v25 = vadd.f32 %v4969_v38, %v1050_v19  ;;  %v1139_v58 = vpack.c.b16 %v1129_v0, %v1128_v44 }
 0x1fc   :  { %v982_v60 = vpop.f32.mrf.mxu1 }
 0x1fd   :  { %v5161_v35 = vmax.f32 %v1067_v25, 0.0  ;;  %v983_v36 = vadd.f32 %v982_v60, %v4908_v16  ;;  %v1033_v41 = vpop.f32.mrf.mxu2  ;;  %v5210_v25 = vld [vmem:[%s7038_s10 + $0x3] ss:$0 sm:$0xff] }
 0x1ff   :  { %7116 = vst [vmem:[#allocation15_spill] sm:$0xff] %v5161_v35  ;;  %v1032_v30 = vadd.f32 %v1031_v40, %v983_v36  ;;  %v1099_v31 = vpack.c.bf16 %v5161_v35, %v5161_v35 }
 0x201   :  { %v1051_v62 = vmul.f32 %v4961_v50, %v1032_v30  ;;  %v1171_v32 = vunpack.c.l.b16 %v1099_v31  ;;  %v5223_v30 = vld [vmem:[%s7038_s10 + $0x8] ss:$0 sm:$0xff] }
 0x203   :  { %v1180_v27 = vpack.c.b16 %v1171_v32, %v1170_v12  ;;  %v1068_v53 = vadd.f32 %v4969_v38, %v1051_v62  ;;  %v7123_v12 = vld [vmem:[#allocation8_spill] sm:$0xff] }
 0x204   :  { %v984_v24 = vpop.f32.mrf.mxu1  ;;  %v84_v32 = vpack.c.bf16 %v7123_v12, %v7123_v12 }
 0x205   :  { %v985_v16 = vadd.f32 %v984_v24, %v4922_v11  ;;  %1194 = vrot.lane.b32.xlu0 %v1180_v27, %s4168_s27  ;;  %v5173_v26 = vmax.f32 %v1068_v53, 0.0  ;;  %v7124_v27 = vld [vmem:[#allocation9_spill] sm:$0xff] }
 0x206   :  { %v85_v24 = vpack.c.bf16 %v7124_v27, %v7124_v27 }
 0x207   :  { %v1034_v59 = vadd.f32 %v1033_v41, %v985_v16  ;;  %7117 = vst [vmem:[#allocation17_spill] sm:$0xff] %v5173_v26  ;;  %v1100_v11 = vpack.c.bf16 %v5173_v26, %v5173_v26 }
 0x209   :  { %v1052_v17 = vmul.f32 %v4961_v50, %v1034_v59  ;;  %v1172_v61 = vunpack.c.l.b16 %v1100_v11  ;;  %v7119_v50 = vld [vmem:[#allocation18_spill] sm:$0xff]  ;;  %v1130_v59 = vunpack.c.l.b16 %v84_v32 }
 0x20a   :  { %v80_v7 = vpack.c.bf16 %v7119_v50, %v7119_v50  ;;  %v7125_v50 = vld [vmem:[#allocation10_spill] sm:$0xff] }
 0x20b   :  { %v1069_v54 = vadd.f32 %v4969_v38, %v1052_v17  ;;  %v81_v38 = vpack.c.bf16 %v7120_v13, %v7120_v13  ;;  %v1131_v17 = vunpack.c.l.b16 %v85_v24  ;;  %v7126_v13 = vld [vmem:[#allocation11_spill] sm:$0xff] }
 0x20c   :  { %v1126_v49 = vunpack.c.l.b16 %v80_v7  ;;  %v86_v7 = vpack.c.bf16 %v7125_v50, %v7125_v50 }
 0x20d   :  { %v5180_v3 = vmax.f32 %v1069_v54, 0.0  ;;  %v1127_v29 = vunpack.c.l.b16 %v81_v38  ;;  %v1140_v18 = vpack.c.b16 %v1131_v17, %v1130_v59  ;;  %v87_v38 = vpack.c.bf16 %v7126_v13, %v7126_v13 }
 0x20f   :  { %7118 = vst [vmem:[#allocation30_spill] sm:$0xff] %v5180_v3  ;;  %v1101_v45 = vpack.c.bf16 %v5180_v3, %v5180_v3  ;;  %v1138_v9 = vpack.c.b16 %v1127_v29, %v1126_v49  ;;  %v1132_v29 = vunpack.c.l.b16 %v86_v7 }
 0x211   :  { %v1173_v6 = vunpack.c.l.b16 %v1101_v45  ;;  %3838 = vmatmul.msk.bf16.gmra.mxu0 %vm136_vm0, %v1138_v9 }
 0x213   :  { %v1181_v4 = vpack.c.b16 %v1173_v6, %v1172_v61 }
 0x215   :  { %1196 = vrot.lane.b32.xlu1 %v1181_v4, %s4168_s27 }
 0x216   :  { %v1926_v36 = vpop.f32.mrf.mxu0 }
 0x217   :  { %v1967_v62 = vmul.f32 %v5218_v28, %v1926_v36 }
 0x219   :  { %v1984_v41 = vadd.f32 %v5223_v30, %v1967_v62 }
 0x21b   :  { %2004 = vst.msk [vmem:[#allocation3 + $0x10] sm:$0xff] %vm136_vm0, %v1984_v41 }
 0x21e   :  { %v1928_v11 = vpop.f32.mrf.mxu0 }
 0x21f   :  { %v1968_v45 = vmul.f32 %v5218_v28, %v1928_v11 }
 0x221   :  { %3839 = vmatmul.msk.bf16.gmra.mxu0 %vm136_vm0, %v1139_v58  ;;  %v1985_v61 = vadd.f32 %v5223_v30, %v1968_v45 }
 0x222   :  { %v2037_v7 = vld [vmem:[#allocation3 + $0x10] sm:$0xff] }
 0x223   :  { %2005 = vst.msk [vmem:[#allocation3 + $0x18] sm:$0xff] %vm136_vm0, %v1985_v61  ;;  %2092 = vrot.lane.b32.xlu0 %v2037_v7, %s4168_s27 }
 0x227   :  { %v1189_v10 = vpop.permute.xlu0 %1188 }
 0x228   :  { %v1209_v55 = vsel %vm136_vm0, %v1137_v52, %v1189_v10 }
 0x229   :  { %3776 = vmatmul.msk.bf16.gmra.mxu3 %vm567_vm1, %v1209_v55 }
 0x22a   :  { %v1931_v6 = vpop.f32.mrf.mxu0 }
 0x22b   :  { %v1969_v4 = vmul.f32 %v5218_v28, %v1931_v6 }
 0x22d   :  { %v1986_v49 = vadd.f32 %v5223_v30, %v1969_v4 }
 0x22f   :  { %2006 = vst.msk [vmem:[#allocation3 + $0x20] sm:$0xff] %vm136_vm0, %v1986_v49  ;;  %v2053_v49 = vld [vmem:[#allocation3 + $0x11] sm:$0xff] }
 0x231   :  { %3840 = vmatmul.msk.bf16.gmra.mxu0 %vm136_vm0, %v1140_v18 }
 0x232   :  { %v1933_v55 = vpop.f32.mrf.mxu0 }
 0x233   :  { %v1970_v39 = vmul.f32 %v5218_v28, %v1933_v55 }
 0x235   :  { %v1987_v5 = vadd.f32 %v5223_v30, %v1970_v39 }
 0x236   :  { %v2039_v55 = vld [vmem:[#allocation3 + $0x20] sm:$0xff] }
 0x237   :  { %2007 = vst.msk [vmem:[#allocation3 + $0x28] sm:$0xff] %vm136_vm0, %v1987_v5  ;;  %v2036_v5 = vld [vmem:[#allocation3 + $0x8] sm:$0xff] }
 0x238   :  { %2090 = vrot.lane.b32.xlu2 %v2036_v5, %s4168_s27 }
 0x246   :  { %v1279_v2 = vpop.f32.mrf.mxu1 }
 0x247   :  { %v1191_v42 = vpop.permute.xlu1 %1190  ;;  %v1320_v19 = vmul.f32 %v5202_v8, %v1279_v2 }
 0x248   :  { %v1212_v21 = vsel %vm136_vm0, %v1138_v9, %v1191_v42  ;;  %v1133_v9 = vunpack.c.l.b16 %v87_v38  ;;  %v2052_v38 = vld [vmem:[#allocation3 + $0x9] sm:$0xff] }
 0x249   :  { %3777 = vmatmul.msk.bf16.gmra.mxu3 %vm567_vm1, %v1212_v21  ;;  %v1337_v40 = vadd.f32 %v5210_v25, %v1320_v19  ;;  %2154 = vrot.lane.b32.xlu0 %v2052_v38, %s4169_s28 }
 0x24a   :  { %v1141_v10 = vpack.c.b16 %v1133_v9, %v1132_v29  ;;  %v2021_v29 = vld [vmem:[#allocation3 + $0xf] sm:$0xff]  ;;  %v1480_v9 = vld [vmem:[%s7037_s9 + $0x20] sm:$0xf] }
 0x24b   :  { %v1353_v31 = vmax.f32 %v1337_v40, 0.0  ;;  %3793 = vmatpush.msk.msrb.mxu3 %vm1578_vm4, %v1480_v9 }
 0x24c   :  { %3841 = vmatmul.msk.bf16.gmra.mxu0 %vm136_vm0, %v1141_v10  ;;  %v1936_v44 = vpop.f32.mrf.mxu0 }
 0x24d   :  { %v1971_v0 = vmul.f32 %v5218_v28, %v1936_v44 }
 0x24e   :  { %v1281_v60 = vpop.f32.mrf.mxu1 }
 0x24f   :  { %v1321_v37 = vmul.f32 %v5202_v8, %v1281_v60  ;;  %v1193_v16 = vpop.permute.xlu2 %1192  ;;  %v1988_v2 = vadd.f32 %v5223_v30, %v1971_v0 }
 0x250   :  { %v1215_v54 = vsel %vm136_vm0, %v1139_v58, %v1193_v16 }
 0x251   :  { %v1338_v15 = vadd.f32 %v5210_v25, %v1321_v37  ;;  %2008 = vst.msk [vmem:[#allocation3 + $0x30] sm:$0xff] %vm136_vm0, %v1988_v2  ;;  %2218 = vrot.lane.b32.xlu0 %v2021_v29, %s4170_s29 }
 0x253   :  { %v1354_v52 = vmax.f32 %v1338_v15, 0.0 }
 0x254   :  { %v1938_v36 = vpop.f32.mrf.mxu0 }
 0x255   :  { %v1369_v53 = vpack.c.bf16 %v1354_v52, %v1353_v31  ;;  %v1972_v31 = vmul.f32 %v5218_v28, %v1938_v36 }
 0x257   :  { %3785 = vmatmul.msk.bf16.vlgmr.msrb.gmra.mxu2 %vm1386_vm3, %v1369_v53  ;;  %v1989_v12 = vadd.f32 %v5223_v30, %v1972_v31  ;;  %v1477_v31 = vld [vmem:[%s7037_s9 + $0x8] sm:$0xff] }
 0x259   :  { %3778 = vmatmul.msk.bf16.gmra.mxu3 %vm567_vm1, %v1215_v54  ;;  %2009 = vst.msk [vmem:[#allocation3 + $0x38] sm:$0xff] %vm136_vm0, %v1989_v12  ;;  %2096 = vrot.lane.b32.xlu0 %v2039_v55, %s4168_s27  ;;  %v2055_v12 = vld [vmem:[#allocation3 + $0x21] sm:$0xff] }
 0x268   :  { %v1941_v27 = vpop.f32.mrf.mxu0 }
 0x269   :  { %v1973_v24 = vmul.f32 %v5218_v28, %v1941_v27  ;;  %v5327_v27 = vld [vmem:[#allocation3 + $0x29] sm:$0xff] }
 0x26b   :  { %v1990_v16 = vadd.f32 %v5223_v30, %v1973_v24  ;;  %v5331_v24 = vld [vmem:[#allocation3 + $0x2f] sm:$0xff] }
 0x26c   :  { %v1284_v23 = vpop.f32.mrf.mxu3 }
 0x26d   :  { %v1322_v1 = vmul.f32 %v5202_v8, %v1284_v23  ;;  %2010 = vst.msk [vmem:[#allocation3 + $0x40] sm:$0xff] %vm136_vm0, %v1990_v16  ;;  %v2022_v23 = vld [vmem:[#allocation3 + $0x17] sm:$0xff] }
 0x26f   :  { %v1339_v42 = vadd.f32 %v5210_v25, %v1322_v1  ;;  %v5293_v1 = vld [vmem:[#allocation3 + $0x28] sm:$0xff] }
 0x270   :  { %v1943_v61 = vpop.f32.mrf.mxu0  ;;  %2098 = vrot.lane.b32.xlu0 %v5293_v1, %s4168_s27 }
 0x271   :  { %v1355_v37 = vmax.f32 %v1339_v42, 0.0  ;;  %v1974_v6 = vmul.f32 %v5218_v28, %v1943_v61  ;;  %v1479_v42 = vld [vmem:[%s7037_s9 + $0x18] sm:$0xff] }
 0x272   :  { %1594 = vmatpush.msrb.mxu3 %v1479_v42 }
 0x273   :  { %v1991_v50 = vadd.f32 %v5223_v30, %v1974_v6 }
 0x274   :  { %v1286_v58 = vpop.f32.mrf.mxu3  ;;  %v5336_v16 = vld [vmem:[#allocation3 + $0x39] sm:$0xff] }
 0x275   :  { %v1323_v21 = vmul.f32 %v5202_v8, %v1286_v58  ;;  %2011 = vst.msk [vmem:[#allocation3 + $0x48] sm:$0xff] %vm136_vm0, %v1991_v50  ;;  %v5355_v50 = vld [vmem:[%s7038_s10 + $0x4] ss:$0 sm:$0xff] }
 0x277   :  { %v1340_v19 = vadd.f32 %v5210_v25, %v1323_v21  ;;  %v1195_v40 = vpop.permute.xlu0 %1194  ;;  %v2054_v21 = vld [vmem:[#allocation3 + $0x19] sm:$0xff] }
 0x278   :  { %v1218_v60 = vsel %vm136_vm0, %v1140_v18, %v1195_v40  ;;  %v5305_v40 = vld [vmem:[#allocation3 + $0x30] sm:$0xff] }
 0x279   :  { %v1356_v15 = vmax.f32 %v1340_v19, 0.0  ;;  %3779 = vmatmul.msk.bf16.gmra.mxu3 %vm567_vm1, %v1218_v60  ;;  %v2023_v19 = vld [vmem:[#allocation3 + $0x1f] sm:$0xff]  ;;  %2100 = vrot.lane.b32.xlu0 %v5305_v40, %s4168_s27 }
 0x27a   :  { %2222 = vrot.lane.b32.xlu2 %v2023_v19, %s4170_s29 }
 0x27b   :  { %v1370_v52 = vpack.c.bf16 %v1356_v15, %v1355_v37  ;;  %v1478_v37 = vld [vmem:[%s7037_s9 + $0x10] sm:$0xff] }
 0x27c   :  { %v1289_v62 = vpop.f32.mrf.mxu3  ;;  %v5277_v13 = vld [vmem:[#allocation3 + $0x48] sm:$0xff]  ;;  %1595 = vmatpush.msrb.mxu3 %v1478_v37  ;;  %v5385_v37 = vld [vmem:[#allocation3 + $0x40] sm:$0xff] }
 0x27d   :  { %3786 = vmatmul.msk.bf16.gmra.mxu2 %vm1386_vm3, %v1370_v52  ;;  %v1324_v32 = vmul.f32 %v5202_v8, %v1289_v62  ;;  %2106 = vrot.lane.b32.xlu1 %v5277_v13, %s4168_s27  ;;  %v1476_v62 = vld [vmem:[%s7037_s9] sm:$0xff] }
 0x27e   :  { %1596 = vmatpush.msrb.mxu3 %v1477_v31 }
 0x27f   :  { %v1341_v41 = vadd.f32 %v5210_v25, %v1324_v32  ;;  %v5322_v32 = vld [vmem:[#allocation3 + $0x27] sm:$0xff] }
 0x280   :  { %1597 = vmatpush.msrb.mxu3 %v1476_v62 }
 0x281   :  { %v1357_v11 = vmax.f32 %v1341_v41, 0.0  ;;  %2271 = vrot.lane.b32.xlu0 %v2055_v12, %s4168_s27 }
 0x282   :  { %2224 = vrot.lane.b32.xlu2 %v5322_v32, %s4170_s29 }
 0x284   :  { %v1291_v53 = vpop.f32.mrf.mxu3 }
 0x285   :  { %v1325_v59 = vmul.f32 %v5202_v8, %v1291_v53  ;;  %2156 = vrot.lane.b32.xlu1 %v2053_v49, %s4169_s28 }
 0x287   :  { %v1342_v17 = vadd.f32 %v5210_v25, %v1325_v59  ;;  %v1197_v18 = vpop.permute.xlu1 %1196 }
 0x288   :  { %v1221_v54 = vsel %vm136_vm0, %v1141_v10, %v1197_v18  ;;  %v5287_v10 = vld [vmem:[#allocation3 + $0x18] sm:$0xff] }
 0x289   :  { %v1358_v45 = vmax.f32 %v1342_v17, 0.0  ;;  %3780 = vmatmul.msk.bf16.gmra.mxu3 %vm567_vm1, %v1221_v54  ;;  %2368 = vrot.lane.b32.xlu0 %v2039_v55, %s4170_s29 }
 0x28a   :  { %2226 = vrot.lane.b32.xlu2 %v5331_v24, %s4170_s29 }
 0x28b   :  { %v1371_v4 = vpack.c.bf16 %v1358_v45, %v1357_v11  ;;  %v2057_v11 = vld [vmem:[#allocation3 + $0x31] sm:$0xff]  ;;  %v5346_v45 = vld [vmem:[#allocation3 + $0x3f] sm:$0xff] }
 0x28d   :  { %3787 = vmatmul.msk.bf16.gmra.mxu2 %vm1386_vm3, %v1371_v4  ;;  %2094 = vrot.lane.b32.xlu1 %v5287_v10, %s4168_s27 }
 0x28e   :  { %v1946_v41 = vpop.f32.mrf.mxu0 }
 0x28f   :  { %v1975_v59 = vmul.f32 %v5218_v28, %v1946_v41 }
 0x291   :  { %2166 = vrot.lane.b32.xlu0 %v5336_v16, %s4169_s28  ;;  %v1992_v17 = vadd.f32 %v5223_v30, %v1975_v59 }
 0x292   :  { %2269 = vrot.lane.b32.xlu2 %v2054_v21, %s4168_s27 }
 0x293   :  { %2012 = vst.msk [vmem:[#allocation3 + $0x50] sm:$0xff] %vm136_vm0, %v1992_v17 }
 0x295   :  { %2220 = vrot.lane.b32.xlu1 %v2022_v23, %s4170_s29 }
 0x299   :  { %2230 = vrot.lane.b32.xlu0 %v5346_v45, %s4170_s29 }
 0x29a   :  { %2164 = vrot.lane.b32.xlu2 %v2057_v11, %s4169_s28 }
 0x29d   :  { %2158 = vrot.lane.b32.xlu1 %v2054_v21, %s4169_s28 }
 0x2a2   :  { %2318 = vrot.lane.b32.xlu2 %v2023_v19, %s4169_s28 }
 0x2a5   :  { %2160 = vrot.lane.b32.xlu1 %v2055_v12, %s4169_s28 }
 0x2ac   :  { %v1294_v39 = vpop.f32.mrf.mxu3 }
 0x2ad   :  { %v1326_v44 = vmul.f32 %v5202_v8, %v1294_v39  ;;  %2162 = vrot.lane.b32.xlu1 %v5327_v27, %s4169_s28  ;;  %v5366_v39 = vld [vmem:[#allocation3 + $0x37] sm:$0xff] }
 0x2af   :  { %v1343_v58 = vadd.f32 %v5210_v25, %v1326_v44 }
 0x2b1   :  { %v1359_v15 = vmax.f32 %v1343_v58, 0.0 }
 0x2b4   :  { %v1296_v0 = vpop.f32.mrf.mxu3 }
 0x2b5   :  { %v1327_v2 = vmul.f32 %v5202_v8, %v1296_v0  ;;  %2267 = vrot.lane.b32.xlu1 %v2053_v49, %s4168_s27  ;;  %v1948_v0 = vpop.f32.mrf.mxu0 }
 0x2b7   :  { %v1344_v60 = vadd.f32 %v5210_v25, %v1327_v2  ;;  %v1976_v2 = vmul.f32 %v5218_v28, %v1948_v0 }
 0x2b9   :  { %v1360_v36 = vmax.f32 %v1344_v60, 0.0  ;;  %v1993_v19 = vadd.f32 %v5223_v30, %v1976_v2 }
 0x2bb   :  { %v1372_v52 = vpack.c.bf16 %v1360_v36, %v1359_v15  ;;  %v5389_v15 = vld [vmem:[#allocation3 + $0x38] sm:$0xff]  ;;  %2013 = vst.msk [vmem:[#allocation3 + $0x58] sm:$0xff] %vm136_vm0, %v1993_v19 }
 0x2bc   :  { %2102 = vrot.lane.b32.xlu2 %v5389_v15, %s4168_s27 }
 0x2bd   :  { %3788 = vmatmul.msk.bf16.gmra.mxu2 %vm1386_vm3, %v1372_v52  ;;  %2316 = vrot.lane.b32.xlu1 %v2022_v23, %s4169_s28  ;;  %v5370_v23 = vld [vmem:[#allocation3 + $0x41] sm:$0xff]  ;;  %v1951_v59 = vpop.f32.mrf.mxu0 }
 0x2be   :  { %2168 = vrot.lane.b32.xlu0 %v5370_v23, %s4169_s28 }
 0x2c2   :  { %v2061_v12 = vld [vmem:[#allocation3 + $0x51] sm:$0xff] }
 0x2c3   :  { %v2030_v41 = vld [vmem:[#allocation3 + $0x57] sm:$0xff] }
 0x2c4   :  { %2366 = vrot.lane.b32.xlu2 %v5287_v10, %s4170_s29  ;;  %v5410_v17 = vld [vmem:[#allocation3 + $0x58] sm:$0xff] }
 0x2c5   :  { %2228 = vrot.lane.b32.xlu1 %v5366_v39, %s4170_s29 }
 0x2c6   :  { %2275 = vrot.lane.b32.xlu0 %v2057_v11, %s4168_s27 }
 0x2cc   :  { %v1299_v53 = vpop.f32.mrf.mxu3  ;;  %2320 = vrot.lane.b32.xlu2 %v5322_v32, %s4169_s28 }
 0x2cd   :  { %v1328_v18 = vmul.f32 %v5202_v8, %v1299_v53  ;;  %2104 = vrot.lane.b32.xlu1 %v5385_v37, %s4168_s27  ;;  %v5402_v53 = vld [vmem:[#allocation3 + $0x47] sm:$0xff] }
 0x2ce   :  { %2172 = vrot.lane.b32.xlu0 %v2061_v12, %s4169_s28 }
 0x2cf   :  { %v1345_v61 = vadd.f32 %v5210_v25, %v1328_v18 }
 0x2d1   :  { %v1361_v7 = vmax.f32 %v1345_v61, 0.0  ;;  %v5423_v61 = vpop.permute.xlu0 %2092 }
 0x2d4   :  { %v1301_v54 = vpop.f32.mrf.mxu3  ;;  %2273 = vrot.lane.b32.xlu2 %v5327_v27, %s4168_s27 }
 0x2d5   :  { %v1329_v6 = vmul.f32 %v5202_v8, %v1301_v54  ;;  %2370 = vrot.lane.b32.xlu1 %v5293_v1, %s4170_s29  ;;  %v1977_v1 = vmul.f32 %v5218_v28, %v1951_v59 }
 0x2d6   :  { %2236 = vrot.lane.b32.xlu0 %v2030_v41, %s4170_s29 }
 0x2d7   :  { %v1346_v4 = vadd.f32 %v5210_v25, %v1329_v6  ;;  %v1994_v10 = vadd.f32 %v5223_v30, %v1977_v1  ;;  %v1953_v6 = vpop.f32.mrf.mxu0 }
 0x2d9   :  { %v1362_v38 = vmax.f32 %v1346_v4, 0.0  ;;  %2014 = vst.msk [vmem:[#allocation3 + $0x60] sm:$0xff] %vm136_vm0, %v1994_v10  ;;  %v1978_v4 = vmul.f32 %v5218_v28, %v1953_v6 }
 0x2da   :  { %v1420_v49 = vpop.f32.mrf.mxu2 }
 0x2db   :  { %v1373_v29 = vpack.c.bf16 %v1362_v38, %v1361_v7  ;;  %v5361_v9 = vadd.f32 %v5355_v50, %v1420_v49  ;;  %v1995_v38 = vadd.f32 %v5223_v30, %v1978_v4 }
 0x2dc   :  { %v1304_v55 = vpop.f32.mrf.mxu3  ;;  %2322 = vrot.lane.b32.xlu2 %v5331_v24, %s4169_s28 }
 0x2dd   :  { %3789 = vmatmul.msk.bf16.gmra.mxu2 %vm1386_vm3, %v1373_v29  ;;  %3794 = vmatmul.msk.f32.vlgmr.msrb.gmra.mxu3 %vm1481_vm5, %v5361_v9  ;;  %v1330_v5 = vmul.f32 %v5202_v8, %v1304_v55  ;;  %2015 = vst.msk [vmem:[#allocation3 + $0x68] sm:$0xff] %vm136_vm0, %v1995_v38 }
 0x2de   :  { %2232 = vrot.lane.b32.xlu1 %v5402_v53, %s4170_s29  ;;  %2283 = vrot.lane.b32.xlu0 %v2061_v12, %s4168_s27 }
 0x2df   :  { %v1347_v21 = vadd.f32 %v5210_v25, %v1330_v5  ;;  %v1956_v19 = vpop.f32.mrf.mxu0 }
 0x2e0   :  { %v5431_v29 = vld [vmem:[#allocation3 + $0x60] sm:$0xff] }
 0x2e1   :  { %v1363_v31 = vmax.f32 %v1347_v21, 0.0  ;;  %v5445_v21 = vpop.permute.xlu2 %2090  ;;  %v5451_v24 = vld [vmem:[#allocation3 + $0x59] sm:$0xff] }
 0x2e2   :  { %v1422_v44 = vpop.f32.mrf.mxu2 }
 0x2e3   :  { %v5377_v58 = vadd.f32 %v5355_v50, %v1422_v44 }
 0x2e4   :  { %v1306_v42 = vpop.f32.mrf.mxu3  ;;  %2372 = vrot.lane.b32.xlu2 %v5305_v40, %s4170_s29  ;;  %v5476_v6 = vld [vmem:[#allocation3 + $0x67] sm:$0xff] }
 0x2e5   :  { %v1331_v60 = vmul.f32 %v5202_v8, %v1306_v42  ;;  %3795 = vmatmul.msk.f32.gmra.mxu3 %vm1481_vm5, %v5377_v58 }
 0x2e6   :  { %2382 = vrot.lane.b32.xlu1 %v5410_v17, %s4170_s29  ;;  %2332 = vrot.lane.b32.xlu0 %v2030_v41, %s4169_s28 }
 0x2e7   :  { %v1348_v36 = vadd.f32 %v5210_v25, %v1331_v60  ;;  %v5447_v60 = vpop.permute.xlu0 %2154 }
 0x2e9   :  { %v1364_v52 = vmax.f32 %v1348_v36, 0.0  ;;  %v5468_v10 = vpop.permute.xlu2 %2222 }
 0x2ea   :  { %7128 = vst [vmem:[#allocation19_spill] sm:$0xff] %v5468_v10 }
 0x2eb   :  { %v1374_v62 = vpack.c.bf16 %v1364_v52, %v1363_v31  ;;  %v1979_v31 = vmul.f32 %v5218_v28, %v1956_v19 }
 0x2ed   :  { %3790 = vmatmul.msk.bf16.gmra.mxu2 %vm1386_vm3, %v1374_v62  ;;  %v2031_v62 = vld [vmem:[#allocation3 + $0x5f] sm:$0xff]  ;;  %v1996_v12 = vadd.f32 %v5223_v30, %v1979_v31 }
 0x2ee   :  { %2112 = vrot.lane.b32.xlu1 %v5431_v29, %s4168_s27  ;;  %2238 = vrot.lane.b32.xlu0 %v2031_v62, %s4170_s29 }
 0x2ef   :  { %v5440_v44 = vpop.permute.xlu1 %2106  ;;  %2016 = vst.msk [vmem:[#allocation3 + $0x70] sm:$0xff] %vm136_vm0, %v1996_v12  ;;  %v2063_v12 = vld [vmem:[#allocation3 + $0x61] sm:$0xff] }
 0x2f0   :  { %7127 = vst [vmem:[#allocation18_spill] sm:$0xff] %v5440_v44 }
 0x2f6   :  { %2285 = vrot.lane.b32.xlu1 %v5451_v24, %s4168_s27  ;;  %2240 = vrot.lane.b32.xlu0 %v5476_v6, %s4170_s29 }
 0x2f7   :  { %v5462_v59 = vpop.permute.xlu1 %2156 }
 0x2fc   :  { %v1309_v18 = vpop.f32.mrf.mxu3 }
 0x2fd   :  { %v1332_v54 = vmul.f32 %v5202_v8, %v1309_v18 }
 0x2fe   :  { %2334 = vrot.lane.b32.xlu1 %v2031_v62, %s4169_s28  ;;  %2336 = vrot.lane.b32.xlu0 %v5476_v6, %s4169_s28 }
 0x2ff   :  { %v1349_v27 = vadd.f32 %v5210_v25, %v1332_v54  ;;  %v5474_v54 = vld [vmem:[#allocation3 + $0x50] sm:$0xff] }
 0x300   :  { %v1425_v32 = vpop.f32.mrf.mxu2  ;;  %2108 = vrot.lane.b32.xlu2 %v5474_v54, %s4168_s27 }
 0x301   :  { %v5421_v11 = vadd.f32 %v5355_v50, %v1425_v32  ;;  %v1365_v0 = vmax.f32 %v1349_v27, 0.0  ;;  %v5470_v32 = vpop.permute.xlu0 %2218 }
 0x303   :  { %3796 = vmatmul.msk.f32.gmra.mxu3 %vm1481_vm5, %v5421_v11 }
 0x304   :  { %v1311_v7 = vpop.f32.mrf.mxu3 }
 0x305   :  { %v1333_v49 = vmul.f32 %v5202_v8, %v1311_v7 }
 0x307   :  { %v1350_v55 = vadd.f32 %v5210_v25, %v1333_v49  ;;  %v5486_v49 = vpop.permute.xlu1 %2094 }
 0x308   :  { %v1427_v5 = vpop.f32.mrf.mxu2 }
 0x309   :  { %v1366_v2 = vmax.f32 %v1350_v55, 0.0  ;;  %v5443_v42 = vadd.f32 %v5355_v50, %v1427_v5 }
 0x30b   :  { %v1375_v36 = vpack.c.bf16 %v1366_v2, %v1365_v0  ;;  %3797 = vmatmul.msk.f32.gmra.mxu3 %vm1481_vm5, %v5443_v42  ;;  %v5491_v2 = vpop.permute.xlu2 %2224 }
 0x30c   :  { %v1314_v52 = vpop.f32.mrf.mxu3 }
 0x30d   :  { %3791 = vmatmul.msk.bf16.gmra.mxu2 %vm1386_vm3, %v1375_v36  ;;  %v1334_v1 = vmul.f32 %v5202_v8, %v1314_v52  ;;  %v5499_v36 = vld [vmem:[#allocation3 + $0x49] sm:$0xff] }
 0x30e   :  { %2170 = vrot.lane.b32.xlu2 %v5499_v36, %s4169_s28 }
 0x30f   :  { %v1351_v4 = vadd.f32 %v5210_v25, %v1334_v1  ;;  %v5508_v31 = vpop.permute.xlu1 %2220  ;;  %v5516_v1 = vld [vmem:[#allocation3 + $0x6f] sm:$0xff] }
 0x310   :  { %v1430_v41 = vpop.f32.mrf.mxu2  ;;  %2242 = vrot.lane.b32.xlu0 %v5516_v1, %s4170_s29 }
 0x311   :  { %v5466_v18 = vadd.f32 %v5355_v50, %v1430_v41  ;;  %v1367_v55 = vmax.f32 %v1351_v4, 0.0  ;;  %v5514_v41 = vld [vmem:[#allocation3 + $0x4f] sm:$0xff] }
 0x313   :  { %3798 = vmatmul.msk.f32.gmra.mxu3 %vm1481_vm5, %v5466_v18  ;;  %v5510_v52 = vpop.permute.xlu2 %2226 }
 0x314   :  { %v1316_v40 = vpop.f32.mrf.mxu3  ;;  %7129 = vst [vmem:[#allocation16_spill] sm:$0xff] %v5510_v52 }
 0x315   :  { %v1335_v7 = vmul.f32 %v5202_v8, %v1316_v40  ;;  %v5493_v8 = vpop.permute.xlu0 %2096 }
 0x316   :  { %2234 = vrot.lane.b32.xlu2 %v5514_v41, %s4170_s29 }
 0x317   :  { %v1352_v38 = vadd.f32 %v5210_v25, %v1335_v7  ;;  %v5497_v25 = vld [vmem:[#allocation3 + $0x68] sm:$0xff]  ;;  %v5523_v40 = vpop.permute.xlu1 %2158 }
 0x318   :  { %v1432_v27 = vpop.f32.mrf.mxu2  ;;  %2114 = vrot.lane.b32.xlu1 %v5497_v25, %s4168_s27  ;;  %7130 = vst [vmem:[#allocation7_spill] sm:$0xff] %v5523_v40 }
 0x319   :  { %v1368_v5 = vmax.f32 %v1352_v38, 0.0  ;;  %v5489_v0 = vadd.f32 %v5355_v50, %v1432_v27  ;;  %v5529_v38 = vld [vmem:[#allocation3 + $0x70] sm:$0xff]  ;;  %v1958_v27 = vpop.f32.mrf.mxu0 }
 0x31b   :  { %v1376_v19 = vpack.c.bf16 %v1368_v5, %v1367_v55  ;;  %3799 = vmatmul.msk.f32.gmra.mxu3 %vm1481_vm5, %v5489_v0  ;;  %v5525_v4 = vpop.permute.xlu2 %2269  ;;  %v2064_v55 = vld [vmem:[#allocation3 + $0x69] sm:$0xff]  ;;  %v1980_v5 = vmul.f32 %v5218_v28, %v1958_v27 }
 0x31c   :  { %2289 = vrot.lane.b32.xlu0 %v2064_v55, %s4168_s27 }
 0x31d   :  { %3792 = vmatmul.msk.bf16.gmra.mxu2 %vm1386_vm3, %v1376_v19  ;;  %v5512_v62 = vpop.permute.xlu0 %2098  ;;  %v1997_v19 = vadd.f32 %v5223_v30, %v1980_v5 }
 0x31e   :  { %2110 = vrot.lane.b32.xlu2 %v5410_v17, %s4168_s27 }
 0x31f   :  { %v5538_v20 = vpop.permute.xlu1 %2160  ;;  %2017 = vst.msk [vmem:[#allocation3 + $0x78] sm:$0xff] %vm136_vm0, %v1997_v19 }
 0x320   :  { %2287 = vrot.lane.b32.xlu1 %v2063_v12, %s4168_s27 }
 0x321   :  { %v1961_v26 = vpop.f32.mrf.mxu0 }
 0x322   :  { %v1981_v27 = vmul.f32 %v5218_v28, %v1961_v26 }
 0x323   :  { %v5541_v3 = vpop.permute.xlu2 %2164 }
 0x324   :  { %7132 = vst [vmem:[#allocation9_spill] sm:$0xff] %v5541_v3  ;;  %v1998_v5 = vadd.f32 %v5223_v30, %v1981_v27  ;;  %2338 = vrot.lane.b32.xlu0 %v5516_v1, %s4169_s28 }
 0x325   :  { %v5527_v7 = vpop.permute.xlu0 %2100 }
 0x326   :  { %7131 = vst [vmem:[#allocation8_spill] sm:$0xff] %v5527_v7  ;;  %2174 = vrot.lane.b32.xlu2 %v5451_v24, %s4169_s28  ;;  %v2065_v26 = vld [vmem:[#allocation3 + $0x71] sm:$0xff] }
 0x327   :  { %v5553_v17 = vpop.permute.xlu1 %2162  ;;  %2018 = vst.msk [vmem:[#allocation3 + $0x80] sm:$0xff] %vm136_vm0, %v1998_v5  ;;  %v5575_v43 = vld [vmem:[#allocation3 + $0x78] sm:$0xff] }
 0x328   :  { %2116 = vrot.lane.b32.xlu1 %v5529_v38, %s4168_s27  ;;  %7133 = vst [vmem:[#allocation10_spill] sm:$0xff] %v5553_v17 }
 0x32b   :  { %v5556_v19 = vpop.permute.xlu2 %2318 }
 0x32c   :  { %2180 = vrot.lane.b32.xlu0 %v2065_v26, %s4169_s28 }
 0x32d   :  { %v5543_v47 = vpop.permute.xlu0 %2271 }
 0x32e   :  { %2384 = vrot.lane.b32.xlu2 %v5431_v29, %s4170_s29  ;;  %v2066_v14 = vld [vmem:[#allocation3 + $0x79] sm:$0xff] }
 0x32f   :  { %v5564_v24 = vpop.permute.xlu1 %2267  ;;  %v5592_v33 = vld [vmem:[#allocation3 + $0x7f] sm:$0xff] }
 0x330   :  { %2324 = vrot.lane.b32.xlu1 %v5366_v39, %s4169_s28 }
 0x333   :  { %v5569_v35 = vpop.permute.xlu2 %2102 }
 0x334   :  { %7134 = vst [vmem:[#allocation11_spill] sm:$0xff] %v5569_v35  ;;  %2118 = vrot.lane.b32.xlu0 %v5575_v43, %s4168_s27 }
 0x335   :  { %v5558_v56 = vpop.permute.xlu0 %2368 }
 0x336   :  { %2176 = vrot.lane.b32.xlu2 %v2063_v12, %s4169_s28 }
 0x338   :  { %2291 = vrot.lane.b32.xlu1 %v2065_v26, %s4168_s27 }
 0x33b   :  { %v5586_v48 = vpop.permute.xlu2 %2366 }
 0x33c   :  { %2388 = vrot.lane.b32.xlu0 %v5529_v38, %s4170_s29 }
 0x33d   :  { %v5571_v5 = vpop.permute.xlu0 %2166 }
 0x33e   :  { %7135 = vst [vmem:[#allocation31_spill] sm:$0xff] %v5571_v5  ;;  %2386 = vrot.lane.b32.xlu2 %v5497_v25, %s4170_s29 }
 0x340   :  { %v1435_v39 = vpop.f32.mrf.mxu2  ;;  %2182 = vrot.lane.b32.xlu1 %v2066_v14, %s4169_s28 }
 0x341   :  { %v5567_v27 = vadd.f32 %v5355_v50, %v1435_v39  ;;  %v5581_v39 = vpop.permute.xlu1 %2316 }
 0x343   :  { %3800 = vmatmul.msk.f32.gmra.mxu3 %vm1481_vm5, %v5567_v27  ;;  %v5602_v57 = vpop.permute.xlu2 %2320 }
 0x344   :  { %2277 = vrot.lane.b32.xlu0 %v5336_v16, %s4168_s27 }
 0x345   :  { %v5588_v22 = vpop.permute.xlu0 %2230 }
 0x346   :  { %7136 = vst [vmem:[#allocation32_spill] sm:$0xff] %v5588_v22  ;;  %2178 = vrot.lane.b32.xlu2 %v2064_v55, %s4169_s28 }
 0x348   :  { %v1437_v26 = vpop.f32.mrf.mxu2  ;;  %2246 = vrot.lane.b32.xlu1 %v5592_v33, %s4170_s29 }
 0x349   :  { %v5584_v51 = vadd.f32 %v5355_v50, %v1437_v26  ;;  %v5600_v12 = vpop.permute.xlu1 %2228  ;;  %v1963_v26 = vpop.f32.mrf.mxu0 }
 0x34a   :  { %7137 = vst [vmem:[#allocation33_spill] sm:$0xff] %v5600_v12  ;;  %v1982_v46 = vmul.f32 %v5218_v28, %v1963_v26 }
 0x34b   :  { %3801 = vmatmul.msk.f32.gmra.mxu3 %vm1481_vm5, %v5584_v51  ;;  %v5615_v22 = vpop.permute.xlu2 %2273 }
 0x34c   :  { %v1999_v34 = vadd.f32 %v5223_v30, %v1982_v46  ;;  %7140 = vst [vmem:[#allocation36_spill] sm:$0xff] %v5615_v22  ;;  %2390 = vrot.lane.b32.xlu0 %v5575_v43, %s4170_s29 }
 0x34d   :  { %v5605_v63 = vpop.permute.xlu0 %2168 }
 0x34e   :  { %7138 = vst [vmem:[#allocation34_spill] sm:$0xff] %v5605_v63  ;;  %2374 = vrot.lane.b32.xlu2 %v5389_v15, %s4170_s29  ;;  %v5637_v15 = vld [vmem:[#allocation3 + $0x77] sm:$0xff] }
 0x34f   :  { %2019 = vst.msk [vmem:[#allocation3 + $0x88] sm:$0xff] %vm136_vm0, %v1999_v34 }
 0x350   :  { %2293 = vrot.lane.b32.xlu1 %v2066_v14, %s4168_s27 }
 0x351   :  { %v5613_v44 = vpop.permute.xlu1 %2104 }
 0x352   :  { %7139 = vst [vmem:[#allocation35_spill] sm:$0xff] %v5613_v44 }
 0x353   :  { %v5629_v30 = vpop.permute.xlu2 %2322 }
 0x354   :  { %7142 = vst [vmem:[#allocation38_spill] sm:$0xff] %v5629_v30  ;;  %2279 = vrot.lane.b32.xlu0 %v5370_v23, %s4168_s27 }
 0x355   :  { %v5617_v5 = vpop.permute.xlu0 %2275 }
 0x356   :  { %7141 = vst [vmem:[#allocation37_spill] sm:$0xff] %v5617_v5  ;;  %v2067_v28 = vld [vmem:[#allocation3 + $0x81] sm:$0xff]  ;;  %2244 = vrot.lane.b32.xlu2 %v5637_v15, %s4170_s29 }
 0x357   :  { %v2068_v35 = vld [vmem:[#allocation3 + $0x87] sm:$0xff] }
 0x358   :  { %2184 = vrot.lane.b32.xlu1 %v2067_v28, %s4169_s28 }
 0x359   :  { %v5627_v14 = vpop.permute.xlu1 %2370 }
 0x35d   :  { %v5631_v16 = vpop.permute.xlu0 %2172 }
 0x35e   :  { %7143 = vst [vmem:[#allocation39_spill] sm:$0xff] %v5631_v16  ;;  %v5648_v16 = vpop.permute.xlu2 %2372  ;;  %2340 = vrot.lane.b32.xlu2 %v5637_v15, %s4169_s28 }
 0x35f   :  { %7145 = vst [vmem:[#allocation41_spill] sm:$0xff] %v5648_v16  ;;  %v2069_v16 = vld [vmem:[#allocation3 + $0x88] sm:$0xff] }
 0x360   :  { %v1440_v34 = vpop.f32.mrf.mxu2  ;;  %2326 = vrot.lane.b32.xlu1 %v5346_v45, %s4169_s28  ;;  %v5655_v45 = vld [vmem:[#allocation3 + $0x80] sm:$0xff] }
 0x361   :  { %v5625_v46 = vadd.f32 %v5355_v50, %v1440_v34  ;;  %v5646_v34 = vpop.permute.xlu1 %2232  ;;  %2392 = vrot.lane.b32.xlu0 %v5655_v45, %s4170_s29 }
 0x362   :  { %7144 = vst [vmem:[#allocation40_spill] sm:$0xff] %v5646_v34 }
 0x363   :  { %3802 = vmatmul.msk.f32.gmra.mxu3 %vm1481_vm5, %v5625_v46 }
 0x365   :  { %v5650_v63 = vpop.permute.xlu0 %2236 }
 0x366   :  { %7146 = vst [vmem:[#allocation42_spill] sm:$0xff] %v5650_v63  ;;  %v5666_v63 = vpop.permute.xlu2 %2108  ;;  %2120 = vrot.lane.b32.xlu2 %v5655_v45, %s4168_s27 }
 0x367   :  { %7148 = vst [vmem:[#allocation44_spill] sm:$0xff] %v5666_v63 }
 0x368   :  { %v1442_v55 = vpop.f32.mrf.mxu2  ;;  %2295 = vrot.lane.b32.xlu1 %v2067_v28, %s4168_s27 }
 0x369   :  { %v5644_v26 = vadd.f32 %v5355_v50, %v1442_v55  ;;  %v5664_v34 = vpop.permute.xlu1 %2382  ;;  %2281 = vrot.lane.b32.xlu0 %v5499_v36, %s4168_s27 }
 0x36a   :  { %7147 = vst [vmem:[#allocation43_spill] sm:$0xff] %v5664_v34 }
 0x36b   :  { %3803 = vmatmul.msk.f32.gmra.mxu3 %vm1481_vm5, %v5644_v26 }
 0x36d   :  { %v5668_v44 = vpop.permute.xlu0 %2283 }
 0x36e   :  { %7149 = vst [vmem:[#allocation45_spill] sm:$0xff] %v5668_v44  ;;  %v5683_v63 = vpop.permute.xlu2 %2170  ;;  %2248 = vrot.lane.b32.xlu2 %v2068_v35, %s4170_s29 }
 0x36f   :  { %7151 = vst [vmem:[#allocation47_spill] sm:$0xff] %v5683_v63 }
 0x370   :  { %v1445_v23 = vpop.f32.mrf.mxu2  ;;  %2328 = vrot.lane.b32.xlu1 %v5402_v53, %s4169_s28  ;;  %v2070_v53 = vld [vmem:[#allocation3 + $0x89] sm:$0xff] }
 0x371   :  { %v5662_v55 = vadd.f32 %v5355_v50, %v1445_v23  ;;  %v5681_v34 = vpop.permute.xlu1 %2112  ;;  %2394 = vrot.lane.b32.xlu0 %v2069_v16, %s4170_s29 }
 0x372   :  { %7150 = vst [vmem:[#allocation46_spill] sm:$0xff] %v5681_v34 }
 0x373   :  { %3804 = vmatmul.msk.f32.gmra.mxu3 %vm1481_vm5, %v5662_v55 }
 0x375   :  { %v5685_v44 = vpop.permute.xlu0 %2332 }
 0x376   :  { %7152 = vst [vmem:[#allocation48_spill] sm:$0xff] %v5685_v44  ;;  %2342 = vrot.lane.b32.xlu2 %v5592_v33, %s4169_s28 }
 0x378   :  { %v1447_v28 = vpop.f32.mrf.mxu2  ;;  %2297 = vrot.lane.b32.xlu1 %v2070_v53, %s4168_s27 }
 0x379   :  { %v5679_v23 = vadd.f32 %v5355_v50, %v1447_v28  ;;  %v5692_v36 = vpop.permute.xlu1 %2285  ;;  %v5694_v28 = vpop.permute.xlu2 %2234  ;;  %2380 = vrot.lane.b32.xlu0 %v5474_v54, %s4170_s29 }
 0x37a   :  { %7153 = vst [vmem:[#allocation49_spill] sm:$0xff] %v5692_v36 }
 0x37b   :  { %3805 = vmatmul.msk.f32.gmra.mxu3 %vm1481_vm5, %v5679_v23  ;;  %7154 = vst [vmem:[#allocation50_spill] sm:$0xff] %v5694_v28 }
 0x37d   :  { %v5696_v34 = vpop.permute.xlu0 %2238 }
 0x37e   :  { %7155 = vst [vmem:[#allocation51_spill] sm:$0xff] %v5696_v34  ;;  %2376 = vrot.lane.b32.xlu2 %v5385_v37, %s4170_s29 }
 0x380   :  { %2330 = vrot.lane.b32.xlu1 %v5514_v41, %s4169_s28 }
 0x381   :  { %v5704_v53 = vpop.permute.xlu1 %2334  ;;  %v5706_v44 = vpop.permute.xlu2 %2110 }
 0x382   :  { %7156 = vst [vmem:[#allocation52_spill] sm:$0xff] %v5704_v53 }
 0x383   :  { %7157 = vst [vmem:[#allocation53_spill] sm:$0xff] %v5706_v44 }
 0x385   :  { %v5708_v16 = vpop.permute.xlu0 %2240 }
 0x386   :  { %7158 = vst [vmem:[#allocation54_spill] sm:$0xff] %v5708_v16  ;;  %2344 = vrot.lane.b32.xlu2 %v2068_v35, %s4169_s28 }
 0x389   :  { %v5715_v28 = vpop.permute.xlu2 %2174 }
 0x38a   :  { %v2115_v41 = vpop.permute.xlu1 %2114  ;;  %7159 = vst [vmem:[#allocation55_spill] sm:$0xff] %v5715_v28 }
 0x38d   :  { %v2337_v63 = vpop.permute.xlu0 %2336 }
 0x38e   :  { %2378 = vrot.lane.b32.xlu2 %v5277_v13, %s4170_s29 }
 0x390   :  { %v1450_v36 = vpop.f32.mrf.mxu2 }
 0x391   :  { %v5713_v34 = vadd.f32 %v5355_v50, %v1450_v36  ;;  %v5723_v53 = vpop.permute.xlu2 %2384  ;;  %v5729_v36 = vpop.f32.mrf.mxu3 }
 0x392   :  { %v2288_v16 = vpop.permute.xlu1 %2287  ;;  %7160 = vst [vmem:[#allocation56_spill] sm:$0xff] %v5723_v53 }
 0x393   :  { %3806 = vmatmul.msk.f32.gmra.mxu3 %vm1481_vm5, %v5713_v34 }
 0x395   :  { %v5725_v37 = vpop.permute.xlu0 %2242 }
 0x396   :  { %7161 = vst [vmem:[#allocation57_spill] sm:$0xff] %v5725_v37  ;;  %v2472_v37 = vsel %vm136_vm0, %v5431_v29, %v2288_v16 }
 0x397   :  { %v2488_v3 = vsel %vm567_vm1, %v2472_v37, %v2337_v63  ;;  %v1460_v63 = vmul.f32 %v5361_v9, %v5361_v9 }
 0x398   :  { %v1452_v54 = vpop.f32.mrf.mxu2 }
 0x399   :  { %v5721_v44 = vadd.f32 %v5355_v50, %v1452_v54  ;;  %v5736_v54 = vpop.permute.xlu2 %2176  ;;  %v5742_v53 = vpop.f32.mrf.mxu3 }
 0x39a   :  { %v2117_v30 = vpop.permute.xlu1 %2116  ;;  %7162 = vst [vmem:[#allocation58_spill] sm:$0xff] %v5736_v54 }
 0x39b   :  { %3807 = vmatmul.msk.f32.gmra.mxu3 %vm1481_vm5, %v5721_v44 }
 0x39d   :  { %v2290_v12 = vpop.permute.xlu0 %2289 }
 0x39e   :  { %v2473_v13 = vsel %vm136_vm0, %v5497_v25, %v2290_v12 }
 0x3a0   :  { %v1455_v28 = vpop.f32.mrf.mxu2 }
 0x3a1   :  { %v5734_v35 = vadd.f32 %v5355_v50, %v1455_v28  ;;  %v2387_v54 = vpop.permute.xlu2 %2386  ;;  %v5758_v16 = vpop.f32.mrf.mxu3 }
 0x3a2   :  { %v5750_v7 = vpop.permute.xlu1 %2324  ;;  %v5753_v5 = vsel %vm584_vm2, %v2488_v3, %v2387_v54  ;;  %v1461_v3 = vmul.f32 %v5377_v58, %v5377_v58 }
 0x3a3   :  { %3808 = vmatmul.msk.f32.gmra.mxu3 %vm1481_vm5, %v5734_v35  ;;  %7163 = vst [vmem:[#allocation59_spill] sm:$0xff] %v5750_v7 }
 0x3a4   :  { %7164 = vst [vmem:[#allocation60_spill] sm:$0xff] %v5753_v5 }
 0x3a5   :  { %v2339_v10 = vpop.permute.xlu0 %2338 }
 0x3a6   :  { %v2489_v29 = vsel %vm567_vm1, %v2473_v13, %v2339_v10  ;;  %v2426_v10 = vsel %vm136_vm0, %v5476_v6, %v2115_v41  ;;  %v2427_v13 = vsel %vm136_vm0, %v5516_v1, %v2117_v30 }
 0x3a8   :  { %v1457_v22 = vpop.f32.mrf.mxu2 }
 0x3a9   :  { %v5748_v28 = vadd.f32 %v5355_v50, %v1457_v22  ;;  %v2179_v22 = vpop.permute.xlu2 %2178  ;;  %v5763_v12 = vpop.f32.mrf.mxu3 }
 0x3aa   :  { %v2292_v25 = vpop.permute.xlu1 %2291  ;;  %v5775_v7 = vsel %vm567_vm1, %v2426_v10, %v2179_v22 }
 0x3ab   :  { %3809 = vmatmul.msk.f32.gmra.mxu3 %vm1481_vm5, %v5748_v28  ;;  %7166 = vst [vmem:[#allocation62_spill] sm:$0xff] %v5775_v7 }
 0x3ad   :  { %v2181_v50 = vpop.permute.xlu0 %2180 }
 0x3b1   :  { %v5767_v54 = vpop.permute.xlu2 %2374  ;;  %v5783_v41 = vpop.f32.mrf.mxu3 }
 0x3b2   :  { %v2183_v37 = vpop.permute.xlu1 %2182  ;;  %7165 = vst [vmem:[#allocation61_spill] sm:$0xff] %v5767_v54  ;;  %v1462_v54 = vmul.f32 %v5421_v11, %v5421_v11 }
 0x3b3   :  { %3810 = vmatmul.msk.f32.gmra.mxu3 %vm1481_vm5, %v1460_v63  ;;  %v2443_v63 = vsel %vm567_vm1, %v2427_v13, %v2181_v50 }
 0x3b5   :  { %v2119_v5 = vpop.permute.xlu0 %2118 }
 0x3b6   :  { %v2428_v52 = vsel %vm136_vm0, %v5637_v15, %v2119_v5  ;;  %v1463_v15 = vmul.f32 %v5443_v42, %v5443_v42 }
 0x3b7   :  { %v2444_v40 = vsel %vm567_vm1, %v2428_v52, %v2183_v37  ;;  %v2474_v52 = vsel %vm136_vm0, %v5529_v38, %v2292_v25 }
 0x3b9   :  { %v2245_v6 = vpop.permute.xlu2 %2244 }
 0x3ba   :  { %v2247_v17 = vpop.permute.xlu1 %2246  ;;  %v5789_v1 = vsel %vm584_vm2, %v2443_v63, %v2245_v6 }
 0x3bb   :  { %3811 = vmatmul.msk.f32.gmra.mxu3 %vm1481_vm5, %v1461_v3  ;;  %v5786_v3 = vsel %vm584_vm2, %v2444_v40, %v2247_v17  ;;  %7168 = vst [vmem:[#allocation64_spill] sm:$0xff] %v5789_v1  ;;  %v5803_v17 = vpop.f32.mrf.mxu3 }
 0x3bc   :  { %7167 = vst [vmem:[#allocation63_spill] sm:$0xff] %v5786_v3  ;;  %v1468_v3 = vmul.f32 %v5625_v46, %v5625_v46 }
 0x3bd   :  { %v2389_v30 = vpop.permute.xlu0 %2388 }
 0x3be   :  { %v5793_v5 = vsel %vm584_vm2, %v2489_v29, %v2389_v30  ;;  %v1464_v29 = vmul.f32 %v5466_v18, %v5466_v18  ;;  %v1465_v30 = vmul.f32 %v5489_v0, %v5489_v0 }
 0x3bf   :  { %7169 = vst [vmem:[#allocation65_spill] sm:$0xff] %v5793_v5  ;;  %v1704_v5 = vsel %vm1481_vm5, %v5803_v17, 0.0 }
 0x3c1   :  { %v2341_v22 = vpop.permute.xlu2 %2340 }
 0x3c2   :  { %v2490_v50 = vsel %vm567_vm1, %v2474_v52, %v2341_v22  ;;  %v2294_v37 = vpop.permute.xlu1 %2293 }
 0x3c3   :  { %3812 = vmatmul.msk.f32.gmra.mxu3 %vm1481_vm5, %v1462_v54 }
 0x3c5   :  { %v5800_v40 = vpop.permute.xlu0 %2277 }
 0x3c6   :  { %v5811_v25 = vpop.f32.mrf.mxu3 }
 0x3c9   :  { %v2121_v54 = vpop.permute.xlu2 %2120 }
 0x3ca   :  { %v2429_v13 = vsel %vm136_vm0, %v5592_v33, %v2121_v54  ;;  %v2185_v63 = vpop.permute.xlu1 %2184  ;;  %v1466_v33 = vmul.f32 %v5567_v27, %v5567_v27 }
 0x3cb   :  { %3813 = vmatmul.msk.f32.gmra.mxu3 %vm1481_vm5, %v1463_v15  ;;  %v2445_v6 = vsel %vm567_vm1, %v2429_v13, %v2185_v63 }
 0x3cd   :  { %v2391_v10 = vpop.permute.xlu0 %2390 }
 0x3ce   :  { %v5809_v38 = vsel %vm584_vm2, %v2490_v50, %v2391_v10  ;;  %v5824_v50 = vpop.f32.mrf.mxu3 }
 0x3cf   :  { %7170 = vst [vmem:[#allocation66_spill] sm:$0xff] %v5809_v38 }
 0x3d1   :  { %v2249_v52 = vpop.permute.xlu2 %2248 }
 0x3d2   :  { %v5819_v15 = vsel %vm584_vm2, %v2445_v6, %v2249_v52  ;;  %v5835_v6 = vpop.permute.xlu1 %2326  ;;  %v1467_v52 = vmul.f32 %v5584_v51, %v5584_v51 }
 0x3d3   :  { %3814 = vmatmul.msk.f32.gmra.mxu3 %vm1481_vm5, %v1464_v29  ;;  %7171 = vst [vmem:[#allocation67_spill] sm:$0xff] %v5819_v15  ;;  %v2475_v29 = vsel %vm136_vm0, %v5575_v43, %v2294_v37 }
 0x3d5   :  { %v5821_v22 = vpop.permute.xlu0 %2279 }
 0x3d6   :  { %7172 = vst [vmem:[#allocation68_spill] sm:$0xff] %v5821_v22 }
 0x3d9   :  { %v2343_v54 = vpop.permute.xlu2 %2342 }
 0x3da   :  { %v2491_v10 = vsel %vm567_vm1, %v2475_v29, %v2343_v54  ;;  %v2296_v29 = vpop.permute.xlu1 %2295 }
 0x3db   :  { %3815 = vmatmul.msk.f32.gmra.mxu3 %vm1481_vm5, %v1465_v30 }
 0x3dd   :  { %v2393_v13 = vpop.permute.xlu0 %2392 }
 0x3de   :  { %v5833_v63 = vsel %vm584_vm2, %v2491_v10, %v2393_v13  ;;  %v2476_v10 = vsel %vm136_vm0, %v5655_v45, %v2296_v29  ;;  %v1469_v45 = vmul.f32 %v5644_v26, %v5644_v26 }
 0x3df   :  { %7173 = vst [vmem:[#allocation69_spill] sm:$0xff] %v5833_v63 }
 0x3e1   :  { %v5839_v15 = vpop.permute.xlu2 %2376 }
 0x3e3   :  { %3816 = vmatmul.msk.f32.gmra.mxu3 %vm1481_vm5, %v1466_v33 }
 0x3e5   :  { %v5841_v43 = vpop.permute.xlu0 %2281 }
 0x3e6   :  { %v1623_v30 = vpop.f32.mrf.mxu3  ;;  %7174 = vst [vmem:[#allocation70_spill] sm:$0xff] %v5841_v43  ;;  %v2071_v43 = vld [vmem:[#allocation3 + $0x8f] sm:$0xff] }
 0x3e7   :  { %v1717_v54 = vsel %vm1481_vm5, %v1623_v30, 0.0  ;;  %2346 = vrot.lane.b32.xlu2 %v2071_v43, %s4169_s28 }
 0x3e9   :  { %v2345_v63 = vpop.permute.xlu2 %2344 }
 0x3ea   :  { %v2492_v38 = vsel %vm567_vm1, %v2476_v10, %v2345_v63  ;;  %v1471_v10 = vmul.f32 %v5679_v23, %v5679_v23 }
 0x3eb   :  { %3817 = vmatmul.msk.f32.gmra.mxu3 %vm1481_vm5, %v1467_v52 }
 0x3ed   :  { %v2395_v1 = vpop.permute.xlu0 %2394 }
 0x3ee   :  { %v1626_v37 = vpop.f32.mrf.mxu3  ;;  %v5853_v52 = vsel %vm584_vm2, %v2492_v38, %v2395_v1  ;;  %v1470_v1 = vmul.f32 %v5662_v55, %v5662_v55 }
 0x3ef   :  { %v1718_v33 = vsel %vm1481_vm5, %v1626_v37, 0.0  ;;  %7175 = vst [vmem:[#allocation71_spill] sm:$0xff] %v5853_v52  ;;  %v1696_v52 = vsel %vm1481_vm5, %v5742_v53, 0.0 }
 0x3f0   :  { %v1719_v13 = vadd.f32 %v1718_v33, %v1717_v54 }
 0x3f3   :  { %3818 = vmatmul.msk.f32.gmra.mxu3 %vm1481_vm5, %v1468_v3  ;;  %v5863_v3 = vld [vmem:[%s7034_s6 + $0x30] sm:$0x33] }
 0x3f6   :  { %v1629_v7 = vpop.f32.mrf.mxu3 }
 0x3f7   :  { %v1720_v30 = vsel %vm1481_vm5, %v1629_v7, 0.0  ;;  %v2591_v7 = vunpack.c.h.b16 %v5863_v3 }
 0x3f8   :  { %v1721_v37 = vadd.f32 %v1720_v30, %v1719_v13  ;;  %v1472_v13 = vmul.f32 %v5713_v34, %v5713_v34 }
 0x3f9   :  { %v2600_v38 = vpack.c.b16 %v2591_v7, %v2591_v7 }
 0x3fb   :  { %3819 = vmatmul.msk.f32.gmra.mxu3 %vm1481_vm5, %v1469_v45  ;;  %v2637_v63 = vsel %vm2632_vm6, %v2600_v38, 0  ;;  %v1474_v38 = vmul.f32 %v5734_v35, %v5734_v35 }
 0x3fc   :  { %2696 = vmatpush.bf16.msra.mxu2 %v2637_v63 }
 0x3fe   :  { %v1632_v29 = vpop.f32.mrf.mxu3 }
 0x3ff   :  { %v1722_v54 = vsel %vm1481_vm5, %v1632_v29, 0.0  ;;  %v1473_v29 = vmul.f32 %v5721_v44, %v5721_v44 }
 0x400   :  { %v1723_v33 = vadd.f32 %v1722_v54, %v1721_v37 }
 0x403   :  { %3820 = vmatmul.msk.f32.gmra.mxu3 %vm1481_vm5, %v1470_v1 }
 0x40b   :  { %3821 = vmatmul.msk.f32.gmra.mxu3 %vm1481_vm5, %v1471_v10 }
 0x413   :  { %3822 = vmatmul.msk.f32.gmra.mxu3 %vm1481_vm5, %v1472_v13 }
 0x416   :  { %v1635_v30 = vpop.f32.mrf.mxu3 }
 0x417   :  { %v1724_v37 = vsel %vm1481_vm5, %v1635_v30, 0.0  ;;  %v3858_v30 = vld [vmem:[%s7034_s6 + $0x24] sm:$0xf0] }
 0x418   :  { %v1725_v45 = vadd.f32 %v1724_v37, %v1723_v33  ;;  %v3936_v33 = vld [vmem:[%s7034_s6 + $0x1c] sm:$0xf]  ;;  %v1475_v37 = vmul.f32 %v5748_v28, %v5748_v28 }
 0x41b   :  { %3823 = vmatmul.msk.f32.gmra.mxu3 %vm1481_vm5, %v1473_v29 }
 0x41e   :  { %v1638_v54 = vpop.f32.mrf.mxu3 }
 0x41f   :  { %v1726_v1 = vsel %vm1481_vm5, %v1638_v54, 0.0 }
 0x420   :  { %v1727_v7 = vadd.f32 %v1726_v1, %v1725_v45  ;;  %v3861_v45 = vor.u32 %v3936_v33, %v3858_v30  ;;  %v1695_v33 = vsel %vm1481_vm5, %v5729_v36, 0.0  ;;  %v1698_v30 = vsel %vm1481_vm5, %v5758_v16, 0.0 }
 0x421   :  { %v1706_v36 = vsel %vm1481_vm5, %v5811_v25, 0.0 }
 0x422   :  { %2697 = vmatpush.bf16.msra.mxu2 %v3861_v45  ;;  %v1697_v45 = vadd.f32 %v1696_v52, %v1695_v33 }
 0x423   :  { %3824 = vmatmul.msk.f32.gmra.mxu3 %vm1481_vm5, %v1474_v38  ;;  %v2072_v38 = vld [vmem:[#allocation3 + $0x90] sm:$0xff] }
 0x424   :  { %2396 = vrot.lane.b32.xlu1 %v2072_v38, %s4170_s29 }
 0x426   :  { %v1641_v63 = vpop.f32.mrf.mxu3 }
 0x427   :  { %v1728_v10 = vsel %vm1481_vm5, %v1641_v63, 0.0 }
 0x428   :  { %v1729_v13 = vadd.f32 %v1728_v10, %v1727_v7 }
 0x42b   :  { %3825 = vmatmul.msk.f32.gmra.mxu3 %vm1481_vm5, %v1475_v37 }
 0x42e   :  { %v1644_v29 = vpop.f32.mrf.mxu3 }
 0x42f   :  { %v1730_v54 = vsel %vm1481_vm5, %v1644_v29, 0.0  ;;  %v1699_v29 = vadd.f32 %v1698_v30, %v1697_v45 }
 0x430   :  { %v5895_v1 = vadd.f32 %v1730_v54, %v1729_v13  ;;  %v1700_v13 = vsel %vm1481_vm5, %v5763_v12, 0.0  ;;  %v1702_v54 = vsel %vm1481_vm5, %v5783_v41, 0.0  ;;  %v1708_v12 = vsel %vm1481_vm5, %v5824_v50, 0.0 }
 0x431   :  { %v1701_v38 = vadd.f32 %v1700_v13, %v1699_v29 }
 0x433   :  { %v1703_v53 = vadd.f32 %v1702_v54, %v1701_v38 }
 0x435   :  { %v1705_v16 = vadd.f32 %v1704_v5, %v1703_v53 }
 0x436   :  { %v1647_v7 = vpop.f32.mrf.mxu3 }
 0x437   :  { %v1707_v52 = vadd.f32 %v1706_v36, %v1705_v16  ;;  %v1739_v17 = vsel %vm1481_vm5, %v1647_v7, 0.0 }
 0x439   :  { %v1709_v33 = vadd.f32 %v1708_v12, %v1707_v52 }
 0x43b   :  { %v1710_v41 = vrot.slane %v1709_v33, 4 }
 0x43d   :  { %v1711_v13 = vadd.f32 %v1710_v41, %v1709_v33 }
 0x43e   :  { %v1650_v63 = vpop.f32.mrf.mxu3 }
 0x43f   :  { %v1740_v45 = vsel %vm1481_vm5, %v1650_v63, 0.0  ;;  %v1712_v5 = vrot.slane %v1711_v13, 2 }
 0x440   :  { %v1741_v54 = vadd.f32 %v1740_v45, %v1739_v17 }
 0x441   :  { %v1713_v12 = vadd.f32 %v1712_v5, %v1711_v13 }
 0x443   :  { %v1714_v41 = vrot.slane %v1713_v12, 1 }
 0x446   :  { %v1653_v10 = vpop.f32.mrf.mxu3 }
 0x447   :  { %v1742_v29 = vsel %vm1481_vm5, %v1653_v10, 0.0 }
 0x448   :  { %v1743_v38 = vadd.f32 %v1742_v29, %v1741_v54 }
 0x44e   :  { %v1656_v37 = vpop.f32.mrf.mxu3 }
 0x44f   :  { %v1744_v25 = vsel %vm1481_vm5, %v1656_v37, 0.0  ;;  %v2567_v37 = vld [vmem:[%s7034_s6 + $0x38] sm:$0x3] }
 0x450   :  { %v1745_v50 = vadd.f32 %v1744_v25, %v1743_v38  ;;  %v2592_v17 = vunpack.c.l.b16 %v2567_v37 }
 0x452   :  { %v2601_v13 = vpack.c.b16 %v2592_v17, %v2592_v17  ;;  %v3852_v17 = vld [vmem:[%s7034_s6 + $0x8] sm:$0xf] }
 0x456   :  { %v1659_v22 = vpop.f32.mrf.mxu3 }
 0x457   :  { %v1746_v53 = vsel %vm1481_vm5, %v1659_v22, 0.0  ;;  %v2590_v22 = vunpack.c.l.b16 %v5863_v3  ;;  %v3933_v3 = vld [vmem:[%s7034_s6 + $0x4] sm:$0xf] }
 0x458   :  { %v1747_v16 = vadd.f32 %v1746_v53, %v1745_v50 }
 0x459   :  { %v2599_v54 = vpack.c.b16 %v2590_v22, %v2590_v22 }
 0x45b   :  { %v2634_v38 = vsel %vm2632_vm6, %v2599_v54, 0 }
 0x45c   :  { %2647 = vmatpush.bf16.msrb.mxu1 %v2634_v38 }
 0x45e   :  { %v1662_v30 = vpop.f32.mrf.mxu3 }
 0x45f   :  { %v1748_v36 = vsel %vm1481_vm5, %v1662_v30, 0.0  ;;  %v1715_v30 = vadd.f32 %v1714_v41, %v1713_v12  ;;  %v3938_v41 = vld [vmem:[%s7034_s6 + $0x28] sm:$0xf0] }
 0x460   :  { %v1749_v52 = vadd.f32 %v1748_v36, %v1747_v16  ;;  %v3846_v36 = vld [vmem:[%s7034_s6 + $0xc] sm:$0xf0] }
 0x461   :  { %v5931_v50 = vmul.f32 0.0017361111, %v1715_v30  ;;  %v3849_v12 = vor.u32 %v3933_v3, %v3846_v36 }
 0x463   :  { %2698 = vmatpush.bf16.msra.mxu2 %v3849_v12  ;;  %v1783_v38 = vmul.f32 %v5931_v50, %v5931_v50 }
 0x466   :  { %v1665_v43 = vpop.f32.mrf.mxu3 }
 0x467   :  { %v1750_v63 = vsel %vm1481_vm5, %v1665_v43, 0.0  ;;  %v2640_v43 = vsel %vm2632_vm6, %v2601_v13, 0 }
 0x468   :  { %v1751_v33 = vadd.f32 %v1750_v63, %v1749_v52  ;;  %2745 = vmatpush.bf16.msra.mxu0 %v2640_v43  ;;  %v3856_v63 = vld [vmem:[%s7034_s6 + $0x18] sm:$0xf]  ;;  %v3937_v52 = vld [vmem:[%s7034_s6 + $0x20] sm:$0xf0] }
 0x46e   :  { %v1668_v7 = vpop.f32.mrf.mxu3 }
 0x46f   :  { %v1752_v10 = vsel %vm1481_vm5, %v1668_v7, 0.0  ;;  %v3857_v7 = vor.u32 %v3937_v52, %v3856_v63 }
 0x470   :  { %v1753_v45 = vadd.f32 %v1752_v10, %v1751_v33  ;;  %v3864_v33 = vld [vmem:[%s7034_s6 + $0x20] sm:$0xf] }
 0x471   :  { %v3844_v10 = vld [vmem:[%s7034_s6] sm:$0xf]  ;;  %v3865_v22 = vor.u32 %v3938_v41, %v3864_v33  ;;  %2648 = vmatpush.bf16.msrb.mxu1 %v3857_v7 }
 0x472   :  { %v1754_v29 = vrot.slane %v1753_v45, 4 }
 0x473   :  { %2746 = vmatpush.bf16.msra.mxu0 %v3865_v22  ;;  %v1812_v22 = vsub.f32 %v5377_v58, %v5931_v50 }
 0x474   :  { %v1755_v25 = vadd.f32 %v1754_v29, %v1753_v45  ;;  %v3934_v45 = vld [vmem:[%s7034_s6 + $0x8] sm:$0xf0]  ;;  %v3935_v29 = vld [vmem:[%s7034_s6 + $0x10] sm:$0xf0] }
 0x475   :  { %v3845_v30 = vor.u32 %v3934_v45, %v3844_v10  ;;  %v3853_v13 = vor.u32 %v3935_v29, %v3852_v17  ;;  %v5972_v17 = vld [vmem:[%s7038_s10 + $0x5] ss:$0 sm:$0xff] }
 0x476   :  { %v1756_v5 = vrot.slane %v1755_v25, 2  ;;  %v5929_v53 = vpop.f32.mrf.mxu3 }
 0x477   :  { %2649 = vmatpush.bf16.msrb.mxu1 %v3845_v30  ;;  %2747 = vmatpush.bf16.msra.mxu0 %v3853_v13  ;;  %v5981_v13 = vld [vmem:[%s7038_s10 + $0x6] ss:$0 sm:$0xff] }
 0x478   :  { %v1757_v16 = vadd.f32 %v1756_v5, %v1755_v25 }
 0x47a   :  { %v1758_v37 = vrot.slane %v1757_v16, 1 }
 0x47c   :  { %v1759_v54 = vadd.f32 %v1758_v37, %v1757_v16  ;;  %v1811_v37 = vsub.f32 %v5361_v9, %v5931_v50 }
 0x47e   :  { %v1760_v25 = vmul.f32 0.0017361111, %v1759_v54  ;;  %v1674_v43 = vpop.f32.mrf.mxu3 }
 0x480   :  { %v1784_v5 = vsub.f32 %v1760_v25, %v1783_v38 }
 0x482   :  { %v1785_v3 = vmax.f32 %v1784_v5, 0.0 }
 0x484   :  { %v1786_v36 = vadd.f32 1e-05, %v1785_v3 }
 0x486   :  { %3978 = vrsqrt.f32 %v1786_v36  ;;  %v1677_v12 = vpop.f32.mrf.mxu3  ;;  %vm1793_vm8 = vweird.f32 %v1786_v36 }
 0x48c   :  { %v3979_v63 = vpop.eup %3978 }
 0x48d   :  { %v1788_v52 = vmul.f32 %v3979_v63, %v1786_v36  ;;  %vm1794_vm7 = vweird.f32 %v3979_v63  ;;  %v1813_v36 = vsub.f32 %v5421_v11, %v5931_v50 }
 0x48e   :  { %v1680_v33 = vpop.f32.mrf.mxu3  ;;  %vm1795_vm9 = vmor %vm1793_vm8, %vm1794_vm7 }
 0x48f   :  { %v1789_v7 = vmul.f32 %v3979_v63, %v1788_v52  ;;  %v1762_v52 = vsel %vm1481_vm5, %v1674_v43, 0.0  ;;  %v1766_v11 = vsel %vm1481_vm5, %v1680_v33, 0.0 }
 0x491   :  { %v1790_v41 = vmul.f32 0.5, %v1789_v7  ;;  %v1732_v7 = vrot.slane %v5895_v1, 4 }
 0x493   :  { %v1791_v16 = vsub.f32 1.5, %v1790_v41 }
 0x495   :  { %v1792_v10 = vmul.f32 %v3979_v63, %v1791_v16 }
 0x496   :  { %v1683_v45 = vpop.f32.mrf.mxu3 }
 0x497   :  { %v5974_v29 = vsel %vm1795_vm9, %v3979_v63, %v1792_v10  ;;  %v1814_v63 = vsub.f32 %v5443_v42, %v5931_v50  ;;  %v1761_v10 = vsel %vm1481_vm5, %v5929_v53, 0.0  ;;  %v1733_v42 = vadd.f32 %v1732_v7, %v5895_v1 }
 0x498   :  { %v1819_v30 = vmul.f32 %v1811_v37, %v5974_v29  ;;  %v1820_v54 = vmul.f32 %v1812_v22, %v5974_v29  ;;  %v1821_v41 = vmul.f32 %v1813_v36, %v5974_v29  ;;  %v1764_v37 = vsel %vm1481_vm5, %v1677_v12, 0.0 }
 0x499   :  { %v1822_v16 = vmul.f32 %v1814_v63, %v5974_v29  ;;  %v1763_v22 = vadd.f32 %v1762_v52, %v1761_v10 }
 0x49a   :  { %v1844_v9 = vmul.f32 %v5972_v17, %v1819_v30  ;;  %v1845_v58 = vmul.f32 %v5972_v17, %v1820_v54  ;;  %v1846_v54 = vmul.f32 %v5972_v17, %v1821_v41 }
 0x49b   :  { %v1765_v30 = vadd.f32 %v1764_v37, %v1763_v22 }
 0x49c   :  { %v1861_v25 = vadd.f32 %v5981_v13, %v1844_v9  ;;  %v1862_v38 = vadd.f32 %v5981_v13, %v1845_v58  ;;  %v1847_v9 = vmul.f32 %v5972_v17, %v1822_v16  ;;  %v1768_v58 = vsel %vm1481_vm5, %v1683_v45, 0.0 }
 0x49d   :  { %v1863_v12 = vadd.f32 %v5981_v13, %v1846_v54  ;;  %v1815_v45 = vsub.f32 %v5466_v18, %v5931_v50 }
 0x49e   :  { %v1686_v5 = vpop.f32.mrf.mxu3  ;;  %v1877_v3 = vpack.c.bf16 %v1862_v38, %v1861_v25  ;;  %v1767_v25 = vadd.f32 %v1766_v11, %v1765_v30  ;;  %v1864_v36 = vadd.f32 %v5981_v13, %v1847_v9 }
 0x49f   :  { %v1770_v38 = vsel %vm1481_vm5, %v1686_v5, 0.0  ;;  %v1816_v5 = vsub.f32 %v5489_v0, %v5931_v50  ;;  %v1823_v11 = vmul.f32 %v1815_v45, %v5974_v29 }
 0x4a0   :  { %3866 = vmatmul.msk.bf16.vlgmr.msrb.gmra.mxu1 %vm1481_vm5, %v1877_v3  ;;  %3874 = vmatmul.msk.bf16.vlgmr.msra.gmra.mxu2 %vm1481_vm5, %v1877_v3  ;;  %v1769_v53 = vadd.f32 %v1768_v58, %v1767_v25  ;;  %v1878_v41 = vpack.c.bf16 %v1864_v36, %v1863_v12 }
 0x4a1   :  { %3882 = vmatmul.msk.bf16.vlgmr.msra.gmra.mxu0 %vm1481_vm5, %v1877_v3  ;;  %v1734_v3 = vrot.slane %v1733_v42, 2  ;;  %v1848_v9 = vmul.f32 %v5972_v17, %v1823_v11 }
 0x4a2   :  { %v1771_v1 = vadd.f32 %v1770_v38, %v1769_v53 }
 0x4a3   :  { %v1735_v63 = vadd.f32 %v1734_v3, %v1733_v42  ;;  %v1824_v42 = vmul.f32 %v1816_v5, %v5974_v29  ;;  %v1865_v0 = vadd.f32 %v5981_v13, %v1848_v9 }
 0x4a5   :  { %v1736_v37 = vrot.slane %v1735_v63, 1  ;;  %v1849_v58 = vmul.f32 %v5972_v17, %v1824_v42 }
 0x4a6   :  { %v1689_v43 = vpop.f32.mrf.mxu3 }
 0x4a7   :  { %v1772_v33 = vsel %vm1481_vm5, %v1689_v43, 0.0  ;;  %v1737_v43 = vadd.f32 %v1736_v37, %v1735_v63  ;;  %v1866_v3 = vadd.f32 %v5981_v13, %v1849_v58  ;;  %v1817_v63 = vsub.f32 %v5567_v27, %v5931_v50 }
 0x4a8   :  { %v1773_v52 = vadd.f32 %v1772_v33, %v1771_v1 }
 0x4a9   :  { %v6022_v18 = vmul.f32 0.0017361111, %v1737_v43  ;;  %v1879_v33 = vpack.c.bf16 %v1866_v3, %v1865_v0 }
 0x4ab   :  { %v1797_v36 = vmul.f32 %v6022_v18, %v6022_v18  ;;  %v1827_v43 = vsub.f32 %v5625_v46, %v6022_v18  ;;  %v1833_v58 = vsub.f32 %v5734_v35, %v6022_v18 }
 0x4ae   :  { %v1692_v7 = vpop.f32.mrf.mxu3 }
 0x4af   :  { %v1774_v16 = vsel %vm1481_vm5, %v1692_v7, 0.0 }
 0x4b0   :  { %v1775_v10 = vadd.f32 %v1774_v16, %v1773_v52  ;;  %3867 = vmatmul.msk.bf16.gmra.mxu1 %vm1481_vm5, %v1878_v41  ;;  %3875 = vmatmul.msk.bf16.gmra.mxu2 %vm1481_vm5, %v1878_v41  ;;  %v1818_v52 = vsub.f32 %v5584_v51, %v5931_v50 }
 0x4b1   :  { %3883 = vmatmul.msk.bf16.gmra.mxu0 %vm1481_vm5, %v1878_v41  ;;  %v1825_v41 = vmul.f32 %v1817_v63, %v5974_v29 }
 0x4b2   :  { %v1776_v22 = vrot.slane %v1775_v10, 4  ;;  %v1826_v16 = vmul.f32 %v1818_v52, %v5974_v29 }
 0x4b3   :  { %v1850_v45 = vmul.f32 %v5972_v17, %v1825_v41  ;;  %v1830_v41 = vsub.f32 %v5679_v23, %v6022_v18  ;;  %v1832_v23 = vsub.f32 %v5721_v44, %v6022_v18  ;;  %v2020_v44 = vld [vmem:[#allocation3 + $0x7] sm:$0xff] }
 0x4b4   :  { %v1777_v30 = vadd.f32 %v1776_v22, %v1775_v10  ;;  %v1851_v5 = vmul.f32 %v5972_v17, %v1826_v16 }
 0x4b5   :  { %v1867_v37 = vadd.f32 %v5981_v13, %v1850_v45 }
 0x4b6   :  { %v1778_v54 = vrot.slane %v1777_v30, 2  ;;  %v1868_v27 = vadd.f32 %v5981_v13, %v1851_v5 }
 0x4b8   :  { %v1779_v25 = vadd.f32 %v1778_v54, %v1777_v30  ;;  %v1880_v51 = vpack.c.bf16 %v1868_v27, %v1867_v37  ;;  %v1828_v54 = vsub.f32 %v5644_v26, %v6022_v18 }
 0x4ba   :  { %v1780_v38 = vrot.slane %v1779_v25, 1 }
 0x4bc   :  { %v1781_v53 = vadd.f32 %v1780_v38, %v1779_v25  ;;  %v1834_v25 = vsub.f32 %v5748_v28, %v6022_v18 }
 0x4be   :  { %v1782_v12 = vmul.f32 0.0017361111, %v1781_v53 }
 0x4c0   :  { %v1798_v1 = vsub.f32 %v1782_v12, %v1797_v36  ;;  %3868 = vmatmul.msk.bf16.gmra.mxu1 %vm1481_vm5, %v1879_v33  ;;  %3876 = vmatmul.msk.bf16.gmra.mxu2 %vm1481_vm5, %v1879_v33 }
 0x4c1   :  { %3884 = vmatmul.msk.bf16.gmra.mxu0 %vm1481_vm5, %v1879_v33 }
 0x4c2   :  { %v1799_v7 = vmax.f32 %v1798_v1, 0.0 }
 0x4c4   :  { %v1800_v10 = vadd.f32 1e-05, %v1799_v7  ;;  %v1829_v7 = vsub.f32 %v5662_v55, %v6022_v18  ;;  %v1831_v55 = vsub.f32 %v5713_v34, %v6022_v18  ;;  %v2414_v34 = vsel %vm136_vm0, %v2020_v44, %v5445_v21  ;;  %v4056_v18 = vld [vmem:[#allocation3 + $0xf] sm:$0xff] }
 0x4c6   :  { %3980 = vrsqrt.f32 %v1800_v10  ;;  %vm1807_vm11 = vweird.f32 %v1800_v10 }
 0x4cc   :  { %v3981_v22 = vpop.eup %3980 }
 0x4cd   :  { %v1802_v11 = vmul.f32 %v3981_v22, %v1800_v10  ;;  %vm1808_vm10 = vweird.f32 %v3981_v22 }
 0x4ce   :  { %vm1809_vm12 = vmor %vm1807_vm11, %vm1808_vm10 }
 0x4cf   :  { %v1803_v50 = vmul.f32 %v3981_v22, %v1802_v11 }
 0x4d0   :  { %3869 = vmatmul.msk.bf16.gmra.mxu1 %vm1481_vm5, %v1880_v51  ;;  %3877 = vmatmul.msk.bf16.gmra.mxu2 %vm1481_vm5, %v1880_v51 }
 0x4d1   :  { %v1804_v42 = vmul.f32 0.5, %v1803_v50  ;;  %3885 = vmatmul.msk.bf16.gmra.mxu0 %vm1481_vm5, %v1880_v51 }
 0x4d3   :  { %v1805_v29 = vsub.f32 1.5, %v1804_v42 }
 0x4d5   :  { %v1806_v30 = vmul.f32 %v3981_v22, %v1805_v29 }
 0x4d7   :  { %v1810_v9 = vsel %vm1809_vm12, %v3981_v22, %v1806_v30 }
 0x4d8   :  { %v1835_v38 = vmul.f32 %v1827_v43, %v1810_v9  ;;  %v1836_v0 = vmul.f32 %v1828_v54, %v1810_v9  ;;  %v1841_v3 = vmul.f32 %v1833_v58, %v1810_v9  ;;  %v1842_v53 = vmul.f32 %v1834_v25, %v1810_v9  ;;  %v4058_v25 = vld [vmem:[%s7029_s1] sm:$0xff] }
 0x4d9   :  { %v1837_v16 = vmul.f32 %v1829_v7, %v1810_v9  ;;  %v1838_v10 = vmul.f32 %v1830_v41, %v1810_v9  ;;  %v1839_v11 = vmul.f32 %v1831_v55, %v1810_v9  ;;  %v1840_v51 = vmul.f32 %v1832_v23, %v1810_v9  ;;  %v4057_v9 = vld [vmem:[#allocation3 + $0x10] sm:$0xff] }
 0x4da   :  { %v1852_v12 = vmul.f32 %v5972_v17, %v1835_v38  ;;  %v1853_v36 = vmul.f32 %v5972_v17, %v1836_v0  ;;  %v1858_v46 = vmul.f32 %v5972_v17, %v1841_v3  ;;  %v1859_v33 = vmul.f32 %v5972_v17, %v1842_v53  ;;  %v4060_v53 = vld [vmem:[%s7029_s1 + $0x18] sm:$0xff] }
 0x4db   :  { %v1854_v45 = vmul.f32 %v5972_v17, %v1837_v16  ;;  %v1855_v5 = vmul.f32 %v5972_v17, %v1838_v10  ;;  %v1856_v50 = vmul.f32 %v5972_v17, %v1839_v11  ;;  %v1857_v42 = vmul.f32 %v5972_v17, %v1840_v51  ;;  %v4065_v10 = vld [vmem:[%s7029_s1 + $0x20] sm:$0xff]  ;;  %v4068_v23 = vld [vmem:[#allocation3 + $0x17] sm:$0xff] }
 0x4dc   :  { %v1869_v26 = vadd.f32 %v5981_v13, %v1852_v12  ;;  %v1870_v1 = vadd.f32 %v5981_v13, %v1853_v36  ;;  %v1875_v35 = vadd.f32 %v5981_v13, %v1858_v46  ;;  %v1876_v28 = vadd.f32 %v5981_v13, %v1859_v33  ;;  %v7176_v11 = vld [vmem:[#allocation10_spill] sm:$0xff] }
 0x4dd   :  { %v1871_v37 = vadd.f32 %v5981_v13, %v1854_v45  ;;  %v1872_v27 = vadd.f32 %v5981_v13, %v1855_v5  ;;  %v1873_v29 = vadd.f32 %v5981_v13, %v1856_v50  ;;  %v1874_v30 = vadd.f32 %v5981_v13, %v1857_v42  ;;  %v7177_v42 = vld [vmem:[#allocation7_spill] sm:$0xff] }
 0x4de   :  { %v1881_v63 = vpack.c.bf16 %v1870_v1, %v1869_v26  ;;  %v1884_v52 = vpack.c.bf16 %v1876_v28, %v1875_v35  ;;  %v2430_v17 = vsel %vm567_vm1, %v2414_v34, %v5447_v60  ;;  %v2415_v54 = vsel %vm136_vm0, %v4056_v18, %v5423_v61  ;;  %v4062_v26 = vld [vmem:[#allocation3 + $0x18] sm:$0xff]  ;;  %v4069_v34 = vld [vmem:[%s7029_s1 + $0x60] sm:$0xff] }
 0x4df   :  { %v1882_v22 = vpack.c.bf16 %v1872_v27, %v1871_v37  ;;  %v1883_v43 = vpack.c.bf16 %v1874_v30, %v1873_v29  ;;  %v2446_v13 = vsel %vm584_vm2, %v2430_v17, %v5470_v32  ;;  %v2462_v58 = vsel %vm136_vm0, %v4057_v9, %v5564_v24  ;;  %v7178_v29 = vld [vmem:[#allocation16_spill] sm:$0xff] }
 0x4e0   :  { %3870 = vmatmul.msk.bf16.gmra.mxu1 %vm1481_vm5, %v1881_v63  ;;  %3878 = vmatmul.msk.bf16.gmra.mxu2 %vm1481_vm5, %v1881_v63  ;;  %v2510_v38 = vmul.f32 %v4058_v25, %v2446_v13  ;;  %v2431_v60 = vsel %vm567_vm1, %v2415_v54, %v5462_v59  ;;  %v2478_v32 = vsel %vm567_vm1, %v2462_v58, %v5581_v39  ;;  %v4059_v59 = vld [vmem:[%s7029_s1 + $0x8] sm:$0xff]  ;;  %v4070_v13 = vld [vmem:[%s7029_s1 + $0x30] sm:$0xff] }
 0x4e1   :  { %3886 = vmatmul.msk.bf16.gmra.mxu0 %vm1481_vm5, %v1881_v63  ;;  %v2447_v61 = vsel %vm584_vm2, %v2431_v60, %v5508_v31  ;;  %v2494_v24 = vsel %vm584_vm2, %v2478_v32, %v5586_v48  ;;  %v4061_v48 = vld [vmem:[#allocation3 + $0x20] sm:$0xff]  ;;  %v2463_v1 = vsel %vm136_vm0, %v4062_v26, %v5525_v4  ;;  %v4071_v25 = vld [vmem:[#allocation3 + $0x30] sm:$0xff]  ;;  %v4074_v26 = vld [vmem:[#allocation3 + $0x28] sm:$0xff] }
 0x4e2   :  { %v2511_v39 = vmul.f32 %v4059_v59, %v2494_v24  ;;  %v2513_v12 = vmul.f32 %v4060_v53, %v2447_v61  ;;  %v2464_v31 = vsel %vm136_vm0, %v4061_v48, %v5543_v47  ;;  %v4063_v47 = vld [vmem:[#allocation3 + $0x1f] sm:$0xff]  ;;  %v7182_v61 = vld [vmem:[#allocation61_spill] sm:$0xff]  ;;  %v7183_v59 = vld [vmem:[#allocation8_spill] sm:$0xff] }
 0x4e3   :  { %v2480_v28 = vsel %vm567_vm1, %v2464_v31, %v5602_v57  ;;  %v2417_v41 = vsel %vm136_vm0, %v4063_v47, %v5493_v8  ;;  %v4064_v57 = vld [vmem:[%s7029_s1 + $0x38] sm:$0xff]  ;;  %v7181_v60 = vld [vmem:[#allocation59_spill] sm:$0xff]  ;;  %v7184_v48 = vld [vmem:[#allocation9_spill] sm:$0xff] }
 0x4e4   :  { %v2496_v7 = vsel %vm584_vm2, %v2480_v28, %v5627_v14  ;;  %v2433_v14 = vsel %vm567_vm1, %v2417_v41, %v5538_v20  ;;  %v4066_v20 = vld [vmem:[#allocation3 + $0x27] sm:$0xff]  ;;  %v4075_v41 = vld [vmem:[#allocation3 + $0x38] sm:$0xff] }
 0x4e5   :  { %v2449_v5 = vsel %vm584_vm2, %v2433_v14, %v5491_v2  ;;  %v2418_v27 = vsel %vm136_vm0, %v4066_v20, %v5512_v62  ;;  %v2416_v2 = vsel %vm136_vm0, %v4068_v23, %v5486_v49  ;;  %v4076_v14 = vld [vmem:[%s7029_s1 + $0x78] sm:$0xff] }
 0x4e6   :  { %v2434_v51 = vsel %vm567_vm1, %v2418_v27, %v7176_v11  ;;  %v2432_v62 = vsel %vm567_vm1, %v2416_v2, %v7177_v42  ;;  %v4079_v2 = vld [vmem:[%s7029_s1 + $0x80] sm:$0xff] }
 0x4e7   :  { %v2450_v30 = vsel %vm584_vm2, %v2434_v51, %v7178_v29  ;;  %v7190_v51 = vld [vmem:[#allocation31_spill] sm:$0xff] }
 0x4e8   :  { %v2522_v17 = vmul.f32 %v4069_v34, %v2450_v30  ;;  %v4080_v30 = vld [vmem:[#allocation3 + $0x40] sm:$0xff]  ;;  %v2379_v34 = vpop.permute.xlu2 %2378 }
 0x4f0   :  { %3871 = vmatmul.msk.bf16.gmra.mxu1 %vm1481_vm5, %v1882_v22  ;;  %3879 = vmatmul.msk.bf16.gmra.mxu2 %vm1481_vm5, %v1882_v22 }
 0x4f1   :  { %3887 = vmatmul.msk.bf16.gmra.mxu0 %vm1481_vm5, %v1882_v22  ;;  %v4067_v22 = vld [vmem:[%s7029_s1 + $0x48] sm:$0xff] }
 0x4f2   :  { %v2519_v55 = vmul.f32 %v4067_v22, %v2449_v5  ;;  %v4078_v22 = vld [vmem:[#allocation3 + $0x37] sm:$0xff] }
 0x500   :  { %3872 = vmatmul.msk.bf16.gmra.mxu1 %vm1481_vm5, %v1883_v43  ;;  %3880 = vmatmul.msk.bf16.gmra.mxu2 %vm1481_vm5, %v1883_v43 }
 0x501   :  { %3888 = vmatmul.msk.bf16.gmra.mxu0 %vm1481_vm5, %v1883_v43  ;;  %v7179_v43 = vld [vmem:[#allocation19_spill] sm:$0xff] }
 0x502   :  { %v2448_v49 = vsel %vm584_vm2, %v2432_v62, %v7179_v43  ;;  %v7191_v62 = vld [vmem:[#allocation32_spill] sm:$0xff] }
 0x503   :  { %v2516_v18 = vmul.f32 %v4070_v13, %v2448_v49  ;;  %v7192_v43 = vld [vmem:[#allocation68_spill] sm:$0xff] }
 0x504   :  { %v2468_v49 = vsel %vm136_vm0, %v4080_v30, %v7192_v43  ;;  %v4087_v30 = vld [vmem:[%s7029_s1 + $0xc8] sm:$0xff] }
 0x510   :  { %3873 = vmatmul.msk.bf16.gmra.mxu1 %vm1481_vm5, %v1884_v52  ;;  %3881 = vmatmul.msk.bf16.gmra.mxu2 %vm1481_vm5, %v1884_v52 }
 0x511   :  { %3889 = vmatmul.msk.bf16.gmra.mxu0 %vm1481_vm5, %v1884_v52  ;;  %v2479_v52 = vsel %vm567_vm1, %v2463_v1, %v5556_v19  ;;  %v2517_v19 = vmul.f32 %v4064_v57, %v2496_v7  ;;  %v7185_v1 = vld [vmem:[#allocation36_spill] sm:$0xff]  ;;  %v7187_v7 = vld [vmem:[#allocation38_spill] sm:$0xff] }
 0x512   :  { %v2495_v4 = vsel %vm584_vm2, %v2479_v52, %v5558_v56 }
 0x513   :  { %v2514_v8 = vmul.f32 %v4065_v10, %v2495_v4  ;;  %v2467_v4 = vsel %vm136_vm0, %v4075_v41, %v5800_v40  ;;  %v4077_v40 = vld [vmem:[%s7029_s1 + $0x50] sm:$0xff] }
 0x51d   :  { %v2651_v21 = vpop.f32.mrf.mxu1 }
 0x51e   :  { %v6105_v0 = vmul.f32 %v2651_v21, %v2510_v38  ;;  %v7180_v38 = vld [vmem:[#allocation37_spill] sm:$0xff] }
 0x51f   :  { %v2466_v21 = vsel %vm136_vm0, %v4071_v25, %v7180_v38 }
 0x520   :  { %2981 = vrot.lane.b32.xlu1 %v6105_v0, %s4168_s27  ;;  %2853 = vrot.lane.b32.xlu2 %v6105_v0, %s4170_s29  ;;  %v2482_v32 = vsel %vm567_vm1, %v2466_v21, %v7181_v60  ;;  %v6297_v60 = vpop.permute.xlu2 %2346 }
 0x521   :  { %v2498_v24 = vsel %vm584_vm2, %v2482_v32, %v7182_v61  ;;  %v4082_v32 = vld [vmem:[%s7029_s1 + $0x98] sm:$0xff] }
 0x523   :  { %v2700_v3 = vpop.f32.mrf.mxu2 }
 0x524   :  { %v6121_v46 = vmul.f32 %v2700_v3, %v2511_v39  ;;  %v4072_v3 = vld [vmem:[#allocation3 + $0x2f] sm:$0xff] }
 0x525   :  { %v2653_v36 = vpop.f32.mrf.mxu1  ;;  %v2419_v39 = vsel %vm136_vm0, %v4072_v3, %v7183_v59 }
 0x526   :  { %v6123_v33 = vmul.f32 %v2653_v36, %v2513_v12  ;;  %v4073_v12 = vld [vmem:[%s7029_s1 + $0x68] sm:$0xff]  ;;  %v2435_v31 = vsel %vm567_vm1, %v2419_v39, %v7184_v48  ;;  %v7194_v48 = vld [vmem:[#allocation47_spill] sm:$0xff] }
 0x527   :  { %v2523_v36 = vmul.f32 %v4073_v12, %v2498_v24  ;;  %v4083_v39 = vld [vmem:[#allocation3 + $0x47] sm:$0xff] }
 0x528   :  { %2855 = vrot.lane.b32.xlu0 %v6123_v33, %s4170_s29  ;;  %3205 = vrot.lane.b32.xlu1 %v6121_v46, %s4168_s27 }
 0x529   :  { %2917 = vrot.lane.b32.xlu2 %v6105_v0, %s4169_s28 }
 0x52b   :  { %v2702_v35 = vpop.f32.mrf.mxu2 }
 0x52c   :  { %v6159_v56 = vmul.f32 %v2702_v35, %v2514_v8  ;;  %v2465_v35 = vsel %vm136_vm0, %v4074_v26, %v7185_v1  ;;  %v2483_v8 = vsel %vm567_vm1, %v2467_v4, %v5835_v6  ;;  %v7189_v6 = vld [vmem:[#allocation11_spill] sm:$0xff]  ;;  %v7195_v26 = vld [vmem:[#allocation50_spill] sm:$0xff] }
 0x52d   :  { %v2656_v63 = vpop.f32.mrf.mxu1  ;;  %v2481_v47 = vsel %vm567_vm1, %v2465_v35, %v7187_v7  ;;  %v2499_v20 = vsel %vm584_vm2, %v2483_v8, %v5839_v15 }
 0x52e   :  { %v6200_v9 = vmul.f32 %v2656_v63, %v2516_v18  ;;  %v7186_v63 = vld [vmem:[#allocation33_spill] sm:$0xff]  ;;  %v2526_v11 = vmul.f32 %v4079_v2, %v2499_v20  ;;  %v2329_v18 = vpop.permute.xlu1 %2328  ;;  %v7200_v2 = vld [vmem:[#allocation43_spill] sm:$0xff] }
 0x52f   :  { %v2451_v52 = vsel %vm584_vm2, %v2435_v31, %v7186_v63 }
 0x530   :  { %2919 = vrot.lane.b32.xlu0 %v6123_v33, %s4169_s28  ;;  %v2525_v10 = vmul.f32 %v4076_v14, %v2451_v52  ;;  %v4084_v52 = vld [vmem:[%s7029_s1 + $0xc0] sm:$0xff]  ;;  %v7196_v14 = vld [vmem:[#allocation45_spill] sm:$0xff] }
 0x531   :  { %3077 = vrot.lane.b32.xlu2 %v6121_v46, %s4170_s29 }
 0x533   :  { %v2705_v16 = vpop.f32.mrf.mxu2 }
 0x534   :  { %v6157_v45 = vmul.f32 %v2705_v16, %v2517_v19  ;;  %v7188_v19 = vld [vmem:[#allocation41_spill] sm:$0xff] }
 0x535   :  { %v2658_v37 = vpop.f32.mrf.mxu1  ;;  %v2497_v16 = vsel %vm584_vm2, %v2481_v47, %v7188_v19 }
 0x536   :  { %3209 = vrot.lane.b32.xlu1 %v6157_v45, %s4168_s27  ;;  %v6178_v50 = vmul.f32 %v2658_v37, %v2519_v55  ;;  %v2520_v37 = vmul.f32 %v4077_v40, %v2497_v16  ;;  %v2420_v55 = vsel %vm136_vm0, %v4078_v22, %v7189_v6  ;;  %v6306_v59 = vpop.permute.xlu1 %2297  ;;  %v4085_v16 = vld [vmem:[#allocation3 + $0x50] sm:$0xff]  ;;  %v4086_v40 = vld [vmem:[#allocation3 + $0x3f] sm:$0xff]  ;;  %v7198_v22 = vld [vmem:[#allocation48_spill] sm:$0xff] }
 0x537   :  { %v2436_v15 = vsel %vm567_vm1, %v2420_v55, %v7190_v51  ;;  %v7199_v55 = vld [vmem:[#allocation34_spill] sm:$0xff] }
 0x538   :  { %3079 = vrot.lane.b32.xlu0 %v6159_v56, %s4170_s29  ;;  %v2452_v29 = vsel %vm584_vm2, %v2436_v15, %v7191_v62  ;;  %v7201_v15 = vld [vmem:[#allocation40_spill] sm:$0xff] }
 0x539   :  { %3141 = vrot.lane.b32.xlu2 %v6121_v46, %s4169_s28 }
 0x53b   :  { %v2707_v58 = vpop.f32.mrf.mxu2 }
 0x53c   :  { %v6259_v27 = vmul.f32 %v2707_v58, %v2520_v37  ;;  %v2484_v58 = vsel %vm567_vm1, %v2468_v49, %v2329_v18  ;;  %v7197_v37 = vld [vmem:[#allocation35_spill] sm:$0xff] }
 0x53d   :  { %v2661_v44 = vpop.f32.mrf.mxu1  ;;  %v2500_v38 = vsel %vm584_vm2, %v2484_v58, %v2379_v34  ;;  %v2421_v20 = vsel %vm136_vm0, %v4086_v40, %v7197_v37  ;;  %v7205_v37 = vld [vmem:[#allocation42_spill] sm:$0xff] }
 0x53e   :  { %2923 = vrot.lane.b32.xlu1 %v6178_v50, %s4169_s28  ;;  %v6198_v54 = vmul.f32 %v2661_v44, %v2522_v17  ;;  %v4081_v17 = vld [vmem:[%s7029_s1 + $0x90] sm:$0xff]  ;;  %v2529_v61 = vmul.f32 %v4082_v32, %v2500_v38  ;;  %v2331_v63 = vpop.permute.xlu1 %2330  ;;  %v4089_v38 = vld [vmem:[%s7029_s1 + $0xa8] sm:$0xff] }
 0x53f   :  { %v2528_v13 = vmul.f32 %v4081_v17, %v2452_v29  ;;  %v2381_v29 = vpop.permute.xlu0 %2380  ;;  %v4088_v17 = vld [vmem:[#allocation3 + $0x48] sm:$0xff] }
 0x540   :  { %3143 = vrot.lane.b32.xlu0 %v6159_v56, %s4169_s28 }
 0x541   :  { %2983 = vrot.lane.b32.xlu2 %v6123_v33, %s4168_s27 }
 0x543   :  { %v2710_v53 = vpop.f32.mrf.mxu2 }
 0x544   :  { %v6229_v28 = vmul.f32 %v2710_v53, %v2523_v36  ;;  %v7193_v53 = vld [vmem:[#allocation18_spill] sm:$0xff] }
 0x545   :  { %v2663_v57 = vpop.f32.mrf.mxu1  ;;  %v2422_v12 = vsel %vm136_vm0, %v4083_v39, %v7193_v53 }
 0x546   :  { %2925 = vrot.lane.b32.xlu1 %v6198_v54, %s4169_s28  ;;  %v6250_v5 = vmul.f32 %v2663_v57, %v2525_v10  ;;  %v2438_v31 = vsel %vm567_vm1, %v2422_v12, %v7194_v48  ;;  %v2470_v10 = vsel %vm136_vm0, %v4085_v16, %v7196_v14  ;;  %v6338_v8 = vpop.permute.xlu1 %2396  ;;  %v2749_v12 = vpop.f32.mrf.mxu0  ;;  %v7203_v48 = vld [vmem:[#allocation44_spill] sm:$0xff]  ;;  %v4093_v14 = vld [vmem:[%s7029_s1 + $0xb0] sm:$0xff] }
 0x547   :  { %v2454_v1 = vsel %vm584_vm2, %v2438_v31, %v7195_v26  ;;  %v2486_v6 = vsel %vm567_vm1, %v2470_v10, %v7198_v22  ;;  %v4092_v26 = vld [vmem:[#allocation3 + $0x19] sm:$0xff] }
 0x548   :  { %2857 = vrot.lane.b32.xlu0 %v6200_v9, %s4170_s29  ;;  %v2534_v7 = vmul.f32 %v4084_v52, %v2454_v1  ;;  %v4094_v22 = vld [vmem:[#allocation3 + $0x58] sm:$0xff] }
 0x549   :  { %3207 = vrot.lane.b32.xlu2 %v6159_v56, %s4168_s27 }
 0x54b   :  { %v2712_v23 = vpop.f32.mrf.mxu2 }
 0x54c   :  { %v6272_v42 = vmul.f32 %v2712_v23, %v2526_v11  ;;  %v2437_v23 = vsel %vm567_vm1, %v2421_v20, %v7199_v55  ;;  %v2502_v11 = vsel %vm584_vm2, %v2486_v6, %v7200_v2  ;;  %v7206_v6 = vld [vmem:[#allocation49_spill] sm:$0xff] }
 0x54d   :  { %v2666_v44 = vpop.f32.mrf.mxu1  ;;  %v2453_v62 = vsel %vm584_vm2, %v2437_v23, %v7201_v15  ;;  %v2535_v43 = vmul.f32 %v4087_v30, %v2502_v11  ;;  %v2471_v55 = vsel %vm136_vm0, %v4094_v22, %v7206_v6 }
 0x54e   :  { %2989 = vrot.lane.b32.xlu1 %v6198_v54, %s4168_s27  ;;  %v6288_v25 = vmul.f32 %v2666_v44, %v2528_v13  ;;  %v7202_v13 = vld [vmem:[#allocation70_spill] sm:$0xff] }
 0x54f   :  { %v2469_v18 = vsel %vm136_vm0, %v4088_v17, %v7202_v13  ;;  %v4096_v17 = vld [vmem:[#allocation3 + $0x57] sm:$0xff] }
 0x550   :  { %2985 = vrot.lane.b32.xlu0 %v6200_v9, %s4168_s27  ;;  %v7209_v13 = vld [vmem:[#allocation53_spill] sm:$0xff] }
 0x551   :  { %2921 = vrot.lane.b32.xlu2 %v6200_v9, %s4169_s28 }
 0x553   :  { %v2715_v21 = vpop.f32.mrf.mxu2 }
 0x554   :  { %v6302_v24 = vmul.f32 %v2715_v21, %v2529_v61  ;;  %v2531_v21 = vmul.f32 %v4089_v38, %v2453_v62  ;;  %v2485_v61 = vsel %vm567_vm1, %v2469_v18, %v2331_v63  ;;  %v2424_v18 = vsel %vm136_vm0, %v4096_v17, %v7209_v13  ;;  %v7214_v13 = vld [vmem:[#allocation58_spill] sm:$0xff] }
 0x555   :  { %v2668_v3 = vpop.f32.mrf.mxu1 }
 0x556   :  { %3149 = vrot.lane.b32.xlu1 %v6229_v28, %s4169_s28  ;;  %v6370_v39 = vmul.f32 %v2668_v3, %v2531_v21  ;;  %v2501_v3 = vsel %vm584_vm2, %v2485_v61, %v2381_v29  ;;  %v7207_v29 = vld [vmem:[#allocation52_spill] sm:$0xff] }
 0x557   :  { %v2532_v10 = vmul.f32 %v4093_v14, %v2501_v3  ;;  %v2487_v30 = vsel %vm567_vm1, %v2471_v55, %v7207_v29  ;;  %v2751_v3 = vpop.f32.mrf.mxu0 }
 0x558   :  { %3081 = vrot.lane.b32.xlu0 %v6157_v45, %s4170_s29 }
 0x559   :  { %3145 = vrot.lane.b32.xlu2 %v6157_v45, %s4169_s28 }
 0x55b   :  { %v2717_v19 = vpop.f32.mrf.mxu2 }
 0x55c   :  { %v6391_v40 = vmul.f32 %v2717_v19, %v2532_v10  ;;  %v4095_v19 = vld [vmem:[%s7029_s1 + $0xd8] sm:$0xff] }
 0x55d   :  { %v2671_v35 = vpop.f32.mrf.mxu1 }
 0x55e   :  { %2991 = vrot.lane.b32.xlu1 %v6250_v5, %s4168_s27  ;;  %v6328_v4 = vmul.f32 %v2671_v35, %v2534_v7 }
 0x560   :  { %2859 = vrot.lane.b32.xlu0 %v6178_v50, %s4170_s29 }
 0x561   :  { %3147 = vrot.lane.b32.xlu2 %v6259_v27, %s4169_s28 }
 0x563   :  { %v2720_v51 = vpop.f32.mrf.mxu2 }
 0x564   :  { %v6361_v58 = vmul.f32 %v2720_v51, %v2535_v43 }
 0x565   :  { %v2673_v23 = vpop.f32.mrf.mxu1 }
 0x566   :  { %3151 = vrot.lane.b32.xlu1 %v6272_v42, %s4169_s28 }
 0x568   :  { %2987 = vrot.lane.b32.xlu0 %v6178_v50, %s4168_s27 }
 0x569   :  { %2861 = vrot.lane.b32.xlu2 %v6198_v54, %s4170_s29 }
 0x56b   :  { %v2722_v38 = vpop.f32.mrf.mxu2 }
 0x56e   :  { %2993 = vrot.lane.b32.xlu1 %v6288_v25, %s4168_s27 }
 0x570   :  { %3083 = vrot.lane.b32.xlu0 %v6259_v27, %s4170_s29 }
 0x571   :  { %2863 = vrot.lane.b32.xlu2 %v6250_v5, %s4170_s29 }
 0x573   :  { %v2725_v29 = vpop.f32.mrf.mxu2 }
 0x576   :  { %3153 = vrot.lane.b32.xlu1 %v6302_v24, %s4169_s28 }
 0x578   :  { %3211 = vrot.lane.b32.xlu0 %v6259_v27, %s4168_s27 }
 0x579   :  { %2927 = vrot.lane.b32.xlu2 %v6250_v5, %s4169_s28 }
 0x57a   :  { %v2854_v36 = vpop.permute.xlu2 %2853 }
 0x57b   :  { %v2901_v47 = vadd.f32 %v2854_v36, %v6105_v0  ;;  %v4090_v36 = vld [vmem:[#allocation3 + $0x4f] sm:$0xff] }
 0x57c   :  { %v2423_v31 = vsel %vm136_vm0, %v4090_v36, %v7203_v48  ;;  %v7210_v48 = vld [vmem:[#allocation55_spill] sm:$0xff] }
 0x57e   :  { %3217 = vrot.lane.b32.xlu1 %v6302_v24, %s4168_s27 }
 0x580   :  { %3085 = vrot.lane.b32.xlu0 %v6229_v28, %s4170_s29 }
 0x581   :  { %3087 = vrot.lane.b32.xlu2 %v6272_v42, %s4170_s29 }
 0x583   :  { %v2918_v41 = vpop.permute.xlu2 %2917 }
 0x584   :  { %v2965_v57 = vadd.f32 %v2918_v41, %v2901_v47 }
 0x586   :  { %2869 = vrot.lane.b32.xlu1 %v6328_v4, %s4170_s29 }
 0x588   :  { %3213 = vrot.lane.b32.xlu0 %v6229_v28, %s4168_s27 }
 0x589   :  { %2929 = vrot.lane.b32.xlu2 %v6288_v25, %s4169_s28 }
 0x58b   :  { %v3078_v0 = vpop.permute.xlu2 %3077 }
 0x58e   :  { %2933 = vrot.lane.b32.xlu1 %v6328_v4, %s4169_s28 }
 0x590   :  { %3215 = vrot.lane.b32.xlu0 %v6272_v42, %s4168_s27 }
 0x591   :  { %3089 = vrot.lane.b32.xlu2 %v6302_v24, %s4170_s29 }
 0x592   :  { %v2982_v49 = vpop.permute.xlu1 %2981 }
 0x593   :  { %v3029_v44 = vadd.f32 %v2982_v49, %v2965_v57  ;;  %v3142_v34 = vpop.permute.xlu2 %3141  ;;  %v7204_v57 = vld [vmem:[#allocation39_spill] sm:$0xff] }
 0x594   :  { %v2439_v16 = vsel %vm567_vm1, %v2423_v31, %v7204_v57  ;;  %v2440_v31 = vsel %vm567_vm1, %v2424_v18, %v7210_v48 }
 0x595   :  { %v3045_v32 = vadd.f32 %v3029_v44, %v6121_v46  ;;  %v4091_v46 = vld [vmem:[%s7029_s1 + $0x10] sm:$0xff]  ;;  %v2455_v20 = vsel %vm584_vm2, %v2439_v16, %v7205_v37 }
 0x596   :  { %3093 = vrot.lane.b32.xlu1 %v6361_v58, %s4170_s29  ;;  %v2512_v1 = vmul.f32 %v4092_v26, %v4091_v46  ;;  %v2537_v11 = vmul.f32 %v4095_v19, %v2455_v20  ;;  %v7211_v26 = vld [vmem:[#allocation51_spill] sm:$0xff] }
 0x597   :  { %v3125_v53 = vadd.f32 %v3078_v0, %v3045_v32  ;;  %v4097_v32 = vld [vmem:[%s7029_s1 + $0xe0] sm:$0xff] }
 0x598   :  { %2865 = vrot.lane.b32.xlu0 %v6288_v25, %s4170_s29  ;;  %v2791_v7 = vmul.f32 %v2749_v12, %v2512_v1  ;;  %v6407_v43 = vmul.f32 %v2673_v23, %v2537_v11  ;;  %v2456_v1 = vsel %vm584_vm2, %v2440_v31, %v7211_v26  ;;  %v4103_v31 = vld [vmem:[%s7029_s1 + $0x108] sm:$0xff] }
 0x599   :  { %v3189_v35 = vadd.f32 %v3142_v34, %v3125_v53  ;;  %2931 = vrot.lane.b32.xlu2 %v6370_v39, %s4169_s28 }
 0x59a   :  { %v3206_v63 = vpop.permute.xlu1 %3205  ;;  %v2856_v52 = vpop.permute.xlu0 %2855 }
 0x59b   :  { %v3253_v47 = vadd.f32 %v3206_v63, %v3189_v35  ;;  %v2984_v41 = vpop.permute.xlu2 %2983  ;;  %v2902_v2 = vadd.f32 %v2856_v52, %v6123_v33  ;;  %v7208_v33 = vld [vmem:[#allocation56_spill] sm:$0xff]  ;;  %v2676_v35 = vpop.f32.mrf.mxu1  ;;  %v4098_v63 = vld [vmem:[%s7029_s1 + $0xf0] sm:$0xff] }
 0x59c   :  { %v2503_v44 = vsel %vm584_vm2, %v2487_v30, %v7208_v33  ;;  %v2540_v52 = vmul.f32 %v4098_v63, %v2456_v1  ;;  %v7213_v30 = vld [vmem:[#allocation60_spill] sm:$0xff] }
 0x59d   :  { %v6387_v0 = vadd.f32 %v3253_v47, %v2791_v7  ;;  %v2538_v61 = vmul.f32 %v4097_v32, %v2503_v44  ;;  %v4099_v47 = vld [vmem:[%s7029_s1 + $0x28] sm:$0xff] }
 0x59e   :  { %3157 = vrot.lane.b32.xlu1 %v6361_v58, %s4169_s28  ;;  %v6445_v10 = vmul.f32 %v2676_v35, %v2540_v52  ;;  %v2727_v35 = vpop.f32.mrf.mxu2  ;;  %v2754_v52 = vpop.f32.mrf.mxu0 }
 0x59f   :  { %v6427_v46 = vmul.f32 %v2722_v38, %v2538_v61  ;;  %v7215_v61 = vld [vmem:[#allocation54_spill] sm:$0xff] }
 0x5a0   :  { %2867 = vrot.lane.b32.xlu0 %v6370_v39, %s4170_s29 }
 0x5a1   :  { %3091 = vrot.lane.b32.xlu2 %v6391_v40, %s4170_s29 }
 0x5a2   :  { %v2920_v51 = vpop.permute.xlu0 %2919 }
 0x5a3   :  { %v3208_v15 = vpop.permute.xlu2 %3207  ;;  %v2966_v62 = vadd.f32 %v2920_v51, %v2902_v2  ;;  %v4101_v51 = vld [vmem:[#allocation3 + $0x5f] sm:$0xff] }
 0x5a5   :  { %v3030_v49 = vadd.f32 %v2984_v41, %v2966_v62  ;;  %v4100_v41 = vld [vmem:[#allocation3 + $0x21] sm:$0xff] }
 0x5a6   :  { %2999 = vrot.lane.b32.xlu1 %v6407_v43, %s4168_s27  ;;  %v2515_v57 = vmul.f32 %v4100_v41, %v4099_v47  ;;  %v4104_v47 = vld [vmem:[%s7029_s1 + $0x110] sm:$0xff] }
 0x5a7   :  { %v3046_v21 = vadd.f32 %v3030_v49, %v6159_v56  ;;  %v7216_v41 = vld [vmem:[#allocation65_spill] sm:$0xff] }
 0x5a8   :  { %v6413_v34 = vpop.permute.xlu1 %3209  ;;  %2995 = vrot.lane.b32.xlu0 %v6370_v39, %s4168_s27  ;;  %v2794_v37 = vmul.f32 %v2751_v3, %v2515_v57  ;;  %v2544_v57 = vmul.f32 %v4104_v47, %v7216_v41 }
 0x5a9   :  { %3155 = vrot.lane.b32.xlu2 %v6391_v40, %s4169_s28 }
 0x5aa   :  { %v3080_v53 = vpop.permute.xlu0 %3079 }
 0x5ab   :  { %v2922_v12 = vpop.permute.xlu2 %2921  ;;  %v3126_v36 = vadd.f32 %v3080_v53, %v3046_v21 }
 0x5ae   :  { %3223 = vrot.lane.b32.xlu1 %v6427_v46, %s4168_s27 }
 0x5b0   :  { %v6433_v56 = vpop.permute.xlu1 %2923  ;;  %2997 = vrot.lane.b32.xlu0 %v6328_v4, %s4168_s27 }
 0x5b1   :  { %2871 = vrot.lane.b32.xlu2 %v6407_v43, %s4170_s29 }
 0x5b2   :  { %v3144_v7 = vpop.permute.xlu0 %3143 }
 0x5b3   :  { %v3146_v16 = vpop.permute.xlu2 %3145  ;;  %v3190_v14 = vadd.f32 %v3144_v7, %v3126_v36 }
 0x5b5   :  { %v3254_v20 = vadd.f32 %v3208_v15, %v3190_v14  ;;  %v7212_v15 = vld [vmem:[#allocation46_spill] sm:$0xff]  ;;  %v4106_v14 = vld [vmem:[#allocation3 + $0x29] sm:$0xff] }
 0x5b6   :  { %2873 = vrot.lane.b32.xlu1 %v6445_v10, %s4170_s29  ;;  %v2425_v62 = vsel %vm136_vm0, %v4101_v51, %v7212_v15  ;;  %v7218_v51 = vld [vmem:[#allocation62_spill] sm:$0xff] }
 0x5b7   :  { %v6449_v22 = vadd.f32 %v3254_v20, %v2794_v37  ;;  %v2441_v18 = vsel %vm567_vm1, %v2425_v62, %v7214_v13 }
 0x5b8   :  { %v2926_v6 = vpop.permute.xlu1 %2925  ;;  %3221 = vrot.lane.b32.xlu0 %v6361_v58, %s4168_s27  ;;  %v2457_v53 = vsel %vm584_vm2, %v2441_v18, %v7215_v61 }
 0x5b9   :  { %2935 = vrot.lane.b32.xlu2 %v6407_v43, %s4169_s28  ;;  %v2543_v26 = vmul.f32 %v4103_v31, %v2457_v53 }
 0x5ba   :  { %v2858_v55 = vpop.permute.xlu0 %2857 }
 0x5bb   :  { %v6455_v23 = vpop.permute.xlu2 %3147  ;;  %v2903_v2 = vadd.f32 %v2858_v55, %v6200_v9  ;;  %v4102_v9 = vld [vmem:[%s7029_s1 + $0xf8] sm:$0xff] }
 0x5bc   :  { %v2541_v49 = vmul.f32 %v4102_v9, %v7213_v30 }
 0x5bd   :  { %v2967_v19 = vadd.f32 %v2922_v12, %v2903_v2  ;;  %v2678_v12 = vpop.f32.mrf.mxu1 }
 0x5be   :  { %3001 = vrot.lane.b32.xlu1 %v6445_v10, %s4168_s27  ;;  %v6472_v38 = vmul.f32 %v2725_v29, %v2541_v49  ;;  %v6491_v7 = vmul.f32 %v2678_v12, %v2543_v26  ;;  %v4107_v49 = vld [vmem:[%s7029_s1 + $0x120] sm:$0xff]  ;;  %v7219_v12 = vld [vmem:[#allocation64_spill] sm:$0xff] }
 0x5c0   :  { %v2990_v11 = vpop.permute.xlu1 %2989  ;;  %2937 = vrot.lane.b32.xlu0 %v6445_v10, %s4169_s28 }
 0x5c1   :  { %3095 = vrot.lane.b32.xlu2 %v6427_v46, %s4170_s29 }
 0x5c2   :  { %v2986_v33 = vpop.permute.xlu0 %2985 }
 0x5c3   :  { %v2862_v44 = vpop.permute.xlu2 %2861  ;;  %v3031_v17 = vadd.f32 %v2986_v33, %v2967_v19 }
 0x5c4   :  { %v2905_v21 = vadd.f32 %v2862_v44, %v6198_v54 }
 0x5c5   :  { %v3047_v54 = vadd.f32 %v3031_v17, %v6157_v45  ;;  %v4105_v45 = vld [vmem:[%s7029_s1 + $0x40] sm:$0xff]  ;;  %v2681_v62 = vpop.f32.mrf.mxu1 }
 0x5c6   :  { %v2969_v32 = vadd.f32 %v2926_v6, %v2905_v21  ;;  %3097 = vrot.lane.b32.xlu1 %v6472_v38, %s4170_s29  ;;  %v2518_v37 = vmul.f32 %v4106_v14, %v4105_v45  ;;  %v6500_v6 = vmul.f32 %v2727_v35, %v2544_v57  ;;  %v2730_v35 = vpop.f32.mrf.mxu2  ;;  %v2756_v57 = vpop.f32.mrf.mxu0  ;;  %v4109_v14 = vld [vmem:[%s7029_s1 + $0x58] sm:$0xff] }
 0x5c8   :  { %v6479_v36 = vpop.permute.xlu1 %3149  ;;  %3161 = vrot.lane.b32.xlu0 %v6472_v38, %s4169_s28  ;;  %v6483_v48 = vadd.f32 %v2990_v11, %v2969_v32  ;;  %v2797_v55 = vmul.f32 %v2754_v52, %v2518_v37  ;;  %v7217_v11 = vld [vmem:[#allocation57_spill] sm:$0xff] }
 0x5c9   :  { %3159 = vrot.lane.b32.xlu2 %v6427_v46, %s4169_s28  ;;  %v2458_v15 = vsel %vm584_vm2, %v7218_v51, %v7217_v11 }
 0x5ca   :  { %v3082_v1 = vpop.permute.xlu0 %3081  ;;  %v2546_v33 = vmul.f32 %v4107_v49, %v2458_v15 }
 0x5cb   :  { %v2864_v3 = vpop.permute.xlu2 %2863  ;;  %v3127_v63 = vadd.f32 %v3082_v1, %v3047_v54 }
 0x5cc   :  { %v6520_v13 = vmul.f32 %v2681_v62, %v2546_v33 }
 0x5cd   :  { %v3191_v20 = vadd.f32 %v3146_v16, %v3127_v63  ;;  %v2906_v16 = vadd.f32 %v2864_v3, %v6250_v5  ;;  %v2683_v32 = vpop.f32.mrf.mxu1 }
 0x5ce   :  { %2875 = vrot.lane.b32.xlu1 %v6491_v7, %s4170_s29  ;;  %v2732_v11 = vpop.f32.mrf.mxu2 }
 0x5cf   :  { %v3255_v2 = vadd.f32 %v6413_v34, %v3191_v20  ;;  %v7220_v20 = vld [vmem:[#allocation66_spill] sm:$0xff] }
 0x5d0   :  { %v2992_v19 = vpop.permute.xlu1 %2991  ;;  %3163 = vrot.lane.b32.xlu0 %v6500_v6, %s4169_s28 }
 0x5d1   :  { %v6510_v29 = vadd.f32 %v3255_v2, %v2797_v55  ;;  %3225 = vrot.lane.b32.xlu2 %v6472_v38, %s4168_s27 }
 0x5d2   :  { %v2860_v9 = vpop.permute.xlu0 %2859 }
 0x5d3   :  { %v2928_v30 = vpop.permute.xlu2 %2927  ;;  %v2904_v34 = vadd.f32 %v2860_v9, %v6178_v50  ;;  %v7221_v9 = vld [vmem:[#allocation69_spill] sm:$0xff] }
 0x5d4   :  { %v2970_v44 = vadd.f32 %v2928_v30, %v2906_v16  ;;  %v4112_v16 = vld [vmem:[%s7029_s1 + $0x140] sm:$0xff] }
 0x5d5   :  { %v2968_v17 = vadd.f32 %v6433_v56, %v2904_v34  ;;  %v4108_v56 = vld [vmem:[%s7029_s1 + $0x138] sm:$0xff]  ;;  %v2550_v30 = vmul.f32 %v4112_v16, %v7221_v9  ;;  %v4119_v9 = vld [vmem:[#allocation3 + $0x88] sm:$0xff] }
 0x5d6   :  { %v3034_v18 = vadd.f32 %v2992_v19, %v2970_v44  ;;  %3003 = vrot.lane.b32.xlu1 %v6491_v7, %s4168_s27  ;;  %v2549_v54 = vmul.f32 %v4108_v56, %v7219_v12  ;;  %v3049_v44 = vadd.f32 %v6483_v48, %v6229_v28  ;;  %v2759_v56 = vpop.f32.mrf.mxu0  ;;  %v4114_v48 = vld [vmem:[%s7029_s1 + $0x70] sm:$0xff] }
 0x5d7   :  { %v6574_v49 = vmul.f32 %v2732_v11, %v2550_v30 }
 0x5d8   :  { %2877 = vrot.lane.b32.xlu0 %v6520_v13, %s4170_s29  ;;  %v3152_v5 = vpop.permute.xlu1 %3151  ;;  %v3050_v50 = vadd.f32 %v3034_v18, %v6272_v42  ;;  %v6533_v26 = vmul.f32 %v2683_v32, %v2549_v54  ;;  %v2686_v18 = vpop.f32.mrf.mxu1  ;;  %v7222_v32 = vld [vmem:[#allocation63_spill] sm:$0xff] }
 0x5d9   :  { %2939 = vrot.lane.b32.xlu2 %v6491_v7, %s4169_s28  ;;  %v4115_v54 = vld [vmem:[#allocation3 + $0x39] sm:$0xff] }
 0x5da   :  { %v2988_v21 = vpop.permute.xlu0 %2987 }
 0x5db   :  { %v3088_v61 = vpop.permute.xlu2 %3087  ;;  %v3032_v53 = vadd.f32 %v2988_v21, %v2968_v17  ;;  %v4113_v21 = vld [vmem:[%s7029_s1 + $0x150] sm:$0xff] }
 0x5dc   :  { %v3130_v31 = vadd.f32 %v3088_v61, %v3050_v50  ;;  %v2552_v61 = vmul.f32 %v4113_v21, %v7222_v32  ;;  %v7224_v21 = vld [vmem:[#allocation67_spill] sm:$0xff] }
 0x5dd   :  { %v3048_v3 = vadd.f32 %v3032_v53, %v6259_v27  ;;  %v4110_v27 = vld [vmem:[#allocation3 + $0x31] sm:$0xff] }
 0x5de   :  { %3099 = vrot.lane.b32.xlu1 %v6500_v6, %s4170_s29  ;;  %v6537_v1 = vadd.f32 %v3152_v5, %v3130_v31  ;;  %v2521_v37 = vmul.f32 %v4110_v27, %v4109_v14  ;;  %v6593_v12 = vmul.f32 %v2686_v18, %v2552_v61  ;;  %v2524_v31 = vmul.f32 %v4115_v54, %v4114_v48 }
 0x5e0   :  { %2879 = vrot.lane.b32.xlu0 %v6533_v26, %s4170_s29  ;;  %v6541_v42 = vpop.permute.xlu1 %2993  ;;  %v2800_v19 = vmul.f32 %v2756_v57, %v2521_v37  ;;  %v7223_v57 = vld [vmem:[#allocation71_spill] sm:$0xff] }
 0x5e1   :  { %2941 = vrot.lane.b32.xlu2 %v6520_v13, %s4169_s28 }
 0x5e2   :  { %v3084_v63 = vpop.permute.xlu0 %3083 }
 0x5e3   :  { %v6546_v52 = vpop.permute.xlu2 %2929  ;;  %v3128_v47 = vadd.f32 %v3084_v63, %v3048_v3  ;;  %v2735_v3 = vpop.f32.mrf.mxu2 }
 0x5e5   :  { %v3192_v41 = vadd.f32 %v6455_v23, %v3128_v47  ;;  %v4111_v23 = vld [vmem:[%s7029_s1 + $0x128] sm:$0xff] }
 0x5e6   :  { %3227 = vrot.lane.b32.xlu1 %v6500_v6, %s4168_s27  ;;  %v2547_v55 = vmul.f32 %v4111_v23, %v7220_v20  ;;  %v2761_v20 = vpop.f32.mrf.mxu0 }
 0x5e8   :  { %2943 = vrot.lane.b32.xlu0 %v6533_v26, %s4169_s28  ;;  %v6553_v45 = vpop.permute.xlu1 %3153  ;;  %v6566_v62 = vmul.f32 %v2730_v35, %v2547_v55  ;;  %v2803_v35 = vmul.f32 %v2759_v56, %v2524_v31  ;;  %v4121_v31 = vld [vmem:[%s7029_s1 + $0x170] sm:$0xff] }
 0x5e9   :  { %3005 = vrot.lane.b32.xlu2 %v6520_v13, %s4168_s27 }
 0x5ea   :  { %v3212_v2 = vpop.permute.xlu0 %3211 }
 0x5eb   :  { %v6564_v51 = vpop.permute.xlu2 %3089  ;;  %v3256_v15 = vadd.f32 %v3212_v2, %v3192_v41  ;;  %v4116_v41 = vld [vmem:[%s7029_s1 + $0x158] sm:$0xff]  ;;  %v4117_v2 = vld [vmem:[%s7029_s1 + $0x88] sm:$0xff]  ;;  %v2737_v48 = vpop.f32.mrf.mxu2 }
 0x5ec   :  { %v2553_v14 = vmul.f32 %v4116_v41, %v7223_v57 }
 0x5ed   :  { %v6572_v34 = vadd.f32 %v3256_v15, %v2800_v19  ;;  %v4118_v19 = vld [vmem:[#allocation3 + $0x41] sm:$0xff] }
 0x5ee   :  { %3101 = vrot.lane.b32.xlu1 %v6566_v62, %s4170_s29  ;;  %v6612_v37 = vmul.f32 %v2735_v3, %v2553_v14  ;;  %v2527_v11 = vmul.f32 %v4118_v19, %v4117_v2  ;;  %v4123_v2 = vld [vmem:[#allocation3 + $0x49] sm:$0xff] }
 0x5f0   :  { %v6578_v33 = vpop.permute.xlu1 %3217  ;;  %3103 = vrot.lane.b32.xlu0 %v6574_v49, %s4170_s29  ;;  %v2806_v30 = vmul.f32 %v2761_v20, %v2527_v11  ;;  %v2764_v20 = vpop.f32.mrf.mxu0 }
 0x5f1   :  { %3165 = vrot.lane.b32.xlu2 %v6566_v62, %s4169_s28 }
 0x5f2   :  { %v3086_v17 = vpop.permute.xlu0 %3085 }
 0x5f3   :  { %v6586_v5 = vpop.permute.xlu2 %2931  ;;  %v3129_v50 = vadd.f32 %v3086_v17, %v3049_v44  ;;  %v2688_v44 = vpop.f32.mrf.mxu1 }
 0x5f5   :  { %v3193_v53 = vadd.f32 %v6479_v36, %v3129_v50  ;;  %v4120_v50 = vld [vmem:[%s7029_s1 + $0x168] sm:$0xff] }
 0x5f6   :  { %3229 = vrot.lane.b32.xlu1 %v6566_v62, %s4168_s27  ;;  %v2555_v32 = vmul.f32 %v4120_v50, %v7224_v21 }
 0x5f8   :  { %v2870_v28 = vpop.permute.xlu1 %2869  ;;  %2945 = vrot.lane.b32.xlu0 %v6593_v12, %s4169_s28  ;;  %v6637_v56 = vmul.f32 %v2688_v44, %v2555_v32 }
 0x5f9   :  { %3007 = vrot.lane.b32.xlu2 %v6533_v26, %s4168_s27  ;;  %v2909_v23 = vadd.f32 %v2870_v28, %v6328_v4  ;;  %v2477_v4 = vsel %vm136_vm0, %v4119_v9, %v6306_v59 }
 0x5fa   :  { %v3214_v36 = vpop.permute.xlu0 %3213 }
 0x5fb   :  { %v6604_v63 = vpop.permute.xlu2 %3091  ;;  %v3257_v47 = vadd.f32 %v3214_v36, %v3193_v53  ;;  %v2493_v53 = vsel %vm567_vm1, %v2477_v4, %v6297_v60 }
 0x5fd   :  { %v6610_v27 = vadd.f32 %v3257_v47, %v2803_v35 }
 0x5fe   :  { %3231 = vrot.lane.b32.xlu1 %v6574_v49, %s4168_s27 }
 0x600   :  { %v2934_v55 = vpop.permute.xlu1 %2933  ;;  %3105 = vrot.lane.b32.xlu0 %v6612_v37, %s4170_s29 }
 0x601   :  { %v6622_v15 = vadd.f32 %v2934_v55, %v2909_v23  ;;  %3167 = vrot.lane.b32.xlu2 %v6574_v49, %s4169_s28 }
 0x602   :  { %v3216_v16 = vpop.permute.xlu0 %3215 }
 0x603   :  { %v3156_v17 = vpop.permute.xlu2 %3155  ;;  %v3258_v18 = vadd.f32 %v3216_v16, %v6537_v1  ;;  %v2509_v1 = vsel %vm584_vm2, %v2493_v53, %v6338_v8 }
 0x604   :  { %v2556_v36 = vmul.f32 %v4121_v31, %v2509_v1 }
 0x605   :  { %v6633_v61 = vadd.f32 %v3258_v18, %v2806_v30 }
 0x606   :  { %2881 = vrot.lane.b32.xlu1 %v6593_v12, %s4170_s29  ;;  %v6652_v3 = vmul.f32 %v2737_v48, %v2556_v36 }
 0x608   :  { %v3094_v59 = vpop.permute.xlu1 %3093  ;;  %2947 = vrot.lane.b32.xlu0 %v6637_v56, %s4169_s28 }
 0x609   :  { %3009 = vrot.lane.b32.xlu2 %v6593_v12, %s4168_s27 }
 0x60a   :  { %v2866_v28 = vpop.permute.xlu0 %2865 }
 0x60b   :  { %v2872_v54 = vpop.permute.xlu2 %2871  ;;  %v2907_v60 = vadd.f32 %v2866_v28, %v6288_v25 }
 0x60c   :  { %v2910_v41 = vadd.f32 %v2872_v54, %v6407_v43 }
 0x60d   :  { %v2971_v35 = vadd.f32 %v6546_v52, %v2907_v60 }
 0x60e   :  { %2883 = vrot.lane.b32.xlu1 %v6637_v56, %s4170_s29 }
 0x60f   :  { %v3035_v8 = vadd.f32 %v6541_v42, %v2971_v35  ;;  %v4122_v42 = vld [vmem:[%s7029_s1 + $0xa0] sm:$0xff] }
 0x610   :  { %v3158_v47 = vpop.permute.xlu1 %3157  ;;  %3107 = vrot.lane.b32.xlu0 %v6652_v3, %s4170_s29  ;;  %v2530_v19 = vmul.f32 %v4123_v2, %v4122_v42 }
 0x611   :  { %v3051_v25 = vadd.f32 %v3035_v8, %v6302_v24  ;;  %3169 = vrot.lane.b32.xlu2 %v6612_v37, %s4169_s28 }
 0x612   :  { %v2868_v57 = vpop.permute.xlu0 %2867  ;;  %v2809_v43 = vmul.f32 %v2764_v20, %v2530_v19  ;;  %v3940_v20 = vld [vmem:[%s7035_s7 + $0x8] sm:$0xff] }
 0x613   :  { %v3131_v52 = vadd.f32 %v6564_v51, %v3051_v25  ;;  %v2936_v14 = vpop.permute.xlu2 %2935  ;;  %v2908_v23 = vadd.f32 %v2868_v57, %v6370_v39  ;;  %3503 = vmatpush.bf16.msra.mxu1 %v3940_v20  ;;  %v4128_v20 = vld [vmem:[%s7029_s1 + $0x100] sm:$0xff] }
 0x614   :  { %v2974_v55 = vadd.f32 %v2936_v14, %v2910_v41 }
 0x615   :  { %v3195_v24 = vadd.f32 %v6553_v45, %v3131_v52  ;;  %v2972_v11 = vadd.f32 %v6586_v5, %v2908_v23 }
 0x616   :  { %3011 = vrot.lane.b32.xlu1 %v6637_v56, %s4168_s27 }
 0x617   :  { %v3259_v51 = vadd.f32 %v6578_v33, %v3195_v24 }
 0x618   :  { %v3000_v16 = vpop.permute.xlu1 %2999  ;;  %3171 = vrot.lane.b32.xlu0 %v6652_v3, %s4169_s28 }
 0x619   :  { %v6675_v39 = vadd.f32 %v3259_v51, %v2809_v43  ;;  %v3038_v9 = vadd.f32 %v3000_v16, %v2974_v55  ;;  %3233 = vrot.lane.b32.xlu2 %v6612_v37, %s4168_s27 }
 0x61a   :  { %v2996_v4 = vpop.permute.xlu0 %2995 }
 0x61b   :  { %v3054_v45 = vadd.f32 %v3038_v9, %v6427_v46  ;;  %v3096_v5 = vpop.permute.xlu2 %3095  ;;  %v3036_v30 = vadd.f32 %v2996_v4, %v2972_v11 }
 0x61d   :  { %v3134_v44 = vadd.f32 %v3096_v5, %v3054_v45  ;;  %v3052_v18 = vadd.f32 %v3036_v30, %v6391_v40 }
 0x61e   :  { %3235 = vrot.lane.b32.xlu1 %v6652_v3, %s4168_s27 }
 0x61f   :  { %v3132_v33 = vadd.f32 %v6604_v63, %v3052_v18 }
 0x620   :  { %v3224_v50 = vpop.permute.xlu1 %3223  ;;  %3219 = vrot.lane.b32.xlu0 %v6391_v40, %s4168_s27 }
 0x621   :  { %v6686_v21 = vadd.f32 %v3156_v17, %v3132_v33 }
 0x622   :  { %v2998_v32 = vpop.permute.xlu0 %2997 }
 0x623   :  { %v3160_v53 = vpop.permute.xlu2 %3159  ;;  %v3037_v46 = vadd.f32 %v2998_v32, %v6622_v15  ;;  %v6695_v15 = vpop.f32.mrf.mxu0  ;;  %v6708_v32 = vld [vmem:[%s7038_s10 + $0x9] ss:$0 sm:$0xff] }
 0x624   :  { %v3198_v1 = vadd.f32 %v3160_v53, %v3134_v44 }
 0x625   :  { %v3053_v28 = vadd.f32 %v3037_v46, %v6361_v58 }
 0x626   :  { %v6690_v48 = vadd.f32 %v3224_v50, %v3198_v1 }
 0x627   :  { %v3133_v54 = vadd.f32 %v3094_v59, %v3053_v28 }
 0x628   :  { %v2874_v60 = vpop.permute.xlu1 %2873 }
 0x629   :  { %v3197_v31 = vadd.f32 %v3158_v47, %v3133_v54  ;;  %v2911_v40 = vadd.f32 %v2874_v60, %v6445_v10 }
 0x62a   :  { %v3222_v36 = vpop.permute.xlu0 %3221 }
 0x62b   :  { %v3226_v63 = vpop.permute.xlu2 %3225  ;;  %v6692_v35 = vadd.f32 %v3222_v36, %v3197_v31  ;;  %v2769_v10 = vpop.f32.mrf.mxu0 }
 0x630   :  { %v3002_v8 = vpop.permute.xlu1 %3001 }
 0x632   :  { %v2938_v17 = vpop.permute.xlu0 %2937 }
 0x633   :  { %v2975_v25 = vadd.f32 %v2938_v17, %v2911_v40  ;;  %v2940_v41 = vpop.permute.xlu2 %2939  ;;  %v2771_v11 = vpop.f32.mrf.mxu0 }
 0x635   :  { %v3039_v57 = vadd.f32 %v3002_v8, %v2975_v25 }
 0x637   :  { %v3055_v58 = vadd.f32 %v3039_v57, %v6472_v38  ;;  %v4124_v57 = vld [vmem:[%s7029_s1 + $0xd0] sm:$0xff] }
 0x638   :  { %v3098_v52 = vpop.permute.xlu1 %3097 }
 0x639   :  { %v3135_v14 = vadd.f32 %v3098_v52, %v3055_v58  ;;  %v4125_v58 = vld [vmem:[#allocation3 + $0x59] sm:$0xff] }
 0x63a   :  { %v3162_v59 = vpop.permute.xlu0 %3161 }
 0x63b   :  { %v3199_v23 = vadd.f32 %v3162_v59, %v3135_v14  ;;  %v2942_v55 = vpop.permute.xlu2 %2941  ;;  %v2774_v9 = vpop.f32.mrf.mxu0  ;;  %v4127_v59 = vld [vmem:[#allocation3 + $0x61] sm:$0xff] }
 0x63d   :  { %v6698_v47 = vadd.f32 %v3226_v63, %v3199_v23 }
 0x640   :  { %v2876_v42 = vpop.permute.xlu1 %2875 }
 0x641   :  { %v2912_v44 = vadd.f32 %v2876_v42, %v6491_v7  ;;  %v6714_v7 = vld [vmem:[%s7038_s10 + $0xa] ss:$0 sm:$0xff] }
 0x642   :  { %v3164_v2 = vpop.permute.xlu0 %3163 }
 0x643   :  { %v3006_v19 = vpop.permute.xlu2 %3005  ;;  %v2776_v30 = vpop.f32.mrf.mxu0  ;;  %v2976_v53 = vadd.f32 %v2940_v41, %v2912_v44 }
 0x648   :  { %v3004_v24 = vpop.permute.xlu1 %3003 }
 0x649   :  { %v3040_v28 = vadd.f32 %v3004_v24, %v2976_v53 }
 0x64a   :  { %v2878_v43 = vpop.permute.xlu0 %2877 }
 0x64b   :  { %v3166_v51 = vpop.permute.xlu2 %3165  ;;  %v2913_v18 = vadd.f32 %v2878_v43, %v6520_v13  ;;  %v3286_v13 = vmul.f32 %v6708_v32, %v6387_v0  ;;  %v2779_v36 = vpop.f32.mrf.mxu0  ;;  %v3056_v8 = vadd.f32 %v3040_v28, %v6500_v6  ;;  %v2536_v0 = vmul.f32 %v4125_v58, %v4124_v57  ;;  %v4126_v6 = vld [vmem:[%s7029_s1 + $0xe8] sm:$0xff] }
 0x64c   :  { %v2539_v23 = vmul.f32 %v4127_v59, %v4126_v6  ;;  %v3287_v28 = vmul.f32 %v6708_v32, %v6449_v22 }
 0x64d   :  { %v2977_v46 = vadd.f32 %v2942_v55, %v2913_v18  ;;  %v2815_v42 = vmul.f32 %v2769_v10, %v2536_v0  ;;  %v4132_v10 = vld [vmem:[%s7029_s1 + $0x130] sm:$0xff] }
 0x64e   :  { %v6752_v22 = vadd.f32 %v6714_v7, %v3287_v28 }
 0x64f   :  { %v3041_v31 = vadd.f32 %v3006_v19, %v2977_v46 }
 0x650   :  { %v3100_v38 = vpop.permute.xlu1 %3099  ;;  %v3320_v59 = vsub.f32 0.0, %v6752_v22 }
 0x651   :  { %v3136_v25 = vadd.f32 %v3100_v38, %v3056_v8  ;;  %v3057_v41 = vadd.f32 %v3041_v31, %v6566_v62  ;;  %v4129_v62 = vld [vmem:[#allocation3 + $0x69] sm:$0xff]  ;;  %v2818_v38 = vmul.f32 %v2771_v11, %v2539_v23  ;;  %v3289_v23 = vmul.f32 %v6708_v32, %v6572_v34  ;;  %v4136_v34 = vld [vmem:[%s7029_s1 + $0x160] sm:$0xff] }
 0x652   :  { %v2880_v16 = vpop.permute.xlu0 %2879  ;;  %v2542_v55 = vmul.f32 %v4129_v62, %v4128_v20 }
 0x653   :  { %v3008_v5 = vpop.permute.xlu2 %3007  ;;  %v2914_v1 = vadd.f32 %v2880_v16, %v6533_v26  ;;  %v6722_v26 = vadd.f32 %v6714_v7, %v3286_v13  ;;  %v3200_v24 = vadd.f32 %v3164_v2, %v3136_v25  ;;  %v4131_v16 = vld [vmem:[#allocation3 + $0x71] sm:$0xff]  ;;  %v4133_v2 = vld [vmem:[#allocation3 + $0x79] sm:$0xff] }
 0x654   :  { %v2821_v18 = vmul.f32 %v2774_v9, %v2542_v55  ;;  %v2548_v11 = vmul.f32 %v4133_v2, %v4132_v10 }
 0x655   :  { %v3319_v19 = vsub.f32 0.0, %v6722_v26 }
 0x656   :  { %v3279_v9 = vadd.f32 %v6698_v47, %v2821_v18 }
 0x657   :  { %v3335_v31 = vmul.f32 1.442695, %v3319_v19 }
 0x658   :  { %v3228_v4 = vpop.permute.xlu1 %3227  ;;  %v3296_v47 = vmul.f32 %v6708_v32, %v3279_v9 }
 0x659   :  { %v3264_v53 = vadd.f32 %v3228_v4, %v3200_v24  ;;  %3982 = vpow2.f32 %v3335_v31  ;;  %v4137_v24 = vld [vmem:[#allocation3 + $0x89] sm:$0xff]  ;;  %v3292_v31 = vmul.f32 %v6708_v32, %v6675_v39 }
 0x65a   :  { %v2944_v45 = vpop.permute.xlu0 %2943 }
 0x65b   :  { %v2978_v54 = vadd.f32 %v2944_v45, %v2914_v1  ;;  %v3168_v60 = vpop.permute.xlu2 %3167 }
 0x65d   :  { %v3042_v40 = vadd.f32 %v3008_v5, %v2978_v54  ;;  %v3278_v54 = vadd.f32 %v6690_v48, %v2818_v38 }
 0x65f   :  { %v3058_v14 = vadd.f32 %v3042_v40, %v6574_v49  ;;  %v4130_v49 = vld [vmem:[%s7029_s1 + $0x118] sm:$0xff]  ;;  %v2827_v40 = vmul.f32 %v2779_v36, %v2548_v11  ;;  %v3295_v48 = vmul.f32 %v6708_v32, %v3278_v54 }
 0x660   :  { %v3102_v33 = vpop.permute.xlu1 %3101  ;;  %v2545_v45 = vmul.f32 %v4131_v16, %v4130_v49  ;;  %v3290_v16 = vmul.f32 %v6708_v32, %v6610_v27 }
 0x661   :  { %v3137_v52 = vadd.f32 %v3102_v33, %v3057_v41  ;;  %v3277_v33 = vadd.f32 %v6692_v35, %v2815_v42  ;;  %v6767_v20 = vadd.f32 %v6714_v7, %v3295_v48  ;;  %v6773_v42 = vadd.f32 %v6714_v7, %v3296_v47 }
 0x662   :  { %v3104_v50 = vpop.permute.xlu0 %3103  ;;  %v2824_v1 = vmul.f32 %v2776_v30, %v2545_v45  ;;  %v4135_v30 = vld [vmem:[#allocation3 + $0x81] sm:$0xff]  ;;  %v3983_v45 = vpop.eup %3982  ;;  %v6803_v54 = vadd.f32 %v6714_v7, %v3290_v16 }
 0x663   :  { %v3138_v43 = vadd.f32 %v3104_v50, %v3058_v14  ;;  %v3010_v5 = vpop.permute.xlu2 %3009  ;;  %v3201_v46 = vadd.f32 %v3166_v51, %v3137_v52  ;;  %v2781_v50 = vpop.f32.mrf.mxu0  ;;  %v4134_v51 = vld [vmem:[%s7029_s1 + $0x148] sm:$0xff]  ;;  %v3294_v25 = vmul.f32 %v6708_v32, %v3277_v33  ;;  %v3328_v10 = vsub.f32 0.0, %v6767_v20 }
 0x664   :  { %v2551_v8 = vmul.f32 %v4135_v30, %v4134_v51  ;;  %v3280_v41 = vadd.f32 %v3264_v53, %v2824_v1  ;;  %v3337_v53 = vmul.f32 1.442695, %v3320_v59  ;;  %v3291_v1 = vmul.f32 %v6708_v32, %v6633_v61 }
 0x665   :  { %v3202_v4 = vadd.f32 %v3168_v60, %v3138_v43  ;;  %v6759_v36 = vadd.f32 %v6714_v7, %v3294_v25  ;;  %v2554_v43 = vmul.f32 %v4137_v24, %v4136_v34  ;;  %v3329_v2 = vsub.f32 0.0, %v6773_v42 }
 0x666   :  { %v2830_v58 = vmul.f32 %v2781_v50, %v2551_v8  ;;  %v3297_v52 = vmul.f32 %v6708_v32, %v3280_v41  ;;  %v3367_v28 = vadd.f32 1.0, %v3983_v45  ;;  %3984 = vpow2.f32 %v3337_v53 }
 0x667   :  { %v6813_v30 = vadd.f32 %v6714_v7, %v3291_v1  ;;  %v3353_v8 = vmul.f32 1.442695, %v3328_v10  ;;  %v3355_v25 = vmul.f32 1.442695, %v3329_v2 }
 0x668   :  { %v3230_v63 = vpop.permute.xlu1 %3229  ;;  %v6787_v18 = vadd.f32 %v6714_v7, %v3297_v52  ;;  %3986 = vrcp.f32 %v3367_v28 }
 0x669   :  { %v3265_v35 = vadd.f32 %v3230_v63, %v3201_v46  ;;  %v3288_v63 = vmul.f32 %v6708_v32, %v6510_v29  ;;  %v3939_v29 = vld [vmem:[%s7035_s7] sm:$0xff]  ;;  %v6791_v46 = vadd.f32 %v6714_v7, %v3289_v23 }
 0x66a   :  { %v6719_v17 = vpop.permute.xlu0 %2945  ;;  %3504 = vmatpush.bf16.msra.mxu1 %v3939_v29 }
 0x66b   :  { %v3281_v60 = vadd.f32 %v3265_v35, %v2827_v40  ;;  %v3170_v62 = vpop.permute.xlu2 %3169  ;;  %v2784_v38 = vpop.f32.mrf.mxu0  ;;  %v6781_v49 = vadd.f32 %v6714_v7, %v3288_v63  ;;  %v3330_v35 = vsub.f32 0.0, %v6787_v18 }
 0x66c   :  { %v2833_v27 = vmul.f32 %v2784_v38, %v2554_v43  ;;  %v3985_v23 = vpop.eup %3984  ;;  %v2073_v38 = vld [vmem:[#allocation3 + $0x91] sm:$0xff] }
 0x66d   :  { %v3298_v19 = vmul.f32 %v6708_v32, %v3281_v60  ;;  %v3357_v60 = vmul.f32 1.442695, %v3330_v35 }
 0x66e   :  { %v6825_v43 = vpop.eup %3986 }
 0x66f   :  { %v6798_v11 = vadd.f32 %v6714_v7, %v3298_v19 }
 0x670   :  { %v3232_v44 = vpop.permute.xlu1 %3231 }
 0x671   :  { %v3266_v57 = vadd.f32 %v3232_v44, %v3202_v4  ;;  %v3327_v44 = vsub.f32 0.0, %v6759_v36  ;;  %v3331_v41 = vsub.f32 0.0, %v6798_v11 }
 0x672   :  { %v3106_v13 = vpop.permute.xlu0 %3105 }
 0x673   :  { %v3282_v14 = vadd.f32 %v3266_v57, %v2830_v58  ;;  %v3351_v9 = vmul.f32 1.442695, %v3327_v44  ;;  %v3323_v58 = vsub.f32 0.0, %v6803_v54  ;;  %v3234_v47 = vpop.permute.xlu2 %3233 }
 0x675   :  { %3988 = vpow2.f32 %v3351_v9 }
 0x676   :  { %3990 = vpow2.f32 %v3353_v8  ;;  %v4139_v8 = vld [vmem:[%s7029_s1 + $0xb8] sm:$0xff] }
 0x677   :  { %3992 = vpow2.f32 %v3355_v25  ;;  %v4140_v25 = vld [vmem:[#allocation3 + $0x51] sm:$0xff] }
 0x678   :  { %v2882_v0 = vpop.permute.xlu1 %2881 }
 0x679   :  { %v2915_v6 = vadd.f32 %v2882_v0, %v6593_v12 }
 0x67a   :  { %v2948_v55 = vpop.permute.xlu0 %2947 }
 0x67b   :  { %v2979_v12 = vadd.f32 %v6719_v17, %v2915_v6  ;;  %v3299_v17 = vmul.f32 %v6708_v32, %v3282_v14  ;;  %v3324_v14 = vsub.f32 0.0, %v6813_v30  ;;  %v3359_v6 = vmul.f32 1.442695, %v3331_v41  ;;  %v3989_v44 = vpop.eup %3988 }
 0x67c   :  { %v3991_v53 = vpop.eup %3990  ;;  %v2533_v41 = vmul.f32 %v4140_v25, %v4139_v8  ;;  %v7227_v25 = vld [vmem:[#allocation21_spill] sm:$0xff] }
 0x67d   :  { %v3043_v33 = vadd.f32 %v3010_v5, %v2979_v12  ;;  %v3321_v5 = vsub.f32 0.0, %v6781_v49  ;;  %v6809_v4 = vadd.f32 %v6714_v7, %v3299_v17  ;;  %v3345_v16 = vmul.f32 1.442695, %v3324_v14  ;;  %v3993_v10 = vpop.eup %3992 }
 0x67e   :  { %v3368_v17 = vadd.f32 1.0, %v3985_v23 }
 0x67f   :  { %v3059_v50 = vadd.f32 %v3043_v33, %v6612_v37  ;;  %v3322_v37 = vsub.f32 0.0, %v6791_v46  ;;  %v3339_v48 = vmul.f32 1.442695, %v3321_v5  ;;  %v3332_v63 = vsub.f32 0.0, %v6809_v4 }
 0x680   :  { %v2884_v61 = vpop.permute.xlu1 %2883 }
 0x681   :  { %v3139_v51 = vadd.f32 %v3106_v13, %v3059_v50  ;;  %v2916_v57 = vadd.f32 %v2884_v61, %v6637_v56  ;;  %v6819_v13 = vadd.f32 %v6714_v7, %v3292_v31  ;;  %v3341_v52 = vmul.f32 1.442695, %v3322_v37  ;;  %v2786_v31 = vpop.f32.mrf.mxu0 }
 0x682   :  { %v3108_v40 = vpop.permute.xlu0 %3107  ;;  %3994 = vpow2.f32 %v3339_v48  ;;  %v3361_v12 = vmul.f32 1.442695, %v3332_v63  ;;  %v3375_v61 = vadd.f32 1.0, %v3989_v44  ;;  %v2812_v63 = vmul.f32 %v6695_v15, %v2533_v41 }
 0x683   :  { %v3203_v39 = vadd.f32 %v3170_v62, %v3139_v51  ;;  %v2980_v59 = vadd.f32 %v2948_v55, %v2916_v57  ;;  %v3343_v62 = vmul.f32 1.442695, %v3323_v58  ;;  %v3325_v29 = vsub.f32 0.0, %v6819_v13 }
 0x684   :  { %3996 = vpow2.f32 %v3357_v60 }
 0x685   :  { %v3267_v0 = vadd.f32 %v3234_v47, %v3203_v39  ;;  %3998 = vpow2.f32 %v3341_v52  ;;  %v3347_v1 = vmul.f32 1.442695, %v3325_v29  ;;  %v3377_v39 = vadd.f32 1.0, %v3993_v10 }
 0x686   :  { %4000 = vpow2.f32 %v3359_v6 }
 0x687   :  { %v3283_v56 = vadd.f32 %v3267_v0, %v2833_v27  ;;  %4002 = vpow2.f32 %v3343_v62  ;;  %v4138_v27 = vld [vmem:[%s7029_s1 + $0x178] sm:$0xff] }
 0x688   :  { %v3012_v19 = vpop.permute.xlu1 %3011  ;;  %v2557_v2 = vmul.f32 %v4138_v27, %v2073_v38  ;;  %4004 = vpow2.f32 %v3361_v12  ;;  %v3995_v5 = vpop.eup %3994  ;;  %v6851_v27 = vmul.f32 %v6825_v43, %v6722_v26 }
 0x689   :  { %v3300_v34 = vmul.f32 %v6708_v32, %v3283_v56  ;;  %v3044_v24 = vadd.f32 %v3012_v19, %v2980_v59  ;;  %4006 = vpow2.f32 %v3345_v16  ;;  %v3369_v58 = vadd.f32 1.0, %v3995_v5 }
 0x68a   :  { %v3172_v45 = vpop.permute.xlu0 %3171  ;;  %v3997_v9 = vpop.eup %3996  ;;  %4008 = vrcp.f32 %v3368_v17  ;;  %v2836_v48 = vmul.f32 %v2786_v31, %v2557_v2 }
 0x68b   :  { %v6828_v55 = vadd.f32 %v6714_v7, %v3300_v34  ;;  %v3060_v33 = vadd.f32 %v3044_v24, %v6652_v3  ;;  %v3376_v3 = vadd.f32 1.0, %v3991_v53  ;;  %v3999_v37 = vpop.eup %3998  ;;  %4010 = vpow2.f32 %v3347_v1 }
 0x68c   :  { %v3378_v0 = vadd.f32 1.0, %v3997_v9  ;;  %v3370_v6 = vadd.f32 1.0, %v3999_v37  ;;  %v7226_v37 = vld [vmem:[#allocation28_spill] sm:$0xff] }
 0x68d   :  { %v3333_v50 = vsub.f32 0.0, %v6828_v55  ;;  %v3140_v28 = vadd.f32 %v3108_v40, %v3060_v33  ;;  %v4001_v40 = vpop.eup %4000 }
 0x68e   :  { %v4003_v60 = vpop.eup %4002  ;;  %v3379_v62 = vadd.f32 1.0, %v4001_v40  ;;  %v7228_v40 = vld [vmem:[#allocation29_spill] sm:$0xff] }
 0x68f   :  { %v3363_v35 = vmul.f32 1.442695, %v3333_v50  ;;  %v3204_v51 = vadd.f32 %v3172_v45, %v3140_v28  ;;  %v4005_v14 = vpop.eup %4004  ;;  %v3371_v19 = vadd.f32 1.0, %v4003_v60 }
 0x690   :  { %v3236_v57 = vpop.permute.xlu1 %3235  ;;  %v4007_v23 = vpop.eup %4006  ;;  %v3380_v15 = vadd.f32 1.0, %v4005_v14 }
 0x691   :  { %4012 = vpow2.f32 %v3363_v35  ;;  %v3268_v47 = vadd.f32 %v3236_v57, %v3204_v51  ;;  %v4009_v29 = vpop.eup %4008  ;;  %v3372_v16 = vadd.f32 1.0, %v4007_v23 }
 0x692   :  { %4014 = vrcp.f32 %v3375_v61  ;;  %v3220_v52 = vpop.permute.xlu0 %3219  ;;  %v4011_v24 = vpop.eup %4010  ;;  %v6858_v61 = vmul.f32 %v4009_v29, %v6752_v22 }
 0x693   :  { %4016 = vrcp.f32 %v3376_v3  ;;  %v3284_v56 = vadd.f32 %v3268_v47, %v2836_v48  ;;  %v3260_v59 = vadd.f32 %v3220_v52, %v6686_v21  ;;  %v3373_v2 = vadd.f32 1.0, %v4011_v24  ;;  %v7229_v48 = vld [vmem:[#allocation12_spill] sm:$0xff] }
 0x694   :  { %4018 = vrcp.f32 %v3377_v39  ;;  %v3416_v41 = vadd.f32 %v6858_v61, %v7227_v25 }
 0x695   :  { %4020 = vrcp.f32 %v3369_v58  ;;  %v3301_v12 = vmul.f32 %v6708_v32, %v3284_v56  ;;  %v3276_v34 = vadd.f32 %v3260_v59, %v2812_v63  ;;  %v7230_v63 = vld [vmem:[#allocation22_spill] sm:$0xff] }
 0x696   :  { %4022 = vrcp.f32 %v3378_v0  ;;  %v3432_v23 = vsel %vm136_vm0, %v3416_v41, 0.0  ;;  %v7238_v41 = vld [vmem:[#allocation26_spill] sm:$0xff] }
 0x697   :  { %v4013_v38 = vpop.eup %4012  ;;  %4024 = vrcp.f32 %v3370_v6  ;;  %v6842_v45 = vadd.f32 %v6714_v7, %v3301_v12  ;;  %v3293_v21 = vmul.f32 %v6708_v32, %v3276_v34  ;;  %v7231_v6 = vld [vmem:[#allocation13_spill] sm:$0xff] }
 0x698   :  { %v4015_v44 = vpop.eup %4014  ;;  %4026 = vrcp.f32 %v3379_v62  ;;  %v3381_v17 = vadd.f32 1.0, %v4013_v38  ;;  %v7232_v62 = vld [vmem:[#allocation23_spill] sm:$0xff] }
 0x699   :  { %v4017_v33 = vpop.eup %4016  ;;  %4028 = vrcp.f32 %v3371_v19  ;;  %v3334_v53 = vsub.f32 0.0, %v6842_v45  ;;  %v6847_v1 = vadd.f32 %v6714_v7, %v3293_v21  ;;  %v6854_v32 = vmul.f32 %v4015_v44, %v6759_v36  ;;  %v7225_v36 = vld [vmem:[#allocation20_spill] sm:$0xff] }
 0x69a   :  { %v4019_v10 = vpop.eup %4018  ;;  %4030 = vrcp.f32 %v3380_v15  ;;  %v6861_v9 = vmul.f32 %v4017_v33, %v6767_v20  ;;  %v3415_v35 = vadd.f32 %v6851_v27, %v7225_v36  ;;  %v7233_v15 = vld [vmem:[#allocation14_spill] sm:$0xff] }
 0x69b   :  { %v4021_v50 = vpop.eup %4020  ;;  %4032 = vrcp.f32 %v3372_v16  ;;  %v3365_v28 = vmul.f32 1.442695, %v3334_v53  ;;  %v3326_v5 = vsub.f32 0.0, %v6847_v1  ;;  %v6864_v26 = vmul.f32 %v4019_v10, %v6773_v42  ;;  %v7235_v53 = vld [vmem:[#allocation15_spill] sm:$0xff] }
 0x69c   :  { %v4023_v31 = vpop.eup %4022  ;;  %4034 = vrcp.f32 %v3381_v17  ;;  %v6869_v51 = vmul.f32 %v4021_v50, %v6781_v49  ;;  %v3423_v8 = vadd.f32 %v6854_v32, %v7226_v37  ;;  %v3424_v49 = vadd.f32 %v6861_v9, %v7228_v40  ;;  %v7234_v17 = vld [vmem:[#allocation24_spill] sm:$0xff] }
 0x69d   :  { %v4025_v7 = vpop.eup %4024  ;;  %4036 = vpow2.f32 %v3365_v28  ;;  %v3349_v43 = vmul.f32 1.442695, %v3326_v5  ;;  %v6874_v20 = vmul.f32 %v4023_v31, %v6787_v18  ;;  %v3425_v58 = vadd.f32 %v6864_v26, %v7229_v48  ;;  %v7236_v31 = vld [vmem:[#allocation25_spill] sm:$0xff] }
 0x69e   :  { %v4027_v3 = vpop.eup %4026  ;;  %4038 = vrcp.f32 %v3373_v2  ;;  %v6879_v39 = vmul.f32 %v4025_v7, %v6791_v46  ;;  %v3431_v60 = vsel %vm136_vm0, %v3415_v35, 0.0  ;;  %v3417_v0 = vadd.f32 %v6869_v51, %v7230_v63 }
 0x69f   :  { %v4029_v22 = vpop.eup %4028  ;;  %4040 = vpow2.f32 %v3349_v43  ;;  %v6886_v47 = vmul.f32 %v4027_v3, %v6798_v11  ;;  %v3452_v14 = vsel %vm136_vm0, %v3423_v8, 0.0  ;;  %v3426_v56 = vadd.f32 %v6874_v20, %v7231_v6  ;;  %v7237_v3 = vld [vmem:[#allocation17_spill] sm:$0xff] }
 0x6a0   :  { %v4031_v42 = vpop.eup %4030  ;;  %v6892_v46 = vmul.f32 %v4029_v22, %v6803_v54  ;;  %v3418_v29 = vadd.f32 %v6879_v39, %v7232_v62  ;;  %v3453_v34 = vsel %vm136_vm0, %v3424_v49, 0.0  ;;  %v3455_v24 = vsel %vm136_vm0, %v3425_v58, 0.0 }
 0x6a1   :  { %v4033_v57 = vpop.eup %4032  ;;  %v6898_v59 = vmul.f32 %v4031_v42, %v6809_v4  ;;  %v3427_v38 = vadd.f32 %v6886_v47, %v7233_v15  ;;  %v3434_v16 = vsel %vm136_vm0, %v3417_v0, 0.0  ;;  %v3454_v21 = vadd.f32 %v3453_v34, %v3452_v14 }
 0x6a2   :  { %v4035_v18 = vpop.eup %4034  ;;  %v6904_v19 = vmul.f32 %v4033_v57, %v6813_v30  ;;  %v3419_v30 = vadd.f32 %v6892_v46, %v7234_v17  ;;  %v3457_v33 = vsel %vm136_vm0, %v3426_v56, 0.0  ;;  %v3433_v50 = vadd.f32 %v3432_v23, %v3431_v60  ;;  %v7239_v23 = vld [vmem:[#allocation30_spill] sm:$0xff] }
 0x6a3   :  { %v4037_v52 = vpop.eup %4036  ;;  %v6911_v4 = vmul.f32 %v4035_v18, %v6828_v55  ;;  %v3428_v10 = vadd.f32 %v6898_v59, %v7235_v53  ;;  %v3942_v55 = vld [vmem:[%s7036_s8 + $0x8] sm:$0xff]  ;;  %v3456_v28 = vadd.f32 %v3455_v24, %v3454_v21  ;;  %v3436_v5 = vsel %vm136_vm0, %v3418_v29, 0.0 }
 0x6a4   :  { %v4039_v11 = vpop.eup %4038  ;;  %v3382_v12 = vadd.f32 1.0, %v4037_v52  ;;  %v3420_v7 = vadd.f32 %v6904_v19, %v7236_v31  ;;  %v3459_v43 = vsel %vm136_vm0, %v3427_v38, 0.0  ;;  %3541 = vmatpush.bf16.msrb.mxu1 %v3942_v55  ;;  %v3438_v8 = vsel %vm136_vm0, %v3419_v30, 0.0 }
 0x6a5   :  { %v4041_v54 = vpop.eup %4040  ;;  %v6920_v2 = vmul.f32 %v4039_v11, %v6819_v13  ;;  %v3429_v35 = vadd.f32 %v6911_v4, %v7237_v3  ;;  %v3435_v13 = vadd.f32 %v3434_v16, %v3433_v50  ;;  %v3458_v22 = vadd.f32 %v3457_v33, %v3456_v28  ;;  %v7240_v16 = vld [vmem:[#allocation27_spill] sm:$0xff] }
 0x6a6   :  { %4042 = vrcp.f32 %v3382_v12  ;;  %v3374_v44 = vadd.f32 1.0, %v4041_v54  ;;  %v3461_v42 = vsel %vm136_vm0, %v3428_v10, 0.0  ;;  %v3440_v60 = vsel %vm136_vm0, %v3420_v7, 0.0 }
 0x6a7   :  { %v3421_v57 = vadd.f32 %v6920_v2, %v7238_v41  ;;  %v3437_v58 = vadd.f32 %v3436_v5, %v3435_v13  ;;  %v3460_v18 = vadd.f32 %v3459_v43, %v3458_v22  ;;  %v3463_v52 = vsel %vm136_vm0, %v3429_v35, 0.0 }
 0x6a8   :  { %4044 = vrcp.f32 %v3374_v44 }
 0x6a9   :  { %v3439_v56 = vadd.f32 %v3438_v8, %v3437_v58  ;;  %v3462_v11 = vadd.f32 %v3461_v42, %v3460_v18  ;;  %v3442_v12 = vsel %vm136_vm0, %v3421_v57, 0.0  ;;  %v3941_v58 = vld [vmem:[%s7036_s8] sm:$0xff]  ;;  %v3976_v18 = vld [vmem:[%s7038_s10 + $0xf] ss:$0 sm:$0xff] }
 0x6aa   :  { %3542 = vmatpush.bf16.msrb.mxu1 %v3941_v58  ;;  %3552 = vrot.lane.b32.xlu2 %v3976_v18, %s4168_s27 }
 0x6ab   :  { %v3441_v34 = vadd.f32 %v3440_v60, %v3439_v56  ;;  %v3464_v24 = vadd.f32 %v3463_v52, %v3462_v11  ;;  %v3973_v60 = vld [vmem:[%s7038_s10 + $0xb] ss:$0 sm:$0xff]  ;;  %v3974_v52 = vld [vmem:[%s7038_s10 + $0xc] ss:$0 sm:$0xff]  ;;  %v3975_v11 = vld [vmem:[%s7038_s10 + $0xd] ss:$0 sm:$0xff] }
 0x6ac   :  { %v4043_v49 = vpop.eup %4042 }
 0x6ad   :  { %v6937_v0 = vmul.f32 %v4043_v49, %v6842_v45  ;;  %v3443_v44 = vadd.f32 %v3442_v12, %v3441_v34 }
 0x6ae   :  { %v4045_v14 = vpop.eup %4044 }
 0x6af   :  { %v3430_v29 = vadd.f32 %v6937_v0, %v7239_v23  ;;  %v6944_v54 = vmul.f32 %v4045_v14, %v6847_v1 }
 0x6b1   :  { %v3465_v38 = vsel %vm136_vm0, %v3430_v29, 0.0  ;;  %v3422_v45 = vadd.f32 %v6944_v54, %v7240_v16 }
 0x6b2   :  { %v3466_v21 = vadd.f32 %v3465_v38, %v3464_v24 }
 0x6b3   :  { %v3444_v30 = vsel %vm136_vm0, %v3422_v45, 0.0 }
 0x6b4   :  { %v3467_v33 = vrot.slane %v3466_v21, 4  ;;  %v3445_v10 = vadd.f32 %v3444_v30, %v3443_v44 }
 0x6b6   :  { %v3468_v55 = vadd.f32 %v3467_v33, %v3466_v21  ;;  %v3446_v50 = vrot.slane %v3445_v10, 4  ;;  %v3977_v33 = vld [vmem:[%s7038_s10 + $0xe] ss:$0 sm:$0xff]  ;;  %s4171_s10 = smov [#allocation4]  }
 0x6b8   :  { %v3469_v28 = vrot.slane %v3468_v55, 2  ;;  %v3447_v5 = vadd.f32 %v3446_v50, %v3445_v10 }
 0x6ba   :  { %v3470_v7 = vadd.f32 %v3469_v28, %v3468_v55  ;;  %v3448_v1 = vrot.slane %v3447_v5, 2 }
 0x6bc   :  { %v3471_v43 = vrot.slane %v3470_v7, 1  ;;  %v3449_v35 = vadd.f32 %v3448_v1, %v3447_v5 }
 0x6be   :  { %v3450_v13 = vrot.slane %v3449_v35, 1  ;;  %v3472_v22 = vadd.f32 %v3471_v43, %v3470_v7 }
 0x6c0   :  { %v3451_v8 = vadd.f32 %v3450_v13, %v3449_v35 }
 0x6c2   :  { %v3474_v42 = vsel %vm3473_vm13, %v3451_v8, %v3472_v22 }
 0x6c3   :  { %v3475_v57 = vmul.f32 0.015625, %v3474_v42 }
 0x6c5   :  { %v3476_v49 = vpack.c.bf16 %v3475_v57, %v3475_v57 }
 0x6c7   :  { %3898 = vmatmul.msk.bf16.vlgmr.msra.gmra.mxu1 %vm136_vm0, %v3476_v49 }
 0x704   :  { %v3553_v45 = vpop.permute.xlu2 %3552 }
 0x744   :  { %v3506_v14 = vpop.f32.mrf.mxu1 }
 0x745   :  { %v3507_v56 = vadd.f32 %v3973_v60, %v3506_v14 }
 0x747   :  { %v3511_v29 = vmul.f32 %v3974_v52, %v3507_v56 }
 0x749   :  { %v3513_v12 = vadd.f32 %v3975_v11, %v3511_v29 }
 0x74b   :  { %v3514_v34 = vmax.f32 %v3513_v12, 0.0 }
 0x74c   :  { %v3508_v24 = vpop.f32.mrf.mxu1 }
 0x74d   :  { %v3515_v38 = vpack.c.bf16 %v3514_v34, %v3514_v34 }
 0x74f   :  { %3907 = vmatmul.msk.bf16.vlgmr.msrb.gmra.mxu1 %vm136_vm0, %v3515_v38 }
 0x7cc   :  { %v3544_v21 = vpop.f32.mrf.mxu1 }
 0x7cd   :  { %v3555_v44 = vadd.f32 %v3553_v45, %v3544_v21  ;;  %v3549_v10 = vadd.f32 %v3977_v33, %v3544_v21 }
 0x7cf   :  { %3557 = vrot.lane.b32.xlu0 %v3555_v44, %s4170_s29 }
 0x7d4   :  { %v3546_v30 = vpop.f32.mrf.mxu1 }
 0x841   :  { %v3558_v55 = vpop.permute.xlu0 %3557 }
 0x842   :  { %v3560_v50 = vmax.f32 %v3549_v10, %v3558_v55 }
 0x844   :  { %v3561_v28 = vsub.f32 %v3549_v10, %v3560_v50  ;;  %3565 = vrot.lane.b32.xlu1 %v3560_v50, %s4168_s27 }
 0x846   :  { %v3562_v35 = vmul.f32 1.442695, %v3561_v28 }
 0x8b6   :  { %v3566_v5 = vpop.permute.xlu1 %3565 }
 0x8b7   :  { %v3568_v7 = vsub.f32 %v3555_v44, %v3566_v5 }
 0x8b9   :  { %v3569_v1 = vmul.f32 1.442695, %v3568_v7 }
 0x8bb   :  { %4046 = vpow2.f32 %v3569_v1 }
 0x8bc   :  { %4048 = vpow2.f32 %v3562_v35 }
 0x8c1   :  { %v4047_v43 = vpop.eup %4046 }
 0x8c2   :  { %3572 = vrot.lane.b32.xlu2 %v4047_v43, %s4170_s29  ;;  %v4049_v13 = vpop.eup %4048 }
 0x91c   :  { %v3573_v22 = vpop.permute.xlu2 %3572 }
 0x91d   :  { %v3575_v8 = vadd.f32 %v4049_v13, %v3573_v22 }
 0x91f   :  { %4050 = vrcp.f32 %v3575_v8 }
 0x925   :  { %v4051_v42 = vpop.eup %4050 }
 0x926   :  { %v3577_v57 = vmul.f32 %v4051_v42, %v4049_v13  ;;  %3579 = vrot.lane.b32.xlu0 %v4051_v42, %s4168_s27  ;;  %s3663_s27 = sshll.u32 %s4171_s10, 4  ;;  %s3664_s27 = int_to_ptr.vmem [resolvable:$true] %s3663_s27 }
 0x928   :  { %v3621_v52 = vperm.slane %v3577_v57, 1 }
 0x92a   :  { %v3622_v56 = vmul.f32 %v3621_v52, %v6854_v32  ;;  %v3623_v11 = vmul.f32 %v3621_v52, %v6861_v9  ;;  %v3624_v29 = vmul.f32 %v3621_v52, %v6864_v26  ;;  %v3625_v45 = vmul.f32 %v3621_v52, %v6874_v20 }
 0x92b   :  { %v3626_v21 = vmul.f32 %v3621_v52, %v6886_v47  ;;  %v3629_v20 = vmul.f32 %v3621_v52, %v6937_v0 }
 0x998   :  { %v3580_v49 = vpop.permute.xlu0 %3579 }
 0x999   :  { %v3582_v58 = vmul.f32 %v4047_v43, %v3580_v49 }
 0x99b   :  { %v3592_v18 = vperm.slane %v3582_v58, 0  ;;  %v3630_v60 = vperm.slane %v3582_v58, 1 }
 0x99d   :  { %3632 = vrot.lane.b32.xlu2 %v3630_v60, %s4170_s29  ;;  %3594 = vrot.lane.b32.xlu1 %v3592_v18, %s4170_s29 }
 0x9f7   :  { %v3633_v14 = vpop.permute.xlu2 %3632 }
 0x9f8   :  { %v3635_v12 = vmul.f32 %v3633_v14, %v7226_v37  ;;  %v3636_v34 = vmul.f32 %v3633_v14, %v7228_v40  ;;  %v3637_v24 = vmul.f32 %v3633_v14, %v7229_v48  ;;  %v3638_v38 = vmul.f32 %v3633_v14, %v7231_v6 }
 0x9f9   :  { %v3639_v44 = vmul.f32 %v3633_v14, %v7233_v15  ;;  %v3640_v32 = vmul.f32 %v3633_v14, %v7235_v53  ;;  %v3641_v9 = vmul.f32 %v3633_v14, %v7237_v3  ;;  %v3627_v37 = vmul.f32 %v3621_v52, %v6898_v59 }
 0x9fa   :  { %v3643_v30 = vadd.f32 %v3635_v12, %v3622_v56  ;;  %v3644_v26 = vadd.f32 %v3636_v34, %v3623_v11  ;;  %v3645_v33 = vadd.f32 %v3637_v24, %v3624_v29  ;;  %v3642_v40 = vmul.f32 %v3633_v14, %v7239_v23 }
 0x9fb   :  { %v3646_v48 = vadd.f32 %v3638_v38, %v3625_v45  ;;  %v3628_v6 = vmul.f32 %v3621_v52, %v6911_v4  ;;  %v3647_v10 = vadd.f32 %v3639_v44, %v3626_v21  ;;  %v3648_v47 = vadd.f32 %v3640_v32, %v3627_v37 }
 0x9fc   :  { %3651 = vst.msk [vmem:[#allocation4 + $0x40] sm:$0xff] %vm136_vm0, %v3643_v30  ;;  %v3650_v53 = vadd.f32 %v3642_v40, %v3629_v20  ;;  %v3583_v59 = vperm.slane %v3577_v57, 0 }
 0x9fd   :  { %3652 = vst.msk [vmem:[#allocation4 + $0x48] sm:$0xff] %vm136_vm0, %v3644_v26  ;;  %v3649_v15 = vadd.f32 %v3641_v9, %v3628_v6 }
 0x9fe   :  { %3653 = vst.msk [vmem:[#allocation4 + $0x50] sm:$0xff] %vm136_vm0, %v3645_v33  ;;  %v3584_v3 = vmul.f32 %v3583_v59, %v6851_v27  ;;  %v3585_v0 = vmul.f32 %v3583_v59, %v6858_v61  ;;  %v3586_v23 = vmul.f32 %v3583_v59, %v6869_v51  ;;  %v3587_v7 = vmul.f32 %v3583_v59, %v6879_v39 }
 0x9ff   :  { %3654 = vst.msk [vmem:[#allocation4 + $0x58] sm:$0xff] %vm136_vm0, %v3646_v48  ;;  %v3588_v1 = vmul.f32 %v3583_v59, %v6892_v46  ;;  %v3591_v39 = vmul.f32 %v3583_v59, %v6944_v54 }
 0xa00   :  { %3655 = vst.msk [vmem:[#allocation4 + $0x60] sm:$0xff] %vm136_vm0, %v3647_v10 }
 0xa01   :  { %3656 = vst.msk [vmem:[#allocation4 + $0x68] sm:$0xff] %vm136_vm0, %v3648_v47 }
 0xa02   :  { %3657 = vst.msk [vmem:[#allocation4 + $0x70] sm:$0xff] %vm136_vm0, %v3649_v15 }
 0xa03   :  { %3658 = vst.msk [vmem:[#allocation4 + $0x78] sm:$0xff] %vm136_vm0, %v3650_v53 }
 0xa0f   :  { %v3595_v4 = vpop.permute.xlu1 %3594 }
 0xa10   :  { %v3597_v55 = vmul.f32 %v3595_v4, %v7225_v36  ;;  %v3598_v50 = vmul.f32 %v3595_v4, %v7227_v25  ;;  %v3599_v28 = vmul.f32 %v3595_v4, %v7230_v63  ;;  %v3600_v5 = vmul.f32 %v3595_v4, %v7232_v62 }
 0xa11   :  { %v3601_v43 = vmul.f32 %v3595_v4, %v7234_v17  ;;  %v3602_v27 = vmul.f32 %v3595_v4, %v7236_v31  ;;  %v3603_v61 = vmul.f32 %v3595_v4, %v7238_v41  ;;  %v3589_v36 = vmul.f32 %v3583_v59, %v6904_v19 }
 0xa12   :  { %v3605_v35 = vadd.f32 %v3597_v55, %v3584_v3  ;;  %v3606_v51 = vadd.f32 %v3598_v50, %v3585_v0  ;;  %v3607_v13 = vadd.f32 %v3599_v28, %v3586_v23  ;;  %v3604_v25 = vmul.f32 %v3595_v4, %v7240_v16 }
 0xa13   :  { %v3608_v63 = vadd.f32 %v3600_v5, %v3587_v7  ;;  %v3590_v62 = vmul.f32 %v3583_v59, %v6920_v2  ;;  %v3609_v22 = vadd.f32 %v3601_v43, %v3588_v1  ;;  %v3610_v46 = vadd.f32 %v3602_v27, %v3589_v36 }
 0xa14   :  { %3613 = vst.msk [vmem:[#allocation4] sm:$0xff] %vm136_vm0, %v3605_v35  ;;  %v3612_v17 = vadd.f32 %v3604_v25, %v3591_v39 }
 0xa15   :  { %3614 = vst.msk [vmem:[#allocation4 + $0x8] sm:$0xff] %vm136_vm0, %v3606_v51  ;;  %v3611_v19 = vadd.f32 %v3603_v61, %v3590_v62 }
 0xa16   :  { %3615 = vst.msk [vmem:[#allocation4 + $0x10] sm:$0xff] %vm136_vm0, %v3607_v13 }
 0xa17   :  { %3616 = vst.msk [vmem:[#allocation4 + $0x18] sm:$0xff] %vm136_vm0, %v3608_v63 }
 0xa18   :  { %3617 = vst.msk [vmem:[#allocation4 + $0x20] sm:$0xff] %vm136_vm0, %v3609_v22 }
 0xa19   :  { %3618 = vst.msk [vmem:[#allocation4 + $0x28] sm:$0xff] %vm136_vm0, %v3610_v46 }
 0xa1a   :  { %3619 = vst.msk [vmem:[#allocation4 + $0x30] sm:$0xff] %vm136_vm0, %v3611_v19 }
 0xa1b   :  { %3620 = vst.msk [vmem:[#allocation4 + $0x38] sm:$0xff] %vm136_vm0, %v3612_v17 }
 0xa1c   :  { %3671 = dma.vmem_to_hbm [thread:$0]  %s3664_s27, 2048, %s3666_s13, [#allocation5], %s4172_s14, %s4172_s14, %s4173_s15  }
 0xa1d   :  { %4165 = dma.done.wait [#allocation5], 2048  }
 0xa1e   :  { %4166 = vsyncadd [#allocation5], 4294965248 }
 0xa1f   :  { %3676 = vsyncpa [#allocation5], 1 }

</bundles_post_ra>
